<compile_context>
chip_gen: v7x
topology: tpu7x:2x2x1
jax: 0.10.0
libtpu: 0.0.40
codegen_flags: <defaults>
</compile_context>

<pallas_src>
import functools

import jax
import jax.numpy as jnp
from jax.experimental import pallas as pl
from jax.experimental.pallas import tpu as pltpu


# ----------------------------------------------------------------------------
# pltpu.roll shift-convention probe (run once, eagerly, before the main kernel
# is traced).  Falls back to an explicit slice+concat rotation if unavailable.
# ----------------------------------------------------------------------------
_SHIFT_MODE = None  # "roll_neg" | "roll_pos" | "concat"


def _detect_shift_mode():
    global _SHIFT_MODE
    if _SHIFT_MODE is not None:
        return _SHIFT_MODE

    def _probe_kernel(o_ref):
        v = jax.lax.broadcasted_iota(jnp.float32, (8, 128), 1)
        o_ref[...] = pltpu.roll(v, 1, axis=1)

    try:
        r = pl.pallas_call(
            _probe_kernel,
            out_shape=jax.ShapeDtypeStruct((8, 128), jnp.float32),
        )()
        v00 = float(jax.block_until_ready(r)[0, 0])
        # jnp.roll convention (elements move to higher indices): out[0] == 127.
        _SHIFT_MODE = "roll_neg" if abs(v00 - 127.0) < 0.5 else "roll_pos"
    except Exception:  # defensive: roll unavailable -> slice+concat rotation
        _SHIFT_MODE = "concat"
    return _SHIFT_MODE


# ----------------------------------------------------------------------------
# The fused Inception-block kernel
# ----------------------------------------------------------------------------
def _inception_kernel(x_ref, mask_ref, w1_ref, b1_ref, w2_ref, b2_ref,
                      w3_ref, b3_ref, w4_ref, b4_ref, o_ref, *,
                      W, out1, red3, out3, red5, out5, outp, shift_mode):
    # x_ref   : (1, Cin, HW)           one batch element, channels on sublanes
    # mask_ref: (25, HW)               tap validity masks, row (oy+2)*5+(ox+2)
    # w1_ref  : (out1+red3+red5, Cin)  merged, BN-scaled 1x1 weights
    # w2_ref  : (out3, 9*red3)         3x3 weights, tap-major (dy, dx, ci)
    # w3_ref  : (out5, 25*red5)        5x5 weights, tap-major (dy, dx, ci)
    # w4_ref  : (outp, Cin)            post-pool 1x1 weights (BN-scaled)
    # b*_ref  : (Cout, 1)              folded BatchNorm biases
    # o_ref   : (1, Ctot, HW)          concatenated output (== NCHW once reshaped)
    hw = x_ref.shape[2]
    x = x_ref[0]                                     # (Cin, HW)

    def tap(src, oy, ox, fill):
        """src shifted so column y*W+x reads pixel (y+oy, x+ox); fill off-image."""
        off = oy * W + ox
        if off == 0:
            return src                               # center tap, always valid
        if shift_mode == "concat":
            k = off % hw
            s = jnp.concatenate([src[:, k:], src[:, :k]], axis=1)
        else:
            amt = ((-off) if shift_mode == "roll_neg" else off) % hw
            s = pltpu.roll(src, amt, axis=1)
        i = (oy + 2) * 5 + (ox + 2)
        valid = mask_ref[i:i + 1, :] != 0.0          # (1, HW) broadcast mask
        return jnp.where(valid, s, fill)

    def conv_bn_relu(src, w, b, cin, cout, k):
        # KxK "same" conv + folded BN bias + ReLU, accumulated tap by tap
        # (slabs stay 2-D: no reshapes, no im2col relayouts).
        pad = k // 2
        acc = jnp.zeros((cout, hw), jnp.float32)
        for dy in range(k):
            for dx in range(k):
                t = dy * k + dx
                wt = w[:, t * cin:(t + 1) * cin]     # (cout, cin)
                acc = acc + jnp.dot(wt, tap(src, dy - pad, dx - pad, 0.0),
                                    preferred_element_type=jnp.float32)
        return jnp.maximum(acc + b, 0.0)

    # Branch 1 + the 1x1 reductions of branches 2/3: one merged matmul.
    y1 = jnp.dot(w1_ref[...], x, preferred_element_type=jnp.float32)
    y1 = jnp.maximum(y1 + b1_ref[...], 0.0)          # (out1+red3+red5, HW)
    o_ref[0, 0:out1, :] = y1[0:out1, :]

    # Branch 2: 3x3 conv (+BN+ReLU) on its reduced features.
    t2 = y1[out1:out1 + red3, :]
    o_ref[0, out1:out1 + out3, :] = conv_bn_relu(
        t2, w2_ref[...], b2_ref[...], red3, out3, 3)

    # Branch 3: 5x5 conv (+BN+ReLU) on its reduced features.
    t3 = y1[out1 + red3:out1 + red3 + red5, :]
    o_ref[0, out1 + out3:out1 + out3 + out5, :] = conv_bn_relu(
        t3, w3_ref[...], b3_ref[...], red5, out5, 5)

    # Branch 4: 3x3/s1/p1 max-pool (fill -inf outside the image) then 1x1 conv.
    m = x
    for dy in range(3):
        for dx in range(3):
            if dy == 1 and dx == 1:
                continue
            m = jnp.maximum(m, tap(x, dy - 1, dx - 1, float("-inf")))
    y4 = jnp.dot(w4_ref[...], m, preferred_element_type=jnp.float32)
    y4 = jnp.maximum(y4 + b4_ref[...], 0.0)
    c0 = out1 + out3 + out5
    o_ref[0, c0:c0 + outp, :] = y4


# ----------------------------------------------------------------------------
# Wrapper
# ----------------------------------------------------------------------------
def _make_tap_masks(H, W):
    """(25, H*W) f32; row (oy+2)*5+(ox+2) is 1 where (y+oy, x+ox) is in-image
    (covers conv/pool kernels up to 5x5)."""
    y = jnp.arange(H, dtype=jnp.int32)[:, None]
    x = jnp.arange(W, dtype=jnp.int32)[None, :]
    rows = []
    for oy in range(-2, 3):
        for ox in range(-2, 3):
            ok = ((y + oy >= 0) & (y + oy < H) & (x + ox >= 0) & (x + ox < W))
            rows.append(ok.reshape(1, H * W))
    return jnp.concatenate(rows, axis=0).astype(jnp.float32)


@functools.partial(jax.jit, static_argnames=("shift_mode",))
def _forward_impl(x_nchw, kparams, *, shift_mode):
    N, Cin, H, W = x_nchw.shape
    HW = H * W
    w1, b1 = kparams["w1"], kparams["b1"]
    w2, b2 = kparams["w2"], kparams["b2"]
    w3, b3 = kparams["w3"], kparams["b3"]
    w4, b4 = kparams["w4"], kparams["b4"]
    red3 = w2.shape[1] // 9
    red5 = w3.shape[1] // 25
    out1 = w1.shape[0] - red3 - red5
    out3, out5, outp = w2.shape[0], w3.shape[0], w4.shape[0]
    ctot = out1 + out3 + out5 + outp

    masks = _make_tap_masks(H, W)            # tiny constant, folded by XLA
    x_flat = x_nchw.reshape(N, Cin, HW)      # free reshape, stays NCHW

    kernel = functools.partial(
        _inception_kernel, W=W, out1=out1, red3=red3, out3=out3,
        red5=red5, out5=out5, outp=outp, shift_mode=shift_mode)

    out_flat = pl.pallas_call(
        kernel,
        out_shape=jax.ShapeDtypeStruct((N, ctot, HW), jnp.float32),
        grid=(N,),
        in_specs=[
            pl.BlockSpec((1, Cin, HW), lambda n: (n, 0, 0)),
            pl.BlockSpec((25, HW), lambda n: (0, 0)),
            pl.BlockSpec(w1.shape, lambda n: (0, 0)),
            pl.BlockSpec(b1.shape, lambda n: (0, 0)),
            pl.BlockSpec(w2.shape, lambda n: (0, 0)),
            pl.BlockSpec(b2.shape, lambda n: (0, 0)),
            pl.BlockSpec(w3.shape, lambda n: (0, 0)),
            pl.BlockSpec(b3.shape, lambda n: (0, 0)),
            pl.BlockSpec(w4.shape, lambda n: (0, 0)),
            pl.BlockSpec(b4.shape, lambda n: (0, 0)),
        ],
        out_specs=pl.BlockSpec((1, ctot, HW), lambda n: (n, 0, 0)),
        compiler_params=pltpu.CompilerParams(
            dimension_semantics=("parallel",)),
    )(x_flat, masks, w1, b1, w2, b2, w3, b3, w4, b4)
    return out_flat.reshape(N, ctot, H, W)


def inception_block_forward(x_nchw, kparams):
    """Inception_block forward: NCHW in -> NCHW out (channels in the order
    branch1, branch2, branch3, branch4), eval-mode BatchNorm folded."""
    return _forward_impl(x_nchw, kparams, shift_mode=_detect_shift_mode())


# ----------------------------------------------------------------------------
# Parameter construction (deterministic; mirrors con_block's shapes) + folding
# ----------------------------------------------------------------------------
def make_con_block_params(key, cin, cout, k):
    kw, kb = jax.random.split(key)
    # Weights kept in HWIO = (K, K, Cin, Cout).
    w = 0.1 * jax.random.normal(kw, (k, k, cin, cout), jnp.float32)
    conv_b = 0.1 * jax.random.normal(kb, (cout,), jnp.float32)
    # BatchNorm2d defaults (eval): gamma=1, beta=0, mean=0, var=1, eps=1e-5.
    gamma = jnp.ones((cout,), jnp.float32)
    beta = jnp.zeros((cout,), jnp.float32)
    r_mean = jnp.zeros((cout,), jnp.float32)
    r_var = jnp.ones((cout,), jnp.float32)
    eps = 1e-5
    scale = gamma / jnp.sqrt(r_var + eps)
    bias = beta + scale * (conv_b - r_mean)
    return {"w": w, "scale": scale, "bias": bias}


def make_inception_params(key, in_channels, out_1x1, red_3x3, out_3x3,
                          red_5x5, out_5x5, out_1x1pool):
    ks = jax.random.split(key, 6)
    return {
        "b1": make_con_block_params(ks[0], in_channels, out_1x1, 1),
        "b2a": make_con_block_params(ks[1], in_channels, red_3x3, 1),
        "b2b": make_con_block_params(ks[2], red_3x3, out_3x3, 3),
        "b3a": make_con_block_params(ks[3], in_channels, red_5x5, 1),
        "b3b": make_con_block_params(ks[4], red_5x5, out_5x5, 5),
        "b4": make_con_block_params(ks[5], in_channels, out_1x1pool, 1),
    }


def _fold_1x1(p):
    # (1,1,Cin,Cout) -> (Cout, Cin), BN scale folded into the weights.
    w = (p["w"][0, 0] * p["scale"][None, :]).T
    return w, p["bias"][:, None]


def _fold_kxk(p):
    # (K,K,Cin,Cout) -> (Cout, K*K*Cin) tap-major (dy, dx, ci), BN scale folded.
    K, _, cin, cout = p["w"].shape
    w = p["w"] * p["scale"][None, None, None, :]
    w = jnp.transpose(w, (3, 0, 1, 2)).reshape(cout, K * K * cin)
    return w, p["bias"][:, None]


def fold_inception_params(params):
    """Fold BN into weights/bias and merge the three x-consuming 1x1 convs."""
    w_b1, b_b1 = _fold_1x1(params["b1"])
    w_2a, b_2a = _fold_1x1(params["b2a"])
    w_3a, b_3a = _fold_1x1(params["b3a"])
    w2, b2 = _fold_kxk(params["b2b"])
    w3, b3 = _fold_kxk(params["b3b"])
    w4, b4 = _fold_1x1(params["b4"])
    return {
        "w1": jnp.concatenate([w_b1, w_2a, w_3a], axis=0),
        "b1": jnp.concatenate([b_b1, b_2a, b_3a], axis=0),
        "w2": w2, "b2": b2, "w3": w3, "b3": b3, "w4": w4, "b4": b4,
    }


# ----------------------------------------------------------------------------
# Pure-JAX reference (for the correctness check)
# ----------------------------------------------------------------------------
def _ref_cbr(x, p):
    y = jax.lax.conv_general_dilated(
        x, p["w"], window_strides=(1, 1), padding="SAME",
        dimension_numbers=("NHWC", "HWIO", "NHWC"))
    return jnp.maximum(y * p["scale"] + p["bias"], 0.0)


def _ref_maxpool3(x):
    return jax.lax.reduce_window(x, -jnp.inf, jax.lax.max,
                                 (1, 3, 3, 1), (1, 1, 1, 1), "SAME")


def inception_reference(x_nchw, params):
    x = jnp.transpose(x_nchw, (0, 2, 3, 1))
    b1 = _ref_cbr(x, params["b1"])
    b2 = _ref_cbr(_ref_cbr(x, params["b2a"]), params["b2b"])
    b3 = _ref_cbr(_ref_cbr(x, params["b3a"]), params["b3b"])
    b4 = _ref_cbr(_ref_maxpool3(x), params["b4"])
    out = jnp.concatenate([b1, b2, b3, b4], axis=-1)
    return jnp.transpose(out, (0, 3, 1, 2))


if __name__ == "__main__":
    key = jax.random.PRNGKey(0)
    k_x, k_p = jax.random.split(key)

    # Small shapes consistent with Inception_block(4, 8, 4, 8, 4, 8, 8).
    N, C, H, W = 2, 4, 16, 16
    x = jax.random.normal(k_x, (N, C, H, W), jnp.float32)
    params = make_inception_params(k_p, in_channels=C, out_1x1=8, red_3x3=4,
                                   out_3x3=8, red_5x5=4, out_5x5=8,
                                   out_1x1pool=8)
    kparams = fold_inception_params(params)

    out = inception_block_forward(x, kparams)
    out = jax.block_until_ready(out)
    assert out.shape == (N, 8 + 8 + 8 + 8, H, W), out.shape

    ref = jax.block_until_ready(inception_reference(x, params))
    assert jnp.allclose(out, ref, rtol=1e-4, atol=1e-4), \
        float(jnp.max(jnp.abs(out - ref)))

    print("KERNEL_OK")
</pallas_src>

<mosaic_0001>
module attributes {stable_mosaic.version = 11 : i64} {
  func.func @_inception_kernel(%arg0: i32, %arg1: memref<1x4x256xf32, #tpu.memory_space<vmem>>, %arg2: memref<25x256xf32, #tpu.memory_space<vmem>>, %arg3: memref<16x4xf32, #tpu.memory_space<vmem>>, %arg4: memref<16x1xf32, #tpu.memory_space<vmem>>, %arg5: memref<8x36xf32, #tpu.memory_space<vmem>>, %arg6: memref<8x1xf32, #tpu.memory_space<vmem>>, %arg7: memref<8x100xf32, #tpu.memory_space<vmem>>, %arg8: memref<8x1xf32, #tpu.memory_space<vmem>>, %arg9: memref<8x4xf32, #tpu.memory_space<vmem>>, %arg10: memref<8x1xf32, #tpu.memory_space<vmem>>, %arg11: memref<1x32x256xf32, #tpu.memory_space<vmem>>) attributes {dimension_semantics = [#tpu.dimension_semantics<parallel>], iteration_bounds = array<i64: 2>, scalar_prefetch = 0 : i64, scratch_operands = 0 : i64, tpu.core_type = #tpu.core_type<tc>, window_params = [{transform_indices = @transform_0, window_bounds = array<i64: 1, 4, 256>}, {pipeline_mode = #tpu.pipeline_mode<synchronous>, transform_indices = @transform_1, window_bounds = array<i64: 25, 256>}, {pipeline_mode = #tpu.pipeline_mode<synchronous>, transform_indices = @transform_2, window_bounds = array<i64: 16, 4>}, {pipeline_mode = #tpu.pipeline_mode<synchronous>, transform_indices = @transform_3, window_bounds = array<i64: 16, 1>}, {pipeline_mode = #tpu.pipeline_mode<synchronous>, transform_indices = @transform_4, window_bounds = array<i64: 8, 36>}, {pipeline_mode = #tpu.pipeline_mode<synchronous>, transform_indices = @transform_5, window_bounds = array<i64: 8, 1>}, {pipeline_mode = #tpu.pipeline_mode<synchronous>, transform_indices = @transform_6, window_bounds = array<i64: 8, 100>}, {pipeline_mode = #tpu.pipeline_mode<synchronous>, transform_indices = @transform_7, window_bounds = array<i64: 8, 1>}, {pipeline_mode = #tpu.pipeline_mode<synchronous>, transform_indices = @transform_8, window_bounds = array<i64: 8, 4>}, {pipeline_mode = #tpu.pipeline_mode<synchronous>, transform_indices = @transform_9, window_bounds = array<i64: 8, 1>}, {transform_indices = @transform_10, window_bounds = array<i64: 1, 32, 256>}]} {
    %c0 = arith.constant 0 : index
    %c0_0 = arith.constant 0 : index
    %c0_1 = arith.constant 0 : index
    %0 = vector.load %arg1[%c0, %c0_0, %c0_1] : memref<1x4x256xf32, #tpu.memory_space<vmem>>, vector<1x4x256xf32>
    %1 = vector.shape_cast %0 : vector<1x4x256xf32> to vector<4x256xf32>
    %c0_2 = arith.constant 0 : index
    %c0_3 = arith.constant 0 : index
    %2 = vector.load %arg3[%c0_2, %c0_3] : memref<16x4xf32, #tpu.memory_space<vmem>>, vector<16x4xf32>
    %cst = arith.constant dense<0.000000e+00> : vector<16x256xf32>
    %3 = tpu.matmul %2, %1, %cst {dimension_numbers = #tpu.dot_dimension_numbers<[1], [0], [0], [1], [0, 0, 1, 1], [], []>} : vector<16x4xf32>, vector<4x256xf32>, vector<16x256xf32> -> vector<16x256xf32>
    %c0_4 = arith.constant 0 : index
    %c0_5 = arith.constant 0 : index
    %4 = vector.load %arg4[%c0_4, %c0_5] : memref<16x1xf32, #tpu.memory_space<vmem>>, vector<16x1xf32>
    %5 = vector.broadcast %4 : vector<16x1xf32> to vector<16x256xf32>
    %6 = arith.addf %3, %5 : vector<16x256xf32>
    %cst_6 = arith.constant 0.000000e+00 : f32
    %7 = vector.broadcast %cst_6 : f32 to vector<16x256xf32>
    %8 = arith.maximumf %6, %7 : vector<16x256xf32>
    %9 = vector.extract_strided_slice %8 {offsets = [0, 0], sizes = [8, 256], strides = [1, 1]} : vector<16x256xf32> to vector<8x256xf32>
    %c0_7 = arith.constant 0 : index
    %c0_8 = arith.constant 0 : index
    %c0_9 = arith.constant 0 : index
    %10 = vector.load %arg11[%c0_7, %c0_8, %c0_9] : memref<1x32x256xf32, #tpu.memory_space<vmem>>, vector<1x8x256xf32>
    %11 = vector.shape_cast %10 : vector<1x8x256xf32> to vector<8x256xf32>
    %12 = vector.shape_cast %9 : vector<8x256xf32> to vector<1x8x256xf32>
    tpu.vector_store %arg11[%c0_7, %c0_8, %c0_9], %12 {strides = array<i32>} : memref<1x32x256xf32, #tpu.memory_space<vmem>>, vector<1x8x256xf32>,
    %13 = vector.extract_strided_slice %8 {offsets = [8, 0], sizes = [4, 256], strides = [1, 1]} : vector<16x256xf32> to vector<4x256xf32>
    %c0_10 = arith.constant 0 : index
    %c0_11 = arith.constant 0 : index
    %14 = vector.load %arg5[%c0_10, %c0_11] : memref<8x36xf32, #tpu.memory_space<vmem>>, vector<8x36xf32>
    %c0_12 = arith.constant 0 : index
    %c0_13 = arith.constant 0 : index
    %15 = vector.load %arg6[%c0_12, %c0_13] : memref<8x1xf32, #tpu.memory_space<vmem>>, vector<8x1xf32>
    %cst_14 = arith.constant 0.000000e+00 : f32
    %16 = vector.broadcast %cst_14 : f32 to vector<8x256xf32>
    %17 = vector.extract_strided_slice %14 {offsets = [0, 0], sizes = [8, 4], strides = [1, 1]} : vector<8x36xf32> to vector<8x4xf32>
    %18 = vector.extract_strided_slice %13 {offsets = [0, 239], sizes = [4, 17], strides = [1, 1]} : vector<4x256xf32> to vector<4x17xf32>
    %19 = vector.extract_strided_slice %13 {offsets = [0, 0], sizes = [4, 239], strides = [1, 1]} : vector<4x256xf32> to vector<4x239xf32>
    %20 = tpu.concatenate %18, %19 in 1 : vector<4x17xf32>, vector<4x239xf32> -> vector<4x256xf32>
    %c6 = arith.constant 6 : index
    %c0_15 = arith.constant 0 : index
    %21 = vector.load %arg2[%c6, %c0_15] : memref<25x256xf32, #tpu.memory_space<vmem>>, vector<1x256xf32>
    %cst_16 = arith.constant 0.000000e+00 : f32
    %22 = vector.broadcast %cst_16 : f32 to vector<1x256xf32>
    %23 = arith.cmpf one, %21, %22 : vector<1x256xf32>
    %cst_17 = arith.constant 0.000000e+00 : f32
    %24 = vector.shape_cast %23 : vector<1x256xi1> to vector<1x256xi1>
    %25 = vector.broadcast %24 : vector<1x256xi1> to vector<4x256xi1>
    %26 = vector.broadcast %cst_17 : f32 to vector<4x256xf32>
    %27 = arith.select %25, %20, %26 : vector<4x256xi1>, vector<4x256xf32>
    %cst_18 = arith.constant dense<0.000000e+00> : vector<8x256xf32>
    %28 = tpu.matmul %17, %27, %cst_18 {dimension_numbers = #tpu.dot_dimension_numbers<[1], [0], [0], [1], [0, 0, 1, 1], [], []>} : vector<8x4xf32>, vector<4x256xf32>, vector<8x256xf32> -> vector<8x256xf32>
    %29 = arith.addf %16, %28 : vector<8x256xf32>
    %30 = vector.extract_strided_slice %14 {offsets = [0, 4], sizes = [8, 4], strides = [1, 1]} : vector<8x36xf32> to vector<8x4xf32>
    %31 = vector.extract_strided_slice %13 {offsets = [0, 240], sizes = [4, 16], strides = [1, 1]} : vector<4x256xf32> to vector<4x16xf32>
    %32 = vector.extract_strided_slice %13 {offsets = [0, 0], sizes = [4, 240], strides = [1, 1]} : vector<4x256xf32> to vector<4x240xf32>
    %33 = tpu.concatenate %31, %32 in 1 : vector<4x16xf32>, vector<4x240xf32> -> vector<4x256xf32>
    %c7 = arith.constant 7 : index
    %c0_19 = arith.constant 0 : index
    %34 = vector.load %arg2[%c7, %c0_19] : memref<25x256xf32, #tpu.memory_space<vmem>>, vector<1x256xf32>
    %cst_20 = arith.constant 0.000000e+00 : f32
    %35 = vector.broadcast %cst_20 : f32 to vector<1x256xf32>
    %36 = arith.cmpf one, %34, %35 : vector<1x256xf32>
    %cst_21 = arith.constant 0.000000e+00 : f32
    %37 = vector.shape_cast %36 : vector<1x256xi1> to vector<1x256xi1>
    %38 = vector.broadcast %37 : vector<1x256xi1> to vector<4x256xi1>
    %39 = vector.broadcast %cst_21 : f32 to vector<4x256xf32>
    %40 = arith.select %38, %33, %39 : vector<4x256xi1>, vector<4x256xf32>
    %cst_22 = arith.constant dense<0.000000e+00> : vector<8x256xf32>
    %41 = tpu.matmul %30, %40, %cst_22 {dimension_numbers = #tpu.dot_dimension_numbers<[1], [0], [0], [1], [0, 0, 1, 1], [], []>} : vector<8x4xf32>, vector<4x256xf32>, vector<8x256xf32> -> vector<8x256xf32>
    %42 = arith.addf %29, %41 : vector<8x256xf32>
    %43 = vector.extract_strided_slice %14 {offsets = [0, 8], sizes = [8, 4], strides = [1, 1]} : vector<8x36xf32> to vector<8x4xf32>
    %44 = vector.extract_strided_slice %13 {offsets = [0, 241], sizes = [4, 15], strides = [1, 1]} : vector<4x256xf32> to vector<4x15xf32>
    %45 = vector.extract_strided_slice %13 {offsets = [0, 0], sizes = [4, 241], strides = [1, 1]} : vector<4x256xf32> to vector<4x241xf32>
    %46 = tpu.concatenate %44, %45 in 1 : vector<4x15xf32>, vector<4x241xf32> -> vector<4x256xf32>
    %c8 = arith.constant 8 : index
    %c0_23 = arith.constant 0 : index
    %47 = vector.load %arg2[%c8, %c0_23] : memref<25x256xf32, #tpu.memory_space<vmem>>, vector<1x256xf32>
    %cst_24 = arith.constant 0.000000e+00 : f32
    %48 = vector.broadcast %cst_24 : f32 to vector<1x256xf32>
    %49 = arith.cmpf one, %47, %48 : vector<1x256xf32>
    %cst_25 = arith.constant 0.000000e+00 : f32
    %50 = vector.shape_cast %49 : vector<1x256xi1> to vector<1x256xi1>
    %51 = vector.broadcast %50 : vector<1x256xi1> to vector<4x256xi1>
    %52 = vector.broadcast %cst_25 : f32 to vector<4x256xf32>
    %53 = arith.select %51, %46, %52 : vector<4x256xi1>, vector<4x256xf32>
    %cst_26 = arith.constant dense<0.000000e+00> : vector<8x256xf32>
    %54 = tpu.matmul %43, %53, %cst_26 {dimension_numbers = #tpu.dot_dimension_numbers<[1], [0], [0], [1], [0, 0, 1, 1], [], []>} : vector<8x4xf32>, vector<4x256xf32>, vector<8x256xf32> -> vector<8x256xf32>
    %55 = arith.addf %42, %54 : vector<8x256xf32>
    %56 = vector.extract_strided_slice %14 {offsets = [0, 12], sizes = [8, 4], strides = [1, 1]} : vector<8x36xf32> to vector<8x4xf32>
    %57 = vector.extract_strided_slice %13 {offsets = [0, 255], sizes = [4, 1], strides = [1, 1]} : vector<4x256xf32> to vector<4x1xf32>
    %58 = vector.extract_strided_slice %13 {offsets = [0, 0], sizes = [4, 255], strides = [1, 1]} : vector<4x256xf32> to vector<4x255xf32>
    %59 = tpu.concatenate %57, %58 in 1 : vector<4x1xf32>, vector<4x255xf32> -> vector<4x256xf32>
    %c11 = arith.constant 11 : index
    %c0_27 = arith.constant 0 : index
    %60 = vector.load %arg2[%c11, %c0_27] : memref<25x256xf32, #tpu.memory_space<vmem>>, vector<1x256xf32>
    %cst_28 = arith.constant 0.000000e+00 : f32
    %61 = vector.broadcast %cst_28 : f32 to vector<1x256xf32>
    %62 = arith.cmpf one, %60, %61 : vector<1x256xf32>
    %cst_29 = arith.constant 0.000000e+00 : f32
    %63 = vector.shape_cast %62 : vector<1x256xi1> to vector<1x256xi1>
    %64 = vector.broadcast %63 : vector<1x256xi1> to vector<4x256xi1>
    %65 = vector.broadcast %cst_29 : f32 to vector<4x256xf32>
    %66 = arith.select %64, %59, %65 : vector<4x256xi1>, vector<4x256xf32>
    %cst_30 = arith.constant dense<0.000000e+00> : vector<8x256xf32>
    %67 = tpu.matmul %56, %66, %cst_30 {dimension_numbers = #tpu.dot_dimension_numbers<[1], [0], [0], [1], [0, 0, 1, 1], [], []>} : vector<8x4xf32>, vector<4x256xf32>, vector<8x256xf32> -> vector<8x256xf32>
    %68 = arith.addf %55, %67 : vector<8x256xf32>
    %69 = vector.extract_strided_slice %14 {offsets = [0, 16], sizes = [8, 4], strides = [1, 1]} : vector<8x36xf32> to vector<8x4xf32>
    %cst_31 = arith.constant dense<0.000000e+00> : vector<8x256xf32>
    %70 = tpu.matmul %69, %13, %cst_31 {dimension_numbers = #tpu.dot_dimension_numbers<[1], [0], [0], [1], [0, 0, 1, 1], [], []>} : vector<8x4xf32>, vector<4x256xf32>, vector<8x256xf32> -> vector<8x256xf32>
    %71 = arith.addf %68, %70 : vector<8x256xf32>
    %72 = vector.extract_strided_slice %14 {offsets = [0, 20], sizes = [8, 4], strides = [1, 1]} : vector<8x36xf32> to vector<8x4xf32>
    %73 = vector.extract_strided_slice %13 {offsets = [0, 1], sizes = [4, 255], strides = [1, 1]} : vector<4x256xf32> to vector<4x255xf32>
    %74 = vector.extract_strided_slice %13 {offsets = [0, 0], sizes = [4, 1], strides = [1, 1]} : vector<4x256xf32> to vector<4x1xf32>
    %75 = tpu.concatenate %73, %74 in 1 : vector<4x255xf32>, vector<4x1xf32> -> vector<4x256xf32>
    %c13 = arith.constant 13 : index
    %c0_32 = arith.constant 0 : index
    %76 = vector.load %arg2[%c13, %c0_32] : memref<25x256xf32, #tpu.memory_space<vmem>>, vector<1x256xf32>
    %cst_33 = arith.constant 0.000000e+00 : f32
    %77 = vector.broadcast %cst_33 : f32 to vector<1x256xf32>
    %78 = arith.cmpf one, %76, %77 : vector<1x256xf32>
    %cst_34 = arith.constant 0.000000e+00 : f32
    %79 = vector.shape_cast %78 : vector<1x256xi1> to vector<1x256xi1>
    %80 = vector.broadcast %79 : vector<1x256xi1> to vector<4x256xi1>
    %81 = vector.broadcast %cst_34 : f32 to vector<4x256xf32>
    %82 = arith.select %80, %75, %81 : vector<4x256xi1>, vector<4x256xf32>
    %cst_35 = arith.constant dense<0.000000e+00> : vector<8x256xf32>
    %83 = tpu.matmul %72, %82, %cst_35 {dimension_numbers = #tpu.dot_dimension_numbers<[1], [0], [0], [1], [0, 0, 1, 1], [], []>} : vector<8x4xf32>, vector<4x256xf32>, vector<8x256xf32> -> vector<8x256xf32>
    %84 = arith.addf %71, %83 : vector<8x256xf32>
    %85 = vector.extract_strided_slice %14 {offsets = [0, 24], sizes = [8, 4], strides = [1, 1]} : vector<8x36xf32> to vector<8x4xf32>
    %86 = vector.extract_strided_slice %13 {offsets = [0, 15], sizes = [4, 241], strides = [1, 1]} : vector<4x256xf32> to vector<4x241xf32>
    %87 = vector.extract_strided_slice %13 {offsets = [0, 0], sizes = [4, 15], strides = [1, 1]} : vector<4x256xf32> to vector<4x15xf32>
    %88 = tpu.concatenate %86, %87 in 1 : vector<4x241xf32>, vector<4x15xf32> -> vector<4x256xf32>
    %c16 = arith.constant 16 : index
    %c0_36 = arith.constant 0 : index
    %89 = vector.load %arg2[%c16, %c0_36] : memref<25x256xf32, #tpu.memory_space<vmem>>, vector<1x256xf32>
    %cst_37 = arith.constant 0.000000e+00 : f32
    %90 = vector.broadcast %cst_37 : f32 to vector<1x256xf32>
    %91 = arith.cmpf one, %89, %90 : vector<1x256xf32>
    %cst_38 = arith.constant 0.000000e+00 : f32
    %92 = vector.shape_cast %91 : vector<1x256xi1> to vector<1x256xi1>
    %93 = vector.broadcast %92 : vector<1x256xi1> to vector<4x256xi1>
    %94 = vector.broadcast %cst_38 : f32 to vector<4x256xf32>
    %95 = arith.select %93, %88, %94 : vector<4x256xi1>, vector<4x256xf32>
    %cst_39 = arith.constant dense<0.000000e+00> : vector<8x256xf32>
    %96 = tpu.matmul %85, %95, %cst_39 {dimension_numbers = #tpu.dot_dimension_numbers<[1], [0], [0], [1], [0, 0, 1, 1], [], []>} : vector<8x4xf32>, vector<4x256xf32>, vector<8x256xf32> -> vector<8x256xf32>
    %97 = arith.addf %84, %96 : vector<8x256xf32>
    %98 = vector.extract_strided_slice %14 {offsets = [0, 28], sizes = [8, 4], strides = [1, 1]} : vector<8x36xf32> to vector<8x4xf32>
    %99 = vector.extract_strided_slice %13 {offsets = [0, 16], sizes = [4, 240], strides = [1, 1]} : vector<4x256xf32> to vector<4x240xf32>
    %100 = vector.extract_strided_slice %13 {offsets = [0, 0], sizes = [4, 16], strides = [1, 1]} : vector<4x256xf32> to vector<4x16xf32>
    %101 = tpu.concatenate %99, %100 in 1 : vector<4x240xf32>, vector<4x16xf32> -> vector<4x256xf32>
    %c17 = arith.constant 17 : index
    %c0_40 = arith.constant 0 : index
    %102 = vector.load %arg2[%c17, %c0_40] : memref<25x256xf32, #tpu.memory_space<vmem>>, vector<1x256xf32>
    %cst_41 = arith.constant 0.000000e+00 : f32
    %103 = vector.broadcast %cst_41 : f32 to vector<1x256xf32>
    %104 = arith.cmpf one, %102, %103 : vector<1x256xf32>
    %cst_42 = arith.constant 0.000000e+00 : f32
    %105 = vector.shape_cast %104 : vector<1x256xi1> to vector<1x256xi1>
    %106 = vector.broadcast %105 : vector<1x256xi1> to vector<4x256xi1>
    %107 = vector.broadcast %cst_42 : f32 to vector<4x256xf32>
    %108 = arith.select %106, %101, %107 : vector<4x256xi1>, vector<4x256xf32>
    %cst_43 = arith.constant dense<0.000000e+00> : vector<8x256xf32>
    %109 = tpu.matmul %98, %108, %cst_43 {dimension_numbers = #tpu.dot_dimension_numbers<[1], [0], [0], [1], [0, 0, 1, 1], [], []>} : vector<8x4xf32>, vector<4x256xf32>, vector<8x256xf32> -> vector<8x256xf32>
    %110 = arith.addf %97, %109 : vector<8x256xf32>
    %111 = vector.extract_strided_slice %14 {offsets = [0, 32], sizes = [8, 4], strides = [1, 1]} : vector<8x36xf32> to vector<8x4xf32>
    %112 = vector.extract_strided_slice %13 {offsets = [0, 17], sizes = [4, 239], strides = [1, 1]} : vector<4x256xf32> to vector<4x239xf32>
    %113 = vector.extract_strided_slice %13 {offsets = [0, 0], sizes = [4, 17], strides = [1, 1]} : vector<4x256xf32> to vector<4x17xf32>
    %114 = tpu.concatenate %112, %113 in 1 : vector<4x239xf32>, vector<4x17xf32> -> vector<4x256xf32>
    %c18 = arith.constant 18 : index
    %c0_44 = arith.constant 0 : index
    %115 = vector.load %arg2[%c18, %c0_44] : memref<25x256xf32, #tpu.memory_space<vmem>>, vector<1x256xf32>
    %cst_45 = arith.constant 0.000000e+00 : f32
    %116 = vector.broadcast %cst_45 : f32 to vector<1x256xf32>
    %117 = arith.cmpf one, %115, %116 : vector<1x256xf32>
    %cst_46 = arith.constant 0.000000e+00 : f32
    %118 = vector.shape_cast %117 : vector<1x256xi1> to vector<1x256xi1>
    %119 = vector.broadcast %118 : vector<1x256xi1> to vector<4x256xi1>
    %120 = vector.broadcast %cst_46 : f32 to vector<4x256xf32>
    %121 = arith.select %119, %114, %120 : vector<4x256xi1>, vector<4x256xf32>
    %cst_47 = arith.constant dense<0.000000e+00> : vector<8x256xf32>
    %122 = tpu.matmul %111, %121, %cst_47 {dimension_numbers = #tpu.dot_dimension_numbers<[1], [0], [0], [1], [0, 0, 1, 1], [], []>} : vector<8x4xf32>, vector<4x256xf32>, vector<8x256xf32> -> vector<8x256xf32>
    %123 = arith.addf %110, %122 : vector<8x256xf32>
    %124 = vector.broadcast %15 : vector<8x1xf32> to vector<8x256xf32>
    %125 = arith.addf %123, %124 : vector<8x256xf32>
    %cst_48 = arith.constant 0.000000e+00 : f32
    %126 = vector.broadcast %cst_48 : f32 to vector<8x256xf32>
    %127 = arith.maximumf %125, %126 : vector<8x256xf32>
    %c0_49 = arith.constant 0 : index
    %c8_50 = arith.constant 8 : index
    %c0_51 = arith.constant 0 : index
    %128 = vector.load %arg11[%c0_49, %c8_50, %c0_51] : memref<1x32x256xf32, #tpu.memory_space<vmem>>, vector<1x8x256xf32>
    %129 = vector.shape_cast %128 : vector<1x8x256xf32> to vector<8x256xf32>
    %130 = vector.shape_cast %127 : vector<8x256xf32> to vector<1x8x256xf32>
    tpu.vector_store %arg11[%c0_49, %c8_50, %c0_51], %130 {strides = array<i32>} : memref<1x32x256xf32, #tpu.memory_space<vmem>>, vector<1x8x256xf32>,
    %131 = vector.extract_strided_slice %8 {offsets = [12, 0], sizes = [4, 256], strides = [1, 1]} : vector<16x256xf32> to vector<4x256xf32>
    %c0_52 = arith.constant 0 : index
    %c0_53 = arith.constant 0 : index
    %132 = vector.load %arg7[%c0_52, %c0_53] : memref<8x100xf32, #tpu.memory_space<vmem>>, vector<8x100xf32>
    %c0_54 = arith.constant 0 : index
    %c0_55 = arith.constant 0 : index
    %133 = vector.load %arg8[%c0_54, %c0_55] : memref<8x1xf32, #tpu.memory_space<vmem>>, vector<8x1xf32>
    %cst_56 = arith.constant 0.000000e+00 : f32
    %134 = vector.broadcast %cst_56 : f32 to vector<8x256xf32>
    %135 = vector.extract_strided_slice %132 {offsets = [0, 0], sizes = [8, 4], strides = [1, 1]} : vector<8x100xf32> to vector<8x4xf32>
    %136 = vector.extract_strided_slice %131 {offsets = [0, 222], sizes = [4, 34], strides = [1, 1]} : vector<4x256xf32> to vector<4x34xf32>
    %137 = vector.extract_strided_slice %131 {offsets = [0, 0], sizes = [4, 222], strides = [1, 1]} : vector<4x256xf32> to vector<4x222xf32>
    %138 = tpu.concatenate %136, %137 in 1 : vector<4x34xf32>, vector<4x222xf32> -> vector<4x256xf32>
    %c0_57 = arith.constant 0 : index
    %c0_58 = arith.constant 0 : index
    %139 = vector.load %arg2[%c0_57, %c0_58] : memref<25x256xf32, #tpu.memory_space<vmem>>, vector<1x256xf32>
    %cst_59 = arith.constant 0.000000e+00 : f32
    %140 = vector.broadcast %cst_59 : f32 to vector<1x256xf32>
    %141 = arith.cmpf one, %139, %140 : vector<1x256xf32>
    %cst_60 = arith.constant 0.000000e+00 : f32
    %142 = vector.shape_cast %141 : vector<1x256xi1> to vector<1x256xi1>
    %143 = vector.broadcast %142 : vector<1x256xi1> to vector<4x256xi1>
    %144 = vector.broadcast %cst_60 : f32 to vector<4x256xf32>
    %145 = arith.select %143, %138, %144 : vector<4x256xi1>, vector<4x256xf32>
    %cst_61 = arith.constant dense<0.000000e+00> : vector<8x256xf32>
    %146 = tpu.matmul %135, %145, %cst_61 {dimension_numbers = #tpu.dot_dimension_numbers<[1], [0], [0], [1], [0, 0, 1, 1], [], []>} : vector<8x4xf32>, vector<4x256xf32>, vector<8x256xf32> -> vector<8x256xf32>
    %147 = arith.addf %134, %146 : vector<8x256xf32>
    %148 = vector.extract_strided_slice %132 {offsets = [0, 4], sizes = [8, 4], strides = [1, 1]} : vector<8x100xf32> to vector<8x4xf32>
    %149 = vector.extract_strided_slice %131 {offsets = [0, 223], sizes = [4, 33], strides = [1, 1]} : vector<4x256xf32> to vector<4x33xf32>
    %150 = vector.extract_strided_slice %131 {offsets = [0, 0], sizes = [4, 223], strides = [1, 1]} : vector<4x256xf32> to vector<4x223xf32>
    %151 = tpu.concatenate %149, %150 in 1 : vector<4x33xf32>, vector<4x223xf32> -> vector<4x256xf32>
    %c1 = arith.constant 1 : index
    %c0_62 = arith.constant 0 : index
    %152 = vector.load %arg2[%c1, %c0_62] : memref<25x256xf32, #tpu.memory_space<vmem>>, vector<1x256xf32>
    %cst_63 = arith.constant 0.000000e+00 : f32
    %153 = vector.broadcast %cst_63 : f32 to vector<1x256xf32>
    %154 = arith.cmpf one, %152, %153 : vector<1x256xf32>
    %cst_64 = arith.constant 0.000000e+00 : f32
    %155 = vector.shape_cast %154 : vector<1x256xi1> to vector<1x256xi1>
    %156 = vector.broadcast %155 : vector<1x256xi1> to vector<4x256xi1>
    %157 = vector.broadcast %cst_64 : f32 to vector<4x256xf32>
    %158 = arith.select %156, %151, %157 : vector<4x256xi1>, vector<4x256xf32>
    %cst_65 = arith.constant dense<0.000000e+00> : vector<8x256xf32>
    %159 = tpu.matmul %148, %158, %cst_65 {dimension_numbers = #tpu.dot_dimension_numbers<[1], [0], [0], [1], [0, 0, 1, 1], [], []>} : vector<8x4xf32>, vector<4x256xf32>, vector<8x256xf32> -> vector<8x256xf32>
    %160 = arith.addf %147, %159 : vector<8x256xf32>
    %161 = vector.extract_strided_slice %132 {offsets = [0, 8], sizes = [8, 4], strides = [1, 1]} : vector<8x100xf32> to vector<8x4xf32>
    %162 = vector.extract_strided_slice %131 {offsets = [0, 224], sizes = [4, 32], strides = [1, 1]} : vector<4x256xf32> to vector<4x32xf32>
    %163 = vector.extract_strided_slice %131 {offsets = [0, 0], sizes = [4, 224], strides = [1, 1]} : vector<4x256xf32> to vector<4x224xf32>
    %164 = tpu.concatenate %162, %163 in 1 : vector<4x32xf32>, vector<4x224xf32> -> vector<4x256xf32>
    %c2 = arith.constant 2 : index
    %c0_66 = arith.constant 0 : index
    %165 = vector.load %arg2[%c2, %c0_66] : memref<25x256xf32, #tpu.memory_space<vmem>>, vector<1x256xf32>
    %cst_67 = arith.constant 0.000000e+00 : f32
    %166 = vector.broadcast %cst_67 : f32 to vector<1x256xf32>
    %167 = arith.cmpf one, %165, %166 : vector<1x256xf32>
    %cst_68 = arith.constant 0.000000e+00 : f32
    %168 = vector.shape_cast %167 : vector<1x256xi1> to vector<1x256xi1>
    %169 = vector.broadcast %168 : vector<1x256xi1> to vector<4x256xi1>
    %170 = vector.broadcast %cst_68 : f32 to vector<4x256xf32>
    %171 = arith.select %169, %164, %170 : vector<4x256xi1>, vector<4x256xf32>
    %cst_69 = arith.constant dense<0.000000e+00> : vector<8x256xf32>
    %172 = tpu.matmul %161, %171, %cst_69 {dimension_numbers = #tpu.dot_dimension_numbers<[1], [0], [0], [1], [0, 0, 1, 1], [], []>} : vector<8x4xf32>, vector<4x256xf32>, vector<8x256xf32> -> vector<8x256xf32>
    %173 = arith.addf %160, %172 : vector<8x256xf32>
    %174 = vector.extract_strided_slice %132 {offsets = [0, 12], sizes = [8, 4], strides = [1, 1]} : vector<8x100xf32> to vector<8x4xf32>
    %175 = vector.extract_strided_slice %131 {offsets = [0, 225], sizes = [4, 31], strides = [1, 1]} : vector<4x256xf32> to vector<4x31xf32>
    %176 = vector.extract_strided_slice %131 {offsets = [0, 0], sizes = [4, 225], strides = [1, 1]} : vector<4x256xf32> to vector<4x225xf32>
    %177 = tpu.concatenate %175, %176 in 1 : vector<4x31xf32>, vector<4x225xf32> -> vector<4x256xf32>
    %c3 = arith.constant 3 : index
    %c0_70 = arith.constant 0 : index
    %178 = vector.load %arg2[%c3, %c0_70] : memref<25x256xf32, #tpu.memory_space<vmem>>, vector<1x256xf32>
    %cst_71 = arith.constant 0.000000e+00 : f32
    %179 = vector.broadcast %cst_71 : f32 to vector<1x256xf32>
    %180 = arith.cmpf one, %178, %179 : vector<1x256xf32>
    %cst_72 = arith.constant 0.000000e+00 : f32
    %181 = vector.shape_cast %180 : vector<1x256xi1> to vector<1x256xi1>
    %182 = vector.broadcast %181 : vector<1x256xi1> to vector<4x256xi1>
    %183 = vector.broadcast %cst_72 : f32 to vector<4x256xf32>
    %184 = arith.select %182, %177, %183 : vector<4x256xi1>, vector<4x256xf32>
    %cst_73 = arith.constant dense<0.000000e+00> : vector<8x256xf32>
    %185 = tpu.matmul %174, %184, %cst_73 {dimension_numbers = #tpu.dot_dimension_numbers<[1], [0], [0], [1], [0, 0, 1, 1], [], []>} : vector<8x4xf32>, vector<4x256xf32>, vector<8x256xf32> -> vector<8x256xf32>
    %186 = arith.addf %173, %185 : vector<8x256xf32>
    %187 = vector.extract_strided_slice %132 {offsets = [0, 16], sizes = [8, 4], strides = [1, 1]} : vector<8x100xf32> to vector<8x4xf32>
    %188 = vector.extract_strided_slice %131 {offsets = [0, 226], sizes = [4, 30], strides = [1, 1]} : vector<4x256xf32> to vector<4x30xf32>
    %189 = vector.extract_strided_slice %131 {offsets = [0, 0], sizes = [4, 226], strides = [1, 1]} : vector<4x256xf32> to vector<4x226xf32>
    %190 = tpu.concatenate %188, %189 in 1 : vector<4x30xf32>, vector<4x226xf32> -> vector<4x256xf32>
    %c4 = arith.constant 4 : index
    %c0_74 = arith.constant 0 : index
    %191 = vector.load %arg2[%c4, %c0_74] : memref<25x256xf32, #tpu.memory_space<vmem>>, vector<1x256xf32>
    %cst_75 = arith.constant 0.000000e+00 : f32
    %192 = vector.broadcast %cst_75 : f32 to vector<1x256xf32>
    %193 = arith.cmpf one, %191, %192 : vector<1x256xf32>
    %cst_76 = arith.constant 0.000000e+00 : f32
    %194 = vector.shape_cast %193 : vector<1x256xi1> to vector<1x256xi1>
    %195 = vector.broadcast %194 : vector<1x256xi1> to vector<4x256xi1>
    %196 = vector.broadcast %cst_76 : f32 to vector<4x256xf32>
    %197 = arith.select %195, %190, %196 : vector<4x256xi1>, vector<4x256xf32>
    %cst_77 = arith.constant dense<0.000000e+00> : vector<8x256xf32>
    %198 = tpu.matmul %187, %197, %cst_77 {dimension_numbers = #tpu.dot_dimension_numbers<[1], [0], [0], [1], [0, 0, 1, 1], [], []>} : vector<8x4xf32>, vector<4x256xf32>, vector<8x256xf32> -> vector<8x256xf32>
    %199 = arith.addf %186, %198 : vector<8x256xf32>
    %200 = vector.extract_strided_slice %132 {offsets = [0, 20], sizes = [8, 4], strides = [1, 1]} : vector<8x100xf32> to vector<8x4xf32>
    %201 = vector.extract_strided_slice %131 {offsets = [0, 238], sizes = [4, 18], strides = [1, 1]} : vector<4x256xf32> to vector<4x18xf32>
    %202 = vector.extract_strided_slice %131 {offsets = [0, 0], sizes = [4, 238], strides = [1, 1]} : vector<4x256xf32> to vector<4x238xf32>
    %203 = tpu.concatenate %201, %202 in 1 : vector<4x18xf32>, vector<4x238xf32> -> vector<4x256xf32>
    %c5 = arith.constant 5 : index
    %c0_78 = arith.constant 0 : index
    %204 = vector.load %arg2[%c5, %c0_78] : memref<25x256xf32, #tpu.memory_space<vmem>>, vector<1x256xf32>
    %cst_79 = arith.constant 0.000000e+00 : f32
    %205 = vector.broadcast %cst_79 : f32 to vector<1x256xf32>
    %206 = arith.cmpf one, %204, %205 : vector<1x256xf32>
    %cst_80 = arith.constant 0.000000e+00 : f32
    %207 = vector.shape_cast %206 : vector<1x256xi1> to vector<1x256xi1>
    %208 = vector.broadcast %207 : vector<1x256xi1> to vector<4x256xi1>
    %209 = vector.broadcast %cst_80 : f32 to vector<4x256xf32>
    %210 = arith.select %208, %203, %209 : vector<4x256xi1>, vector<4x256xf32>
    %cst_81 = arith.constant dense<0.000000e+00> : vector<8x256xf32>
    %211 = tpu.matmul %200, %210, %cst_81 {dimension_numbers = #tpu.dot_dimension_numbers<[1], [0], [0], [1], [0, 0, 1, 1], [], []>} : vector<8x4xf32>, vector<4x256xf32>, vector<8x256xf32> -> vector<8x256xf32>
    %212 = arith.addf %199, %211 : vector<8x256xf32>
    %213 = vector.extract_strided_slice %132 {offsets = [0, 24], sizes = [8, 4], strides = [1, 1]} : vector<8x100xf32> to vector<8x4xf32>
    %214 = vector.extract_strided_slice %131 {offsets = [0, 239], sizes = [4, 17], strides = [1, 1]} : vector<4x256xf32> to vector<4x17xf32>
    %215 = vector.extract_strided_slice %131 {offsets = [0, 0], sizes = [4, 239], strides = [1, 1]} : vector<4x256xf32> to vector<4x239xf32>
    %216 = tpu.concatenate %214, %215 in 1 : vector<4x17xf32>, vector<4x239xf32> -> vector<4x256xf32>
    %c6_82 = arith.constant 6 : index
    %c0_83 = arith.constant 0 : index
    %217 = vector.load %arg2[%c6_82, %c0_83] : memref<25x256xf32, #tpu.memory_space<vmem>>, vector<1x256xf32>
    %cst_84 = arith.constant 0.000000e+00 : f32
    %218 = vector.broadcast %cst_84 : f32 to vector<1x256xf32>
    %219 = arith.cmpf one, %217, %218 : vector<1x256xf32>
    %cst_85 = arith.constant 0.000000e+00 : f32
    %220 = vector.shape_cast %219 : vector<1x256xi1> to vector<1x256xi1>
    %221 = vector.broadcast %220 : vector<1x256xi1> to vector<4x256xi1>
    %222 = vector.broadcast %cst_85 : f32 to vector<4x256xf32>
    %223 = arith.select %221, %216, %222 : vector<4x256xi1>, vector<4x256xf32>
    %cst_86 = arith.constant dense<0.000000e+00> : vector<8x256xf32>
    %224 = tpu.matmul %213, %223, %cst_86 {dimension_numbers = #tpu.dot_dimension_numbers<[1], [0], [0], [1], [0, 0, 1, 1], [], []>} : vector<8x4xf32>, vector<4x256xf32>, vector<8x256xf32> -> vector<8x256xf32>
    %225 = arith.addf %212, %224 : vector<8x256xf32>
    %226 = vector.extract_strided_slice %132 {offsets = [0, 28], sizes = [8, 4], strides = [1, 1]} : vector<8x100xf32> to vector<8x4xf32>
    %227 = vector.extract_strided_slice %131 {offsets = [0, 240], sizes = [4, 16], strides = [1, 1]} : vector<4x256xf32> to vector<4x16xf32>
    %228 = vector.extract_strided_slice %131 {offsets = [0, 0], sizes = [4, 240], strides = [1, 1]} : vector<4x256xf32> to vector<4x240xf32>
    %229 = tpu.concatenate %227, %228 in 1 : vector<4x16xf32>, vector<4x240xf32> -> vector<4x256xf32>
    %c7_87 = arith.constant 7 : index
    %c0_88 = arith.constant 0 : index
    %230 = vector.load %arg2[%c7_87, %c0_88] : memref<25x256xf32, #tpu.memory_space<vmem>>, vector<1x256xf32>
    %cst_89 = arith.constant 0.000000e+00 : f32
    %231 = vector.broadcast %cst_89 : f32 to vector<1x256xf32>
    %232 = arith.cmpf one, %230, %231 : vector<1x256xf32>
    %cst_90 = arith.constant 0.000000e+00 : f32
    %233 = vector.shape_cast %232 : vector<1x256xi1> to vector<1x256xi1>
    %234 = vector.broadcast %233 : vector<1x256xi1> to vector<4x256xi1>
    %235 = vector.broadcast %cst_90 : f32 to vector<4x256xf32>
    %236 = arith.select %234, %229, %235 : vector<4x256xi1>, vector<4x256xf32>
    %cst_91 = arith.constant dense<0.000000e+00> : vector<8x256xf32>
    %237 = tpu.matmul %226, %236, %cst_91 {dimension_numbers = #tpu.dot_dimension_numbers<[1], [0], [0], [1], [0, 0, 1, 1], [], []>} : vector<8x4xf32>, vector<4x256xf32>, vector<8x256xf32> -> vector<8x256xf32>
    %238 = arith.addf %225, %237 : vector<8x256xf32>
    %239 = vector.extract_strided_slice %132 {offsets = [0, 32], sizes = [8, 4], strides = [1, 1]} : vector<8x100xf32> to vector<8x4xf32>
    %240 = vector.extract_strided_slice %131 {offsets = [0, 241], sizes = [4, 15], strides = [1, 1]} : vector<4x256xf32> to vector<4x15xf32>
    %241 = vector.extract_strided_slice %131 {offsets = [0, 0], sizes = [4, 241], strides = [1, 1]} : vector<4x256xf32> to vector<4x241xf32>
    %242 = tpu.concatenate %240, %241 in 1 : vector<4x15xf32>, vector<4x241xf32> -> vector<4x256xf32>
    %c8_92 = arith.constant 8 : index
    %c0_93 = arith.constant 0 : index
    %243 = vector.load %arg2[%c8_92, %c0_93] : memref<25x256xf32, #tpu.memory_space<vmem>>, vector<1x256xf32>
    %cst_94 = arith.constant 0.000000e+00 : f32
    %244 = vector.broadcast %cst_94 : f32 to vector<1x256xf32>
    %245 = arith.cmpf one, %243, %244 : vector<1x256xf32>
    %cst_95 = arith.constant 0.000000e+00 : f32
    %246 = vector.shape_cast %245 : vector<1x256xi1> to vector<1x256xi1>
    %247 = vector.broadcast %246 : vector<1x256xi1> to vector<4x256xi1>
    %248 = vector.broadcast %cst_95 : f32 to vector<4x256xf32>
    %249 = arith.select %247, %242, %248 : vector<4x256xi1>, vector<4x256xf32>
    %cst_96 = arith.constant dense<0.000000e+00> : vector<8x256xf32>
    %250 = tpu.matmul %239, %249, %cst_96 {dimension_numbers = #tpu.dot_dimension_numbers<[1], [0], [0], [1], [0, 0, 1, 1], [], []>} : vector<8x4xf32>, vector<4x256xf32>, vector<8x256xf32> -> vector<8x256xf32>
    %251 = arith.addf %238, %250 : vector<8x256xf32>
    %252 = vector.extract_strided_slice %132 {offsets = [0, 36], sizes = [8, 4], strides = [1, 1]} : vector<8x100xf32> to vector<8x4xf32>
    %253 = vector.extract_strided_slice %131 {offsets = [0, 242], sizes = [4, 14], strides = [1, 1]} : vector<4x256xf32> to vector<4x14xf32>
    %254 = vector.extract_strided_slice %131 {offsets = [0, 0], sizes = [4, 242], strides = [1, 1]} : vector<4x256xf32> to vector<4x242xf32>
    %255 = tpu.concatenate %253, %254 in 1 : vector<4x14xf32>, vector<4x242xf32> -> vector<4x256xf32>
    %c9 = arith.constant 9 : index
    %c0_97 = arith.constant 0 : index
    %256 = vector.load %arg2[%c9, %c0_97] : memref<25x256xf32, #tpu.memory_space<vmem>>, vector<1x256xf32>
    %cst_98 = arith.constant 0.000000e+00 : f32
    %257 = vector.broadcast %cst_98 : f32 to vector<1x256xf32>
    %258 = arith.cmpf one, %256, %257 : vector<1x256xf32>
    %cst_99 = arith.constant 0.000000e+00 : f32
    %259 = vector.shape_cast %258 : vector<1x256xi1> to vector<1x256xi1>
    %260 = vector.broadcast %259 : vector<1x256xi1> to vector<4x256xi1>
    %261 = vector.broadcast %cst_99 : f32 to vector<4x256xf32>
    %262 = arith.select %260, %255, %261 : vector<4x256xi1>, vector<4x256xf32>
    %cst_100 = arith.constant dense<0.000000e+00> : vector<8x256xf32>
    %263 = tpu.matmul %252, %262, %cst_100 {dimension_numbers = #tpu.dot_dimension_numbers<[1], [0], [0], [1], [0, 0, 1, 1], [], []>} : vector<8x4xf32>, vector<4x256xf32>, vector<8x256xf32> -> vector<8x256xf32>
    %264 = arith.addf %251, %263 : vector<8x256xf32>
    %265 = vector.extract_strided_slice %132 {offsets = [0, 40], sizes = [8, 4], strides = [1, 1]} : vector<8x100xf32> to vector<8x4xf32>
    %266 = vector.extract_strided_slice %131 {offsets = [0, 254], sizes = [4, 2], strides = [1, 1]} : vector<4x256xf32> to vector<4x2xf32>
    %267 = vector.extract_strided_slice %131 {offsets = [0, 0], sizes = [4, 254], strides = [1, 1]} : vector<4x256xf32> to vector<4x254xf32>
    %268 = tpu.concatenate %266, %267 in 1 : vector<4x2xf32>, vector<4x254xf32> -> vector<4x256xf32>
    %c10 = arith.constant 10 : index
    %c0_101 = arith.constant 0 : index
    %269 = vector.load %arg2[%c10, %c0_101] : memref<25x256xf32, #tpu.memory_space<vmem>>, vector<1x256xf32>
    %cst_102 = arith.constant 0.000000e+00 : f32
    %270 = vector.broadcast %cst_102 : f32 to vector<1x256xf32>
    %271 = arith.cmpf one, %269, %270 : vector<1x256xf32>
    %cst_103 = arith.constant 0.000000e+00 : f32
    %272 = vector.shape_cast %271 : vector<1x256xi1> to vector<1x256xi1>
    %273 = vector.broadcast %272 : vector<1x256xi1> to vector<4x256xi1>
    %274 = vector.broadcast %cst_103 : f32 to vector<4x256xf32>
    %275 = arith.select %273, %268, %274 : vector<4x256xi1>, vector<4x256xf32>
    %cst_104 = arith.constant dense<0.000000e+00> : vector<8x256xf32>
    %276 = tpu.matmul %265, %275, %cst_104 {dimension_numbers = #tpu.dot_dimension_numbers<[1], [0], [0], [1], [0, 0, 1, 1], [], []>} : vector<8x4xf32>, vector<4x256xf32>, vector<8x256xf32> -> vector<8x256xf32>
    %277 = arith.addf %264, %276 : vector<8x256xf32>
    %278 = vector.extract_strided_slice %132 {offsets = [0, 44], sizes = [8, 4], strides = [1, 1]} : vector<8x100xf32> to vector<8x4xf32>
    %279 = vector.extract_strided_slice %131 {offsets = [0, 255], sizes = [4, 1], strides = [1, 1]} : vector<4x256xf32> to vector<4x1xf32>
    %280 = vector.extract_strided_slice %131 {offsets = [0, 0], sizes = [4, 255], strides = [1, 1]} : vector<4x256xf32> to vector<4x255xf32>
    %281 = tpu.concatenate %279, %280 in 1 : vector<4x1xf32>, vector<4x255xf32> -> vector<4x256xf32>
    %c11_105 = arith.constant 11 : index
    %c0_106 = arith.constant 0 : index
    %282 = vector.load %arg2[%c11_105, %c0_106] : memref<25x256xf32, #tpu.memory_space<vmem>>, vector<1x256xf32>
    %cst_107 = arith.constant 0.000000e+00 : f32
    %283 = vector.broadcast %cst_107 : f32 to vector<1x256xf32>
    %284 = arith.cmpf one, %282, %283 : vector<1x256xf32>
    %cst_108 = arith.constant 0.000000e+00 : f32
    %285 = vector.shape_cast %284 : vector<1x256xi1> to vector<1x256xi1>
    %286 = vector.broadcast %285 : vector<1x256xi1> to vector<4x256xi1>
    %287 = vector.broadcast %cst_108 : f32 to vector<4x256xf32>
    %288 = arith.select %286, %281, %287 : vector<4x256xi1>, vector<4x256xf32>
    %cst_109 = arith.constant dense<0.000000e+00> : vector<8x256xf32>
    %289 = tpu.matmul %278, %288, %cst_109 {dimension_numbers = #tpu.dot_dimension_numbers<[1], [0], [0], [1], [0, 0, 1, 1], [], []>} : vector<8x4xf32>, vector<4x256xf32>, vector<8x256xf32> -> vector<8x256xf32>
    %290 = arith.addf %277, %289 : vector<8x256xf32>
    %291 = vector.extract_strided_slice %132 {offsets = [0, 48], sizes = [8, 4], strides = [1, 1]} : vector<8x100xf32> to vector<8x4xf32>
    %cst_110 = arith.constant dense<0.000000e+00> : vector<8x256xf32>
    %292 = tpu.matmul %291, %131, %cst_110 {dimension_numbers = #tpu.dot_dimension_numbers<[1], [0], [0], [1], [0, 0, 1, 1], [], []>} : vector<8x4xf32>, vector<4x256xf32>, vector<8x256xf32> -> vector<8x256xf32>
    %293 = arith.addf %290, %292 : vector<8x256xf32>
    %294 = vector.extract_strided_slice %132 {offsets = [0, 52], sizes = [8, 4], strides = [1, 1]} : vector<8x100xf32> to vector<8x4xf32>
    %295 = vector.extract_strided_slice %131 {offsets = [0, 1], sizes = [4, 255], strides = [1, 1]} : vector<4x256xf32> to vector<4x255xf32>
    %296 = vector.extract_strided_slice %131 {offsets = [0, 0], sizes = [4, 1], strides = [1, 1]} : vector<4x256xf32> to vector<4x1xf32>
    %297 = tpu.concatenate %295, %296 in 1 : vector<4x255xf32>, vector<4x1xf32> -> vector<4x256xf32>
    %c13_111 = arith.constant 13 : index
    %c0_112 = arith.constant 0 : index
    %298 = vector.load %arg2[%c13_111, %c0_112] : memref<25x256xf32, #tpu.memory_space<vmem>>, vector<1x256xf32>
    %cst_113 = arith.constant 0.000000e+00 : f32
    %299 = vector.broadcast %cst_113 : f32 to vector<1x256xf32>
    %300 = arith.cmpf one, %298, %299 : vector<1x256xf32>
    %cst_114 = arith.constant 0.000000e+00 : f32
    %301 = vector.shape_cast %300 : vector<1x256xi1> to vector<1x256xi1>
    %302 = vector.broadcast %301 : vector<1x256xi1> to vector<4x256xi1>
    %303 = vector.broadcast %cst_114 : f32 to vector<4x256xf32>
    %304 = arith.select %302, %297, %303 : vector<4x256xi1>, vector<4x256xf32>
    %cst_115 = arith.constant dense<0.000000e+00> : vector<8x256xf32>
    %305 = tpu.matmul %294, %304, %cst_115 {dimension_numbers = #tpu.dot_dimension_numbers<[1], [0], [0], [1], [0, 0, 1, 1], [], []>} : vector<8x4xf32>, vector<4x256xf32>, vector<8x256xf32> -> vector<8x256xf32>
    %306 = arith.addf %293, %305 : vector<8x256xf32>
    %307 = vector.extract_strided_slice %132 {offsets = [0, 56], sizes = [8, 4], strides = [1, 1]} : vector<8x100xf32> to vector<8x4xf32>
    %308 = vector.extract_strided_slice %131 {offsets = [0, 2], sizes = [4, 254], strides = [1, 1]} : vector<4x256xf32> to vector<4x254xf32>
    %309 = vector.extract_strided_slice %131 {offsets = [0, 0], sizes = [4, 2], strides = [1, 1]} : vector<4x256xf32> to vector<4x2xf32>
    %310 = tpu.concatenate %308, %309 in 1 : vector<4x254xf32>, vector<4x2xf32> -> vector<4x256xf32>
    %c14 = arith.constant 14 : index
    %c0_116 = arith.constant 0 : index
    %311 = vector.load %arg2[%c14, %c0_116] : memref<25x256xf32, #tpu.memory_space<vmem>>, vector<1x256xf32>
    %cst_117 = arith.constant 0.000000e+00 : f32
    %312 = vector.broadcast %cst_117 : f32 to vector<1x256xf32>
    %313 = arith.cmpf one, %311, %312 : vector<1x256xf32>
    %cst_118 = arith.constant 0.000000e+00 : f32
    %314 = vector.shape_cast %313 : vector<1x256xi1> to vector<1x256xi1>
    %315 = vector.broadcast %314 : vector<1x256xi1> to vector<4x256xi1>
    %316 = vector.broadcast %cst_118 : f32 to vector<4x256xf32>
    %317 = arith.select %315, %310, %316 : vector<4x256xi1>, vector<4x256xf32>
    %cst_119 = arith.constant dense<0.000000e+00> : vector<8x256xf32>
    %318 = tpu.matmul %307, %317, %cst_119 {dimension_numbers = #tpu.dot_dimension_numbers<[1], [0], [0], [1], [0, 0, 1, 1], [], []>} : vector<8x4xf32>, vector<4x256xf32>, vector<8x256xf32> -> vector<8x256xf32>
    %319 = arith.addf %306, %318 : vector<8x256xf32>
    %320 = vector.extract_strided_slice %132 {offsets = [0, 60], sizes = [8, 4], strides = [1, 1]} : vector<8x100xf32> to vector<8x4xf32>
    %321 = vector.extract_strided_slice %131 {offsets = [0, 14], sizes = [4, 242], strides = [1, 1]} : vector<4x256xf32> to vector<4x242xf32>
    %322 = vector.extract_strided_slice %131 {offsets = [0, 0], sizes = [4, 14], strides = [1, 1]} : vector<4x256xf32> to vector<4x14xf32>
    %323 = tpu.concatenate %321, %322 in 1 : vector<4x242xf32>, vector<4x14xf32> -> vector<4x256xf32>
    %c15 = arith.constant 15 : index
    %c0_120 = arith.constant 0 : index
    %324 = vector.load %arg2[%c15, %c0_120] : memref<25x256xf32, #tpu.memory_space<vmem>>, vector<1x256xf32>
    %cst_121 = arith.constant 0.000000e+00 : f32
    %325 = vector.broadcast %cst_121 : f32 to vector<1x256xf32>
    %326 = arith.cmpf one, %324, %325 : vector<1x256xf32>
    %cst_122 = arith.constant 0.000000e+00 : f32
    %327 = vector.shape_cast %326 : vector<1x256xi1> to vector<1x256xi1>
    %328 = vector.broadcast %327 : vector<1x256xi1> to vector<4x256xi1>
    %329 = vector.broadcast %cst_122 : f32 to vector<4x256xf32>
    %330 = arith.select %328, %323, %329 : vector<4x256xi1>, vector<4x256xf32>
    %cst_123 = arith.constant dense<0.000000e+00> : vector<8x256xf32>
    %331 = tpu.matmul %320, %330, %cst_123 {dimension_numbers = #tpu.dot_dimension_numbers<[1], [0], [0], [1], [0, 0, 1, 1], [], []>} : vector<8x4xf32>, vector<4x256xf32>, vector<8x256xf32> -> vector<8x256xf32>
    %332 = arith.addf %319, %331 : vector<8x256xf32>
    %333 = vector.extract_strided_slice %132 {offsets = [0, 64], sizes = [8, 4], strides = [1, 1]} : vector<8x100xf32> to vector<8x4xf32>
    %334 = vector.extract_strided_slice %131 {offsets = [0, 15], sizes = [4, 241], strides = [1, 1]} : vector<4x256xf32> to vector<4x241xf32>
    %335 = vector.extract_strided_slice %131 {offsets = [0, 0], sizes = [4, 15], strides = [1, 1]} : vector<4x256xf32> to vector<4x15xf32>
    %336 = tpu.concatenate %334, %335 in 1 : vector<4x241xf32>, vector<4x15xf32> -> vector<4x256xf32>
    %c16_124 = arith.constant 16 : index
    %c0_125 = arith.constant 0 : index
    %337 = vector.load %arg2[%c16_124, %c0_125] : memref<25x256xf32, #tpu.memory_space<vmem>>, vector<1x256xf32>
    %cst_126 = arith.constant 0.000000e+00 : f32
    %338 = vector.broadcast %cst_126 : f32 to vector<1x256xf32>
    %339 = arith.cmpf one, %337, %338 : vector<1x256xf32>
    %cst_127 = arith.constant 0.000000e+00 : f32
    %340 = vector.shape_cast %339 : vector<1x256xi1> to vector<1x256xi1>
    %341 = vector.broadcast %340 : vector<1x256xi1> to vector<4x256xi1>
    %342 = vector.broadcast %cst_127 : f32 to vector<4x256xf32>
    %343 = arith.select %341, %336, %342 : vector<4x256xi1>, vector<4x256xf32>
    %cst_128 = arith.constant dense<0.000000e+00> : vector<8x256xf32>
    %344 = tpu.matmul %333, %343, %cst_128 {dimension_numbers = #tpu.dot_dimension_numbers<[1], [0], [0], [1], [0, 0, 1, 1], [], []>} : vector<8x4xf32>, vector<4x256xf32>, vector<8x256xf32> -> vector<8x256xf32>
    %345 = arith.addf %332, %344 : vector<8x256xf32>
    %346 = vector.extract_strided_slice %132 {offsets = [0, 68], sizes = [8, 4], strides = [1, 1]} : vector<8x100xf32> to vector<8x4xf32>
    %347 = vector.extract_strided_slice %131 {offsets = [0, 16], sizes = [4, 240], strides = [1, 1]} : vector<4x256xf32> to vector<4x240xf32>
    %348 = vector.extract_strided_slice %131 {offsets = [0, 0], sizes = [4, 16], strides = [1, 1]} : vector<4x256xf32> to vector<4x16xf32>
    %349 = tpu.concatenate %347, %348 in 1 : vector<4x240xf32>, vector<4x16xf32> -> vector<4x256xf32>
    %c17_129 = arith.constant 17 : index
    %c0_130 = arith.constant 0 : index
    %350 = vector.load %arg2[%c17_129, %c0_130] : memref<25x256xf32, #tpu.memory_space<vmem>>, vector<1x256xf32>
    %cst_131 = arith.constant 0.000000e+00 : f32
    %351 = vector.broadcast %cst_131 : f32 to vector<1x256xf32>
    %352 = arith.cmpf one, %350, %351 : vector<1x256xf32>
    %cst_132 = arith.constant 0.000000e+00 : f32
    %353 = vector.shape_cast %352 : vector<1x256xi1> to vector<1x256xi1>
    %354 = vector.broadcast %353 : vector<1x256xi1> to vector<4x256xi1>
    %355 = vector.broadcast %cst_132 : f32 to vector<4x256xf32>
    %356 = arith.select %354, %349, %355 : vector<4x256xi1>, vector<4x256xf32>
    %cst_133 = arith.constant dense<0.000000e+00> : vector<8x256xf32>
    %357 = tpu.matmul %346, %356, %cst_133 {dimension_numbers = #tpu.dot_dimension_numbers<[1], [0], [0], [1], [0, 0, 1, 1], [], []>} : vector<8x4xf32>, vector<4x256xf32>, vector<8x256xf32> -> vector<8x256xf32>
    %358 = arith.addf %345, %357 : vector<8x256xf32>
    %359 = vector.extract_strided_slice %132 {offsets = [0, 72], sizes = [8, 4], strides = [1, 1]} : vector<8x100xf32> to vector<8x4xf32>
    %360 = vector.extract_strided_slice %131 {offsets = [0, 17], sizes = [4, 239], strides = [1, 1]} : vector<4x256xf32> to vector<4x239xf32>
    %361 = vector.extract_strided_slice %131 {offsets = [0, 0], sizes = [4, 17], strides = [1, 1]} : vector<4x256xf32> to vector<4x17xf32>
    %362 = tpu.concatenate %360, %361 in 1 : vector<4x239xf32>, vector<4x17xf32> -> vector<4x256xf32>
    %c18_134 = arith.constant 18 : index
    %c0_135 = arith.constant 0 : index
    %363 = vector.load %arg2[%c18_134, %c0_135] : memref<25x256xf32, #tpu.memory_space<vmem>>, vector<1x256xf32>
    %cst_136 = arith.constant 0.000000e+00 : f32
    %364 = vector.broadcast %cst_136 : f32 to vector<1x256xf32>
    %365 = arith.cmpf one, %363, %364 : vector<1x256xf32>
    %cst_137 = arith.constant 0.000000e+00 : f32
    %366 = vector.shape_cast %365 : vector<1x256xi1> to vector<1x256xi1>
    %367 = vector.broadcast %366 : vector<1x256xi1> to vector<4x256xi1>
    %368 = vector.broadcast %cst_137 : f32 to vector<4x256xf32>
    %369 = arith.select %367, %362, %368 : vector<4x256xi1>, vector<4x256xf32>
    %cst_138 = arith.constant dense<0.000000e+00> : vector<8x256xf32>
    %370 = tpu.matmul %359, %369, %cst_138 {dimension_numbers = #tpu.dot_dimension_numbers<[1], [0], [0], [1], [0, 0, 1, 1], [], []>} : vector<8x4xf32>, vector<4x256xf32>, vector<8x256xf32> -> vector<8x256xf32>
    %371 = arith.addf %358, %370 : vector<8x256xf32>
    %372 = vector.extract_strided_slice %132 {offsets = [0, 76], sizes = [8, 4], strides = [1, 1]} : vector<8x100xf32> to vector<8x4xf32>
    %373 = vector.extract_strided_slice %131 {offsets = [0, 18], sizes = [4, 238], strides = [1, 1]} : vector<4x256xf32> to vector<4x238xf32>
    %374 = vector.extract_strided_slice %131 {offsets = [0, 0], sizes = [4, 18], strides = [1, 1]} : vector<4x256xf32> to vector<4x18xf32>
    %375 = tpu.concatenate %373, %374 in 1 : vector<4x238xf32>, vector<4x18xf32> -> vector<4x256xf32>
    %c19 = arith.constant 19 : index
    %c0_139 = arith.constant 0 : index
    %376 = vector.load %arg2[%c19, %c0_139] : memref<25x256xf32, #tpu.memory_space<vmem>>, vector<1x256xf32>
    %cst_140 = arith.constant 0.000000e+00 : f32
    %377 = vector.broadcast %cst_140 : f32 to vector<1x256xf32>
    %378 = arith.cmpf one, %376, %377 : vector<1x256xf32>
    %cst_141 = arith.constant 0.000000e+00 : f32
    %379 = vector.shape_cast %378 : vector<1x256xi1> to vector<1x256xi1>
    %380 = vector.broadcast %379 : vector<1x256xi1> to vector<4x256xi1>
    %381 = vector.broadcast %cst_141 : f32 to vector<4x256xf32>
    %382 = arith.select %380, %375, %381 : vector<4x256xi1>, vector<4x256xf32>
    %cst_142 = arith.constant dense<0.000000e+00> : vector<8x256xf32>
    %383 = tpu.matmul %372, %382, %cst_142 {dimension_numbers = #tpu.dot_dimension_numbers<[1], [0], [0], [1], [0, 0, 1, 1], [], []>} : vector<8x4xf32>, vector<4x256xf32>, vector<8x256xf32> -> vector<8x256xf32>
    %384 = arith.addf %371, %383 : vector<8x256xf32>
    %385 = vector.extract_strided_slice %132 {offsets = [0, 80], sizes = [8, 4], strides = [1, 1]} : vector<8x100xf32> to vector<8x4xf32>
    %386 = vector.extract_strided_slice %131 {offsets = [0, 30], sizes = [4, 226], strides = [1, 1]} : vector<4x256xf32> to vector<4x226xf32>
    %387 = vector.extract_strided_slice %131 {offsets = [0, 0], sizes = [4, 30], strides = [1, 1]} : vector<4x256xf32> to vector<4x30xf32>
    %388 = tpu.concatenate %386, %387 in 1 : vector<4x226xf32>, vector<4x30xf32> -> vector<4x256xf32>
    %c20 = arith.constant 20 : index
    %c0_143 = arith.constant 0 : index
    %389 = vector.load %arg2[%c20, %c0_143] : memref<25x256xf32, #tpu.memory_space<vmem>>, vector<1x256xf32>
    %cst_144 = arith.constant 0.000000e+00 : f32
    %390 = vector.broadcast %cst_144 : f32 to vector<1x256xf32>
    %391 = arith.cmpf one, %389, %390 : vector<1x256xf32>
    %cst_145 = arith.constant 0.000000e+00 : f32
    %392 = vector.shape_cast %391 : vector<1x256xi1> to vector<1x256xi1>
    %393 = vector.broadcast %392 : vector<1x256xi1> to vector<4x256xi1>
    %394 = vector.broadcast %cst_145 : f32 to vector<4x256xf32>
    %395 = arith.select %393, %388, %394 : vector<4x256xi1>, vector<4x256xf32>
    %cst_146 = arith.constant dense<0.000000e+00> : vector<8x256xf32>
    %396 = tpu.matmul %385, %395, %cst_146 {dimension_numbers = #tpu.dot_dimension_numbers<[1], [0], [0], [1], [0, 0, 1, 1], [], []>} : vector<8x4xf32>, vector<4x256xf32>, vector<8x256xf32> -> vector<8x256xf32>
    %397 = arith.addf %384, %396 : vector<8x256xf32>
    %398 = vector.extract_strided_slice %132 {offsets = [0, 84], sizes = [8, 4], strides = [1, 1]} : vector<8x100xf32> to vector<8x4xf32>
    %399 = vector.extract_strided_slice %131 {offsets = [0, 31], sizes = [4, 225], strides = [1, 1]} : vector<4x256xf32> to vector<4x225xf32>
    %400 = vector.extract_strided_slice %131 {offsets = [0, 0], sizes = [4, 31], strides = [1, 1]} : vector<4x256xf32> to vector<4x31xf32>
    %401 = tpu.concatenate %399, %400 in 1 : vector<4x225xf32>, vector<4x31xf32> -> vector<4x256xf32>
    %c21 = arith.constant 21 : index
    %c0_147 = arith.constant 0 : index
    %402 = vector.load %arg2[%c21, %c0_147] : memref<25x256xf32, #tpu.memory_space<vmem>>, vector<1x256xf32>
    %cst_148 = arith.constant 0.000000e+00 : f32
    %403 = vector.broadcast %cst_148 : f32 to vector<1x256xf32>
    %404 = arith.cmpf one, %402, %403 : vector<1x256xf32>
    %cst_149 = arith.constant 0.000000e+00 : f32
    %405 = vector.shape_cast %404 : vector<1x256xi1> to vector<1x256xi1>
    %406 = vector.broadcast %405 : vector<1x256xi1> to vector<4x256xi1>
    %407 = vector.broadcast %cst_149 : f32 to vector<4x256xf32>
    %408 = arith.select %406, %401, %407 : vector<4x256xi1>, vector<4x256xf32>
    %cst_150 = arith.constant dense<0.000000e+00> : vector<8x256xf32>
    %409 = tpu.matmul %398, %408, %cst_150 {dimension_numbers = #tpu.dot_dimension_numbers<[1], [0], [0], [1], [0, 0, 1, 1], [], []>} : vector<8x4xf32>, vector<4x256xf32>, vector<8x256xf32> -> vector<8x256xf32>
    %410 = arith.addf %397, %409 : vector<8x256xf32>
    %411 = vector.extract_strided_slice %132 {offsets = [0, 88], sizes = [8, 4], strides = [1, 1]} : vector<8x100xf32> to vector<8x4xf32>
    %412 = vector.extract_strided_slice %131 {offsets = [0, 32], sizes = [4, 224], strides = [1, 1]} : vector<4x256xf32> to vector<4x224xf32>
    %413 = vector.extract_strided_slice %131 {offsets = [0, 0], sizes = [4, 32], strides = [1, 1]} : vector<4x256xf32> to vector<4x32xf32>
    %414 = tpu.concatenate %412, %413 in 1 : vector<4x224xf32>, vector<4x32xf32> -> vector<4x256xf32>
    %c22 = arith.constant 22 : index
    %c0_151 = arith.constant 0 : index
    %415 = vector.load %arg2[%c22, %c0_151] : memref<25x256xf32, #tpu.memory_space<vmem>>, vector<1x256xf32>
    %cst_152 = arith.constant 0.000000e+00 : f32
    %416 = vector.broadcast %cst_152 : f32 to vector<1x256xf32>
    %417 = arith.cmpf one, %415, %416 : vector<1x256xf32>
    %cst_153 = arith.constant 0.000000e+00 : f32
    %418 = vector.shape_cast %417 : vector<1x256xi1> to vector<1x256xi1>
    %419 = vector.broadcast %418 : vector<1x256xi1> to vector<4x256xi1>
    %420 = vector.broadcast %cst_153 : f32 to vector<4x256xf32>
    %421 = arith.select %419, %414, %420 : vector<4x256xi1>, vector<4x256xf32>
    %cst_154 = arith.constant dense<0.000000e+00> : vector<8x256xf32>
    %422 = tpu.matmul %411, %421, %cst_154 {dimension_numbers = #tpu.dot_dimension_numbers<[1], [0], [0], [1], [0, 0, 1, 1], [], []>} : vector<8x4xf32>, vector<4x256xf32>, vector<8x256xf32> -> vector<8x256xf32>
    %423 = arith.addf %410, %422 : vector<8x256xf32>
    %424 = vector.extract_strided_slice %132 {offsets = [0, 92], sizes = [8, 4], strides = [1, 1]} : vector<8x100xf32> to vector<8x4xf32>
    %425 = vector.extract_strided_slice %131 {offsets = [0, 33], sizes = [4, 223], strides = [1, 1]} : vector<4x256xf32> to vector<4x223xf32>
    %426 = vector.extract_strided_slice %131 {offsets = [0, 0], sizes = [4, 33], strides = [1, 1]} : vector<4x256xf32> to vector<4x33xf32>
    %427 = tpu.concatenate %425, %426 in 1 : vector<4x223xf32>, vector<4x33xf32> -> vector<4x256xf32>
    %c23 = arith.constant 23 : index
    %c0_155 = arith.constant 0 : index
    %428 = vector.load %arg2[%c23, %c0_155] : memref<25x256xf32, #tpu.memory_space<vmem>>, vector<1x256xf32>
    %cst_156 = arith.constant 0.000000e+00 : f32
    %429 = vector.broadcast %cst_156 : f32 to vector<1x256xf32>
    %430 = arith.cmpf one, %428, %429 : vector<1x256xf32>
    %cst_157 = arith.constant 0.000000e+00 : f32
    %431 = vector.shape_cast %430 : vector<1x256xi1> to vector<1x256xi1>
    %432 = vector.broadcast %431 : vector<1x256xi1> to vector<4x256xi1>
    %433 = vector.broadcast %cst_157 : f32 to vector<4x256xf32>
    %434 = arith.select %432, %427, %433 : vector<4x256xi1>, vector<4x256xf32>
    %cst_158 = arith.constant dense<0.000000e+00> : vector<8x256xf32>
    %435 = tpu.matmul %424, %434, %cst_158 {dimension_numbers = #tpu.dot_dimension_numbers<[1], [0], [0], [1], [0, 0, 1, 1], [], []>} : vector<8x4xf32>, vector<4x256xf32>, vector<8x256xf32> -> vector<8x256xf32>
    %436 = arith.addf %423, %435 : vector<8x256xf32>
    %437 = vector.extract_strided_slice %132 {offsets = [0, 96], sizes = [8, 4], strides = [1, 1]} : vector<8x100xf32> to vector<8x4xf32>
    %438 = vector.extract_strided_slice %131 {offsets = [0, 34], sizes = [4, 222], strides = [1, 1]} : vector<4x256xf32> to vector<4x222xf32>
    %439 = vector.extract_strided_slice %131 {offsets = [0, 0], sizes = [4, 34], strides = [1, 1]} : vector<4x256xf32> to vector<4x34xf32>
    %440 = tpu.concatenate %438, %439 in 1 : vector<4x222xf32>, vector<4x34xf32> -> vector<4x256xf32>
    %c24 = arith.constant 24 : index
    %c0_159 = arith.constant 0 : index
    %441 = vector.load %arg2[%c24, %c0_159] : memref<25x256xf32, #tpu.memory_space<vmem>>, vector<1x256xf32>
    %cst_160 = arith.constant 0.000000e+00 : f32
    %442 = vector.broadcast %cst_160 : f32 to vector<1x256xf32>
    %443 = arith.cmpf one, %441, %442 : vector<1x256xf32>
    %cst_161 = arith.constant 0.000000e+00 : f32
    %444 = vector.shape_cast %443 : vector<1x256xi1> to vector<1x256xi1>
    %445 = vector.broadcast %444 : vector<1x256xi1> to vector<4x256xi1>
    %446 = vector.broadcast %cst_161 : f32 to vector<4x256xf32>
    %447 = arith.select %445, %440, %446 : vector<4x256xi1>, vector<4x256xf32>
    %cst_162 = arith.constant dense<0.000000e+00> : vector<8x256xf32>
    %448 = tpu.matmul %437, %447, %cst_162 {dimension_numbers = #tpu.dot_dimension_numbers<[1], [0], [0], [1], [0, 0, 1, 1], [], []>} : vector<8x4xf32>, vector<4x256xf32>, vector<8x256xf32> -> vector<8x256xf32>
    %449 = arith.addf %436, %448 : vector<8x256xf32>
    %450 = vector.broadcast %133 : vector<8x1xf32> to vector<8x256xf32>
    %451 = arith.addf %449, %450 : vector<8x256xf32>
    %cst_163 = arith.constant 0.000000e+00 : f32
    %452 = vector.broadcast %cst_163 : f32 to vector<8x256xf32>
    %453 = arith.maximumf %451, %452 : vector<8x256xf32>
    %c0_164 = arith.constant 0 : index
    %c16_165 = arith.constant 16 : index
    %c0_166 = arith.constant 0 : index
    %454 = vector.load %arg11[%c0_164, %c16_165, %c0_166] : memref<1x32x256xf32, #tpu.memory_space<vmem>>, vector<1x8x256xf32>
    %455 = vector.shape_cast %454 : vector<1x8x256xf32> to vector<8x256xf32>
    %456 = vector.shape_cast %453 : vector<8x256xf32> to vector<1x8x256xf32>
    tpu.vector_store %arg11[%c0_164, %c16_165, %c0_166], %456 {strides = array<i32>} : memref<1x32x256xf32, #tpu.memory_space<vmem>>, vector<1x8x256xf32>,
    %457 = vector.extract_strided_slice %1 {offsets = [0, 239], sizes = [4, 17], strides = [1, 1]} : vector<4x256xf32> to vector<4x17xf32>
    %458 = vector.extract_strided_slice %1 {offsets = [0, 0], sizes = [4, 239], strides = [1, 1]} : vector<4x256xf32> to vector<4x239xf32>
    %459 = tpu.concatenate %457, %458 in 1 : vector<4x17xf32>, vector<4x239xf32> -> vector<4x256xf32>
    %c6_167 = arith.constant 6 : index
    %c0_168 = arith.constant 0 : index
    %460 = vector.load %arg2[%c6_167, %c0_168] : memref<25x256xf32, #tpu.memory_space<vmem>>, vector<1x256xf32>
    %cst_169 = arith.constant 0.000000e+00 : f32
    %461 = vector.broadcast %cst_169 : f32 to vector<1x256xf32>
    %462 = arith.cmpf one, %460, %461 : vector<1x256xf32>
    %cst_170 = arith.constant 0xFF800000 : f32
    %463 = vector.shape_cast %462 : vector<1x256xi1> to vector<1x256xi1>
    %464 = vector.broadcast %463 : vector<1x256xi1> to vector<4x256xi1>
    %465 = vector.broadcast %cst_170 : f32 to vector<4x256xf32>
    %466 = arith.select %464, %459, %465 : vector<4x256xi1>, vector<4x256xf32>
    %467 = arith.maximumf %1, %466 : vector<4x256xf32>
    %468 = vector.extract_strided_slice %1 {offsets = [0, 240], sizes = [4, 16], strides = [1, 1]} : vector<4x256xf32> to vector<4x16xf32>
    %469 = vector.extract_strided_slice %1 {offsets = [0, 0], sizes = [4, 240], strides = [1, 1]} : vector<4x256xf32> to vector<4x240xf32>
    %470 = tpu.concatenate %468, %469 in 1 : vector<4x16xf32>, vector<4x240xf32> -> vector<4x256xf32>
    %c7_171 = arith.constant 7 : index
    %c0_172 = arith.constant 0 : index
    %471 = vector.load %arg2[%c7_171, %c0_172] : memref<25x256xf32, #tpu.memory_space<vmem>>, vector<1x256xf32>
    %cst_173 = arith.constant 0.000000e+00 : f32
    %472 = vector.broadcast %cst_173 : f32 to vector<1x256xf32>
    %473 = arith.cmpf one, %471, %472 : vector<1x256xf32>
    %cst_174 = arith.constant 0xFF800000 : f32
    %474 = vector.shape_cast %473 : vector<1x256xi1> to vector<1x256xi1>
    %475 = vector.broadcast %474 : vector<1x256xi1> to vector<4x256xi1>
    %476 = vector.broadcast %cst_174 : f32 to vector<4x256xf32>
    %477 = arith.select %475, %470, %476 : vector<4x256xi1>, vector<4x256xf32>
    %478 = arith.maximumf %467, %477 : vector<4x256xf32>
    %479 = vector.extract_strided_slice %1 {offsets = [0, 241], sizes = [4, 15], strides = [1, 1]} : vector<4x256xf32> to vector<4x15xf32>
    %480 = vector.extract_strided_slice %1 {offsets = [0, 0], sizes = [4, 241], strides = [1, 1]} : vector<4x256xf32> to vector<4x241xf32>
    %481 = tpu.concatenate %479, %480 in 1 : vector<4x15xf32>, vector<4x241xf32> -> vector<4x256xf32>
    %c8_175 = arith.constant 8 : index
    %c0_176 = arith.constant 0 : index
    %482 = vector.load %arg2[%c8_175, %c0_176] : memref<25x256xf32, #tpu.memory_space<vmem>>, vector<1x256xf32>
    %cst_177 = arith.constant 0.000000e+00 : f32
    %483 = vector.broadcast %cst_177 : f32 to vector<1x256xf32>
    %484 = arith.cmpf one, %482, %483 : vector<1x256xf32>
    %cst_178 = arith.constant 0xFF800000 : f32
    %485 = vector.shape_cast %484 : vector<1x256xi1> to vector<1x256xi1>
    %486 = vector.broadcast %485 : vector<1x256xi1> to vector<4x256xi1>
    %487 = vector.broadcast %cst_178 : f32 to vector<4x256xf32>
    %488 = arith.select %486, %481, %487 : vector<4x256xi1>, vector<4x256xf32>
    %489 = arith.maximumf %478, %488 : vector<4x256xf32>
    %490 = vector.extract_strided_slice %1 {offsets = [0, 255], sizes = [4, 1], strides = [1, 1]} : vector<4x256xf32> to vector<4x1xf32>
    %491 = vector.extract_strided_slice %1 {offsets = [0, 0], sizes = [4, 255], strides = [1, 1]} : vector<4x256xf32> to vector<4x255xf32>
    %492 = tpu.concatenate %490, %491 in 1 : vector<4x1xf32>, vector<4x255xf32> -> vector<4x256xf32>
    %c11_179 = arith.constant 11 : index
    %c0_180 = arith.constant 0 : index
    %493 = vector.load %arg2[%c11_179, %c0_180] : memref<25x256xf32, #tpu.memory_space<vmem>>, vector<1x256xf32>
    %cst_181 = arith.constant 0.000000e+00 : f32
    %494 = vector.broadcast %cst_181 : f32 to vector<1x256xf32>
    %495 = arith.cmpf one, %493, %494 : vector<1x256xf32>
    %cst_182 = arith.constant 0xFF800000 : f32
    %496 = vector.shape_cast %495 : vector<1x256xi1> to vector<1x256xi1>
    %497 = vector.broadcast %496 : vector<1x256xi1> to vector<4x256xi1>
    %498 = vector.broadcast %cst_182 : f32 to vector<4x256xf32>
    %499 = arith.select %497, %492, %498 : vector<4x256xi1>, vector<4x256xf32>
    %500 = arith.maximumf %489, %499 : vector<4x256xf32>
    %501 = vector.extract_strided_slice %1 {offsets = [0, 1], sizes = [4, 255], strides = [1, 1]} : vector<4x256xf32> to vector<4x255xf32>
    %502 = vector.extract_strided_slice %1 {offsets = [0, 0], sizes = [4, 1], strides = [1, 1]} : vector<4x256xf32> to vector<4x1xf32>
    %503 = tpu.concatenate %501, %502 in 1 : vector<4x255xf32>, vector<4x1xf32> -> vector<4x256xf32>
    %c13_183 = arith.constant 13 : index
    %c0_184 = arith.constant 0 : index
    %504 = vector.load %arg2[%c13_183, %c0_184] : memref<25x256xf32, #tpu.memory_space<vmem>>, vector<1x256xf32>
    %cst_185 = arith.constant 0.000000e+00 : f32
    %505 = vector.broadcast %cst_185 : f32 to vector<1x256xf32>
    %506 = arith.cmpf one, %504, %505 : vector<1x256xf32>
    %cst_186 = arith.constant 0xFF800000 : f32
    %507 = vector.shape_cast %506 : vector<1x256xi1> to vector<1x256xi1>
    %508 = vector.broadcast %507 : vector<1x256xi1> to vector<4x256xi1>
    %509 = vector.broadcast %cst_186 : f32 to vector<4x256xf32>
    %510 = arith.select %508, %503, %509 : vector<4x256xi1>, vector<4x256xf32>
    %511 = arith.maximumf %500, %510 : vector<4x256xf32>
    %512 = vector.extract_strided_slice %1 {offsets = [0, 15], sizes = [4, 241], strides = [1, 1]} : vector<4x256xf32> to vector<4x241xf32>
    %513 = vector.extract_strided_slice %1 {offsets = [0, 0], sizes = [4, 15], strides = [1, 1]} : vector<4x256xf32> to vector<4x15xf32>
    %514 = tpu.concatenate %512, %513 in 1 : vector<4x241xf32>, vector<4x15xf32> -> vector<4x256xf32>
    %c16_187 = arith.constant 16 : index
    %c0_188 = arith.constant 0 : index
    %515 = vector.load %arg2[%c16_187, %c0_188] : memref<25x256xf32, #tpu.memory_space<vmem>>, vector<1x256xf32>
    %cst_189 = arith.constant 0.000000e+00 : f32
    %516 = vector.broadcast %cst_189 : f32 to vector<1x256xf32>
    %517 = arith.cmpf one, %515, %516 : vector<1x256xf32>
    %cst_190 = arith.constant 0xFF800000 : f32
    %518 = vector.shape_cast %517 : vector<1x256xi1> to vector<1x256xi1>
    %519 = vector.broadcast %518 : vector<1x256xi1> to vector<4x256xi1>
    %520 = vector.broadcast %cst_190 : f32 to vector<4x256xf32>
    %521 = arith.select %519, %514, %520 : vector<4x256xi1>, vector<4x256xf32>
    %522 = arith.maximumf %511, %521 : vector<4x256xf32>
    %523 = vector.extract_strided_slice %1 {offsets = [0, 16], sizes = [4, 240], strides = [1, 1]} : vector<4x256xf32> to vector<4x240xf32>
    %524 = vector.extract_strided_slice %1 {offsets = [0, 0], sizes = [4, 16], strides = [1, 1]} : vector<4x256xf32> to vector<4x16xf32>
    %525 = tpu.concatenate %523, %524 in 1 : vector<4x240xf32>, vector<4x16xf32> -> vector<4x256xf32>
    %c17_191 = arith.constant 17 : index
    %c0_192 = arith.constant 0 : index
    %526 = vector.load %arg2[%c17_191, %c0_192] : memref<25x256xf32, #tpu.memory_space<vmem>>, vector<1x256xf32>
    %cst_193 = arith.constant 0.000000e+00 : f32
    %527 = vector.broadcast %cst_193 : f32 to vector<1x256xf32>
    %528 = arith.cmpf one, %526, %527 : vector<1x256xf32>
    %cst_194 = arith.constant 0xFF800000 : f32
    %529 = vector.shape_cast %528 : vector<1x256xi1> to vector<1x256xi1>
    %530 = vector.broadcast %529 : vector<1x256xi1> to vector<4x256xi1>
    %531 = vector.broadcast %cst_194 : f32 to vector<4x256xf32>
    %532 = arith.select %530, %525, %531 : vector<4x256xi1>, vector<4x256xf32>
    %533 = arith.maximumf %522, %532 : vector<4x256xf32>
    %534 = vector.extract_strided_slice %1 {offsets = [0, 17], sizes = [4, 239], strides = [1, 1]} : vector<4x256xf32> to vector<4x239xf32>
    %535 = vector.extract_strided_slice %1 {offsets = [0, 0], sizes = [4, 17], strides = [1, 1]} : vector<4x256xf32> to vector<4x17xf32>
    %536 = tpu.concatenate %534, %535 in 1 : vector<4x239xf32>, vector<4x17xf32> -> vector<4x256xf32>
    %c18_195 = arith.constant 18 : index
    %c0_196 = arith.constant 0 : index
    %537 = vector.load %arg2[%c18_195, %c0_196] : memref<25x256xf32, #tpu.memory_space<vmem>>, vector<1x256xf32>
    %cst_197 = arith.constant 0.000000e+00 : f32
    %538 = vector.broadcast %cst_197 : f32 to vector<1x256xf32>
    %539 = arith.cmpf one, %537, %538 : vector<1x256xf32>
    %cst_198 = arith.constant 0xFF800000 : f32
    %540 = vector.shape_cast %539 : vector<1x256xi1> to vector<1x256xi1>
    %541 = vector.broadcast %540 : vector<1x256xi1> to vector<4x256xi1>
    %542 = vector.broadcast %cst_198 : f32 to vector<4x256xf32>
    %543 = arith.select %541, %536, %542 : vector<4x256xi1>, vector<4x256xf32>
    %544 = arith.maximumf %533, %543 : vector<4x256xf32>
    %c0_199 = arith.constant 0 : index
    %c0_200 = arith.constant 0 : index
    %545 = vector.load %arg9[%c0_199, %c0_200] : memref<8x4xf32, #tpu.memory_space<vmem>>, vector<8x4xf32>
    %cst_201 = arith.constant dense<0.000000e+00> : vector<8x256xf32>
    %546 = tpu.matmul %545, %544, %cst_201 {dimension_numbers = #tpu.dot_dimension_numbers<[1], [0], [0], [1], [0, 0, 1, 1], [], []>} : vector<8x4xf32>, vector<4x256xf32>, vector<8x256xf32> -> vector<8x256xf32>
    %c0_202 = arith.constant 0 : index
    %c0_203 = arith.constant 0 : index
    %547 = vector.load %arg10[%c0_202, %c0_203] : memref<8x1xf32, #tpu.memory_space<vmem>>, vector<8x1xf32>
    %548 = vector.broadcast %547 : vector<8x1xf32> to vector<8x256xf32>
    %549 = arith.addf %546, %548 : vector<8x256xf32>
    %cst_204 = arith.constant 0.000000e+00 : f32
    %550 = vector.broadcast %cst_204 : f32 to vector<8x256xf32>
    %551 = arith.maximumf %549, %550 : vector<8x256xf32>
    %c0_205 = arith.constant 0 : index
    %c24_206 = arith.constant 24 : index
    %c0_207 = arith.constant 0 : index
    %552 = vector.load %arg11[%c0_205, %c24_206, %c0_207] : memref<1x32x256xf32, #tpu.memory_space<vmem>>, vector<1x8x256xf32>
    %553 = vector.shape_cast %552 : vector<1x8x256xf32> to vector<8x256xf32>
    %554 = vector.shape_cast %551 : vector<8x256xf32> to vector<1x8x256xf32>
    tpu.vector_store %arg11[%c0_205, %c24_206, %c0_207], %554 {strides = array<i32>} : memref<1x32x256xf32, #tpu.memory_space<vmem>>, vector<1x8x256xf32>,
    return
  }
  func.func @transform_0(%arg0: i32) -> (i32, i32, i32) {
    %c0_i32 = arith.constant 0 : i32
    %c0_i32_0 = arith.constant 0 : i32
    %c0_i32_1 = arith.constant 0 : i32
    return %arg0, %c0_i32, %c0_i32_0 : i32, i32, i32
  }
  func.func @transform_1(%arg0: i32) -> (i32, i32) {
    %c0_i32 = arith.constant 0 : i32
    %c0_i32_0 = arith.constant 0 : i32
    %c0_i32_1 = arith.constant 0 : i32
    return %c0_i32, %c0_i32_0 : i32, i32
  }
  func.func @transform_2(%arg0: i32) -> (i32, i32) {
    %c0_i32 = arith.constant 0 : i32
    %c0_i32_0 = arith.constant 0 : i32
    %c0_i32_1 = arith.constant 0 : i32
    return %c0_i32, %c0_i32_0 : i32, i32
  }
  func.func @transform_3(%arg0: i32) -> (i32, i32) {
    %c0_i32 = arith.constant 0 : i32
    %c0_i32_0 = arith.constant 0 : i32
    %c0_i32_1 = arith.constant 0 : i32
    return %c0_i32, %c0_i32_0 : i32, i32
  }
  func.func @transform_4(%arg0: i32) -> (i32, i32) {
    %c0_i32 = arith.constant 0 : i32
    %c0_i32_0 = arith.constant 0 : i32
    %c0_i32_1 = arith.constant 0 : i32
    return %c0_i32, %c0_i32_0 : i32, i32
  }
  func.func @transform_5(%arg0: i32) -> (i32, i32) {
    %c0_i32 = arith.constant 0 : i32
    %c0_i32_0 = arith.constant 0 : i32
    %c0_i32_1 = arith.constant 0 : i32
    return %c0_i32, %c0_i32_0 : i32, i32
  }
  func.func @transform_6(%arg0: i32) -> (i32, i32) {
    %c0_i32 = arith.constant 0 : i32
    %c0_i32_0 = arith.constant 0 : i32
    %c0_i32_1 = arith.constant 0 : i32
    return %c0_i32, %c0_i32_0 : i32, i32
  }
  func.func @transform_7(%arg0: i32) -> (i32, i32) {
    %c0_i32 = arith.constant 0 : i32
    %c0_i32_0 = arith.constant 0 : i32
    %c0_i32_1 = arith.constant 0 : i32
    return %c0_i32, %c0_i32_0 : i32, i32
  }
  func.func @transform_8(%arg0: i32) -> (i32, i32) {
    %c0_i32 = arith.constant 0 : i32
    %c0_i32_0 = arith.constant 0 : i32
    %c0_i32_1 = arith.constant 0 : i32
    return %c0_i32, %c0_i32_0 : i32, i32
  }
  func.func @transform_9(%arg0: i32) -> (i32, i32) {
    %c0_i32 = arith.constant 0 : i32
    %c0_i32_0 = arith.constant 0 : i32
    %c0_i32_1 = arith.constant 0 : i32
    return %c0_i32, %c0_i32_0 : i32, i32
  }
  func.func @transform_10(%arg0: i32) -> (i32, i32, i32) {
    %c0_i32 = arith.constant 0 : i32
    %c0_i32_0 = arith.constant 0 : i32
    %c0_i32_1 = arith.constant 0 : i32
    return %arg0, %c0_i32, %c0_i32_0 : i32, i32, i32
  }
}

</mosaic_0001>

<bundles_post_ra>
// kernel: _forward_impl.1
= control target key start
LH: loop header
LB: loop body
LE: loop exit
PB: predicated region body
PF: predicated region fallthrough
CT: control target
= control target key end

     0   :  { %s4874_s13 = smov 0   ;;  %s6300_s0 = inlined_call_operand.vmem [shape: f32[2,4,256], index: 0, kind: input, shape index: {}]   ;;  %s6301_s1 = inlined_call_operand.vmem [shape: f32[25,256], index: 1, kind: input, shape index: {}]   ;;  %s6302_s2 = inlined_call_operand.vmem [shape: f32[16,4], index: 2, kind: input, shape index: {}]   ;;  %s6303_s3 = inlined_call_operand.vmem [shape: f32[16,1], index: 3, kind: input, shape index: {}]   ;;  %s6304_s4 = inlined_call_operand.vmem [shape: f32[8,36], index: 4, kind: input, shape index: {}]   ;;  %s6305_s5 = inlined_call_operand.vmem [shape: f32[8,1], index: 5, kind: input, shape index: {}]   ;;  %s6306_s6 = inlined_call_operand.vmem [shape: f32[8,100], index: 6, kind: input, shape index: {}]   ;;  %s6307_s7 = inlined_call_operand.vmem [shape: f32[8,1], index: 7, kind: input, shape index: {}]   ;;  %s6308_s8 = inlined_call_operand.vmem [shape: f32[8,4], index: 8, kind: input, shape index: {}]   ;;  %s6309_s9 = inlined_call_operand.vmem [shape: f32[8,1], index: 9, kind: input, shape index: {}]   ;;  %s6310_s10 = inlined_call_operand.vmem [shape: f32[2,32,256], index: 10, kind: output, shape index: {}]  }
   0x1 LB: > { %s4479_s14 = sadd.s32 4294967295, %s4770_s13   ;;  %p4483_p0 = scmp.ge.s32.totalorder %s4770_s13, 1  ;;  %s4770_s13 = sphi %s4874_s13, %s20_s13  }
   0x2   : > { %p312_p1 = scmp.lt.s32.totalorder %s4770_s13, 3 }
   0x4   : > { %p313_p2 = pnand %p4483_p0, %p312_p1 }
   0x5   : > { %p350_p3 = scmp.lt.s32.totalorder (!%p313_p2), %s4479_s14, 1  ;;  %v4772_v0 = vmov (!%p313_p2), 0.0   ;;  %v364_v1 = vld [vmem:[%s6303_s3 + $0x8] sm:$0xff] (!%p313_p2)  ;;  %v4889_v2 = vld [vmem:[%s6306_s6] sm:$0xff] (!%p313_p2)  ;;  %v4773_v3 = vmov (!%p313_p2), 0   ;;  %s4774_s19 = smov (!%p313_p2), 104   ;;  %v490_v31 = vlaneseq (!%p313_p2) }
   0x6   : > { %316 = sbr.rel (%p313_p2) target bundleno = 751 (0x2ef), region = 60  ;;  %453 = vmatprep.mubr.f32.mxu1 (!%p313_p2), %v4772_v0  ;;  %2188 = vmatprep.mubr.f32.mxu0 (!%p313_p2), %v4772_v0  ;;  %vm6324_vm0 = vcmask (!%p313_p2), 1043456   ;;  %s4775_s24 = smov (!%p313_p2), 96   ;;  %v361_v6 = vld [vmem:[%s6302_s2] sm:$0xff] (!%p313_p2)  ;;  %vm6321_vm1 = vcmask (!%p313_p2), 31744   ;;  %v362_v7 = vld [vmem:[%s6302_s2 + $0x8] sm:$0xff] (!%p313_p2) }
   0x7   : > { %4759 = vset.pattern.permute.xlu0 (!%p313_p2), %v4773_v3  ;;  %2112 = vrot.lane.b32.xlu1 (!%p313_p2), %v4889_v2, %s4774_s19  ;;  %s4776_s25 = smov (!%p313_p2), 100   ;;  %s4777_s28 = smov (!%p313_p2), 88   ;;  %v4932_v8 = vld [vmem:[%s6304_s4] sm:$0xff] (!%p313_p2)  ;;  %v491_v35 = vshrl.u32 (!%p313_p2), %v490_v31, 7  ;;  %vm6322_vm6 = vcmask (!%p313_p2), 138240   ;;  %vm6319_vm11 = vcmask (!%p313_p2), 121856  }
   0x8   : > { %372 = vperm.xlu0 (!%p313_p2), %4759, %v364_v1   ;;  %4760 = vset.pattern.permute.xlu1 (!%p313_p2), %v4773_v3  ;;  %s4778_s29 = smov (!%p313_p2), 92   ;;  %s4779_s16 = smov (!%p313_p2), 84   ;;  %v4550_v34 = vld [vmem:[%s6301_s1 + $0x6] ss:$8 sm:$0x3] (!%p313_p2)  ;;  %vm6320_vm12 = vcmask (!%p313_p2), 130048  }
   0x9   : > { %s4780_s17 = smov (!%p313_p2), 124   ;;  %s4781_s18 = smov (!%p313_p2), 120   ;;  %vm2098_vm2 = vcmp.ne.f32.partialorder (!%p313_p2), %v4550_v34, 0.0  ;;  %v5107_v38 = vsub.s32 (!%p313_p2), 0, %v491_v35  ;;  %v5117_v43 = vsub.s32 (!%p313_p2), 1, %v491_v35 }
   0xa   : > { %s6312_s21 = smov (!%p313_p2), 116   ;;  %s4784_s22 = smov (!%p313_p2), 76   ;;  %v2099_v41 = vsel (!%p313_p2), %vm2098_vm2, 1, %v4773_v3  ;;  %v4492_v42 = vld [vmem:[%s6301_s1 + $0x6] ss:$8 sm:$0x3] (!%p313_p2) }
   0xb   : > { %2312 = vrot.lane.b32.xlu1 (!%p313_p2), %v4889_v2, %s4775_s24  ;;  %s6313_s26 = smov (!%p313_p2), 15   ;;  %s4786_s27 = smov (!%p313_p2), 17   ;;  %v4493_v44 = vld [vmem:[%s6301_s1 + $0x7] ss:$8 sm:$0x3] (!%p313_p2)  ;;  %v2103_v46 = vrot.slane (!%p313_p2), %v2099_v41, %v5107_v38  ;;  %vm488_vm3 = vcmp.ne.f32.partialorder (!%p313_p2), %v4492_v42, 0.0  ;;  %v2107_v50 = vrot.slane (!%p313_p2), %v2099_v41, %v5117_v43 }
   0xc   : > { %2212 = vrot.lane.b32.xlu0 (!%p313_p2), %v4889_v2, %s4776_s25  ;;  %s4789_s30 = smov (!%p313_p2), 1   ;;  %s4790_s11 = smov (!%p313_p2), 14   ;;  %v4554_v45 = vld [vmem:[%s6301_s1 + $0x7] ss:$8 sm:$0x3] (!%p313_p2)  ;;  %vm514_vm4 = vcmp.ne.f32.partialorder (!%p313_p2), %v4493_v44, 0.0 }
   0xd   : > { %s6561_s14 = smov (!%p350_p3, %s4479_s14), 1  ;;  %s4791_s12 = smov 127   ;;  %v4558_v47 = vld [vmem:[%s6301_s1 + $0x10] ss:$8 sm:$0x3]  ;;  %vm2198_vm5 = vcmp.ne.f32.partialorder %v4554_v45, 0.0 }
   0xe   : > { %s4638_s20 = sshll.u32 %s6561_s14, 3  ;;  %s4792_s15 = smov 112   ;;  %vm2298_vm7 = vcmp.ne.f32.partialorder %v4558_v47, 0.0  ;;  %v489_v51 = vsel %vm488_vm3, 1, %v4773_v3  ;;  %vm5142_vm8 = vcmp.eq.s32.totalorder %v2103_v46, 1  ;;  %v515_v56 = vsel %vm514_vm4, 1, %v4773_v3 }
   0xf   : > { %s4902_s23 = scalar_lea.vmem %s6300_s0, %s4638_s20  ;;  %2534 = vrot.lane.b32.xlu1 %v4889_v2, %s4777_s28  ;;  %s4782_s20 = smov 80   ;;  %v4500_v53 = vld [vmem:[%s6301_s1 + $0x10] ss:$8 sm:$0x3]  ;;  %v2199_v57 = vsel %vm2198_vm5, 1, %v4773_v3  ;;  %v2299_v60 = vsel %vm2298_vm7, 1, %v4773_v3  ;;  %v497_v62 = vrot.slane %v489_v51, %v5117_v43  ;;  %v519_v1 = vrot.slane %v515_v56, %v5107_v38 }
  0x10   : > { %v4905_v4 = vld [vmem:[%s4902_s23] sm:$0xff]  ;;  %2423 = vrot.lane.b32.xlu0 %v4889_v2, %s4778_s29  ;;  %s4787_s28 = smov 2   ;;  %s4788_s29 = smov 16   ;;  %vm5158_vm9 = vcmp.eq.s32.totalorder %v2107_v50, 1  ;;  %vm701_vm10 = vcmp.ne.f32.partialorder %v4500_v53, 0.0  ;;  %v493_v41 = vrot.slane %v489_v51, %v5107_v38 }
  0x11   : > { %v4911_v5 = vcombine.high %v4905_v4, %v4905_v4  ;;  %v5184_v34 = vsel %vm701_vm10, 1, %v4773_v3  ;;  %vm5192_vm13 = vcmp.eq.s32.totalorder %v519_v1, 1  ;;  %vm5208_vm3 = vcmp.eq.s32.totalorder %v497_v62, 1  ;;  %v4562_v62 = vld [vmem:[%s6301_s1 + $0x11] ss:$8 sm:$0x3] }
  0x12   : > { %v710_v50 = vrot.slane %v5184_v34, %v5117_v43  ;;  %vm5250_vm7 = vcmp.eq.s32.totalorder %v493_v41, 1  ;;  %v706_v41 = vrot.slane %v5184_v34, %v5107_v38 }
  0x13   : > { %4488 = vmatprep.subr.msk.mxu1 %vm6324_vm0, %v4911_v5  ;;  %2634 = vrot.lane.b32.xlu1 %v4889_v2, %s4779_s16  ;;  %s4793_s16 = smov 126  }
  0x14   : > { %4489 = vmatpush1.msk.msra.mxu1 %vm6324_vm0, %v4905_v4  ;;  %529 = vrot.lane.b32.xlu0 %v4932_v8, %s4780_s17 }
  0x15   : > { %4490 = vmatmul.mubr.msk.f32.vlgmr.msra.gmra.mrb[0].mxu1 %vm6321_vm1, %v361_v6  ;;  %v523_v6 = vrot.slane %v515_v56, %v5117_v43 }
  0x16   : > { %459 = vmatprep.mubr.f32.mxu1 %v4772_v0 }
  0x17   : > { %715 = vrot.lane.b32.xlu1 %v4932_v8, %s4781_s18  ;;  %vm5196_vm14 = vcmp.eq.s32.totalorder %v523_v6, 1 }
  0x18   : > { %2719 = vrot.lane.b32.xlu0 %v4889_v2, %s4782_s20  ;;  %s6311_s20 = smov 108  }
  0x19   : > { %4491 = vmatmul.mubr.msk.f32.gmra.mrb[2].mxu1 %vm6321_vm1, %v362_v7  ;;  %v2203_v7 = vrot.slane %v2199_v57, %v5107_v38 }
  0x1a   : > { %603 = vmatprep.mubr.f32.mxu1 %v4772_v0 }
  0x1b   : > { %824 = vrot.lane.b32.xlu1 %v4932_v8, %s6312_s21  ;;  %s6315_s21 = smov 33   ;;  %vm5200_vm15 = vcmp.eq.s32.totalorder %v2203_v7, 1 }
  0x1c   : > { %2817 = vrot.lane.b32.xlu0 %v4889_v2, %s4784_s22  ;;  %s4795_s22 = smov 72  }
  0x79   : > { %v5027_v18 = vpop.permute.xlu1 %2112 }
  0x7d   : > { %v5036_v19 = vpop.permute.xlu1 %2312 }
  0x81   : > { %v5043_v21 = vpop.permute.xlu1 %2534 }
  0x85   : > { %v5055_v23 = vpop.permute.xlu1 %2634 }
  0x87   : > { %v373_v11 = vpop.permute.xlu0 %372 }
  0x89   : > { %v5063_v25 = vpop.permute.xlu1 %715 }
  0x8b   : > { %v5038_v20 = vpop.permute.xlu0 %2212 }
  0x8d   : > { %v5074_v27 = vpop.permute.xlu1 %824 }
  0x8f   : > { %v5045_v22 = vpop.permute.xlu0 %2423 }
  0x93   : > { %v5057_v24 = vpop.permute.xlu0 %529 }
  0x97   : > { %v5065_v26 = vpop.permute.xlu0 %2719 }
  0x9b   : > { %v5076_v28 = vpop.permute.xlu0 %2817 }
  0xe8   : > { %v4945_v9 = vpop.f32.mrb[0].mxu1 }
  0xe9   : > { %v4947_v10 = vpop.f32.mrb[1].mxu1 }
  0xec   : > { %v461_v12 = vpop.f32.mrb[2].mxu1 }
  0xed   : > { %v462_v13 = vadd.f32 %v461_v12, %v373_v11  ;;  %v463_v14 = vpop.f32.mrb[3].mxu1 }
  0xee   : > { %v464_v16 = vadd.f32 %v463_v14, %v373_v11  ;;  %v2207_v11 = vrot.slane %v2199_v57, %v5117_v43  ;;  %v2307_v14 = vrot.slane %v2299_v60, %v5117_v43 }
  0xef   : > { %v4949_v15 = vmax.f32 %v462_v13, 0.0  ;;  %v2303_v13 = vrot.slane %v2299_v60, %v5107_v38 }
  0xf0   : > { %v4971_v17 = vmax.f32 %v464_v16, 0.0  ;;  %vm5204_vm2 = vcmp.eq.s32.totalorder %v2207_v11, 1  ;;  %vm5218_vm5 = vcmp.eq.s32.totalorder %v2307_v14, 1 }
  0xf1   : > { %692 = vrot.lane.b32.xlu0 %v4949_v15, %s6313_s26  ;;  %479 = vrot.lane.b32.xlu1 %v4949_v15, %s4786_s27  ;;  %vm5214_vm4 = vcmp.eq.s32.totalorder %v2303_v13, 1 }
  0xf5   : > { %2511 = vrot.lane.b32.xlu0 %v4949_v15, %s4787_s28  ;;  %505 = vrot.lane.b32.xlu1 %v4949_v15, %s4788_s29 }
  0xf9   : > { %801 = vrot.lane.b32.xlu0 %v4949_v15, %s4789_s30  ;;  %2400 = vrot.lane.b32.xlu1 %v4949_v15, %s4790_s11 }
  0xfd   : > { %988 = vrot.lane.b32.xlu0 %v4949_v15, %s4791_s12  ;;  %907 = vrot.lane.b32.xlu1 %v4932_v8, %s4792_s15 }
 0x101   : > { %2902 = vrot.lane.b32.xlu0 %v4949_v15, %s4793_s16  ;;  %1014 = vrot.lane.b32.xlu1 %v4932_v8, %s6311_s20  ;;  %s4796_s20 = smov 114  }
 0x105   : > { %475 = vrot.lane.b32.xlu0 %v4971_v17, %s4786_s27  ;;  %689 = vrot.lane.b32.xlu1 %v4971_v17, %s6313_s26  ;;  %s4798_s26 = smov 68  }
 0x109   : > { %2928 = vrot.lane.b32.xlu0 %v4889_v2, %s4795_s22  ;;  %1123 = vrot.lane.b32.xlu1 %v4932_v8, %s4774_s19  ;;  %s4799_s19 = smov 113   ;;  %s4800_s22 = smov 52  }
 0x10d   : > { %502 = vrot.lane.b32.xlu0 %v4971_v17, %s4788_s29  ;;  %1232 = vrot.lane.b32.xlu1 %v4932_v8, %s4776_s25  ;;  %s4801_s25 = smov 32  }
 0x111   : > { %3013 = vrot.lane.b32.xlu0 %v4949_v15, %s4796_s20  ;;  %1465 = vrot.lane.b32.xlu1 %v4949_v15, %s6315_s21  ;;  %s4802_s21 = smov 64  }
 0x115   : > { %3039 = vrot.lane.b32.xlu0 %v4889_v2, %s4798_s26  ;;  %1341 = vrot.lane.b32.xlu1 %v4932_v8, %s4775_s24  ;;  %s6316_s26 = smov 97  }
 0x119   : > { %1097 = vrot.lane.b32.xlu0 %v4949_v15, %s4799_s19  ;;  %3450 = vrot.lane.b32.xlu1 %v4889_v2, %s4800_s22  ;;  %s4804_s22 = smov 60  }
 0x11d   : > { %2397 = vrot.lane.b32.xlu0 %v4971_v17, %s4790_s11  ;;  %1656 = vrot.lane.b32.xlu1 %v4949_v15, %s4801_s25  ;;  %s4805_s11 = smov 111  }
 0x121   : > { %3139 = vrot.lane.b32.xlu0 %v4889_v2, %s4802_s21  ;;  %2508 = vrot.lane.b32.xlu1 %v4971_v17, %s4787_s28  ;;  %s4806_s21 = smov 56   ;;  %s4807_s28 = smov 31  }
 0x125   : > { %1206 = vrot.lane.b32.xlu0 %v4949_v15, %s4792_s15  ;;  %3646 = vrot.lane.b32.xlu1 %v4949_v15, %s6316_s26  ;;  %s4808_s26 = smov 110  }
 0x129   : > { %3239 = vrot.lane.b32.xlu0 %v4889_v2, %s4804_s22  ;;  %798 = vrot.lane.b32.xlu1 %v4971_v17, %s4789_s30  ;;  %s4810_s22 = smov 98  }
 0x12d   : > { %1315 = vrot.lane.b32.xlu0 %v4949_v15, %s4805_s11  ;;  %1679 = vrot.lane.b32.xlu1 %v4889_v2, %s4781_s18  ;;  %s4809_s18 = smov 34  }
 0x131   : > { %3339 = vrot.lane.b32.xlu0 %v4889_v2, %s4806_s21  ;;  %1767 = vrot.lane.b32.xlu1 %v4949_v15, %s4807_s28  ;;  %s4812_s21 = smov 44  }
 0x135   : > { %3424 = vrot.lane.b32.xlu0 %v4949_v15, %s4808_s26  ;;  %3757 = vrot.lane.b32.xlu1 %v4949_v15, %s4775_s24 }
 0x139   : > { %1489 = vrot.lane.b32.xlu0 %v4889_v2, %s4780_s17  ;;  %990 = vrot.lane.b32.xlu1 %v4971_v17, %s4791_s12  ;;  %s4811_s17 = smov 48  }
 0x13d   : > { %1440 = vrot.lane.b32.xlu0 %v4949_v15, %s4809_s18  ;;  %4101 = vrot.lane.b32.xlu1 %v4911_v5, %s4786_s27 }
 0x141   : > { %3535 = vrot.lane.b32.xlu0 %v4949_v15, %s4810_s22  ;;  %2904 = vrot.lane.b32.xlu1 %v4971_v17, %s4793_s16  ;;  %s6326_s16 = smov 116  }
 0x145   : > { %3561 = vrot.lane.b32.xlu0 %v4889_v2, %s4811_s17  ;;  %4130 = vrot.lane.b32.xlu1 %v4911_v5, %s4788_s29  ;;  %s6328_s17 = smov 33  }
 0x149   : > { %3672 = vrot.lane.b32.xlu0 %v4889_v2, %s4812_s21  ;;  %3015 = vrot.lane.b32.xlu1 %v4971_v17, %s4796_s20  ;;  %s6327_s20 = smov 15  }
 0x14d   : > { %4104 = vrot.lane.b32.xlu0 %v4905_v4, %s4786_s27  ;;  %1790 = vrot.lane.b32.xlu1 %v4889_v2, %s6326_s16  ;;  %s4813_s27 = smov 40   ;;  %s6362_s16 = smov 108  }
 0x151   : > { %4133 = vrot.lane.b32.xlu0 %v4905_v4, %s4788_s29  ;;  %1099 = vrot.lane.b32.xlu1 %v4971_v17, %s4799_s19  ;;  %s4814_s29 = smov 30  }
 0x155   : > { %4159 = vrot.lane.b32.xlu0 %v4911_v5, %s6327_s20  ;;  %4162 = vrot.lane.b32.xlu1 %v4905_v4, %s6327_s20  ;;  %s4815_s20 = smov 36  }
 0x159   : > { %3783 = vrot.lane.b32.xlu0 %v4889_v2, %s4813_s27  ;;  %1208 = vrot.lane.b32.xlu1 %v4971_v17, %s4792_s15 }
 0x15d   : > { %4191 = vrot.lane.b32.xlu0 %v4905_v4, %s4789_s30  ;;  %1878 = vrot.lane.b32.xlu1 %v4949_v15, %s4814_s29 }
 0x161   : > { %1462 = vrot.lane.b32.xlu0 %v4971_v17, %s6328_s17  ;;  %1317 = vrot.lane.b32.xlu1 %v4971_v17, %s4805_s11 }
 0x163   : > { %v5082_v29 = vpop.permute.xlu0 %692  ;;  %v480_v30 = vpop.permute.xlu1 %479 }
 0x165   : > { %4219 = vrot.lane.b32.xlu0 %v4911_v5, %s4791_s12  ;;  %4188 = vrot.lane.b32.xlu1 %v4911_v5, %s4789_s30 }
 0x167   : > { %v5088_v32 = vpop.permute.xlu0 %2511  ;;  %v5090_v33 = vpop.permute.xlu1 %505 }
 0x169   : > { %4248 = vrot.lane.b32.xlu0 %v4911_v5, %s4799_s19  ;;  %3426 = vrot.lane.b32.xlu1 %v4971_v17, %s4808_s26  ;;  %s4639_s26 = sshll.u32 %s6561_s14, 6 }
 0x16b   : > { %v5099_v36 = vpop.permute.xlu0 %801  ;;  %v5101_v37 = vpop.permute.xlu1 %2400 }
 0x16d   : > { %4275 = vrot.lane.b32.xlu0 %v4905_v4, %s4792_s15  ;;  %1437 = vrot.lane.b32.xlu1 %v4971_v17, %s4809_s18 }
 0x16f   : > { %v5109_v39 = vpop.permute.xlu0 %988  ;;  %v5111_v40 = vpop.permute.xlu1 %907 }
 0x171   : > { %3894 = vrot.lane.b32.xlu0 %v4889_v2, %s4815_s20  ;;  %3537 = vrot.lane.b32.xlu1 %v4971_v17, %s4810_s22  ;;  %s4816_s22 = smov 95  }
 0x173   : > { %v5132_v48 = vpop.permute.xlu0 %2902  ;;  %v5134_v49 = vpop.permute.xlu1 %1014 }
 0x175   : > { %4306 = vrot.lane.b32.xlu0 %v4911_v5, %s4805_s11  ;;  %3868 = vrot.lane.b32.xlu1 %v4949_v15, %s4816_s22 }
 0x177   : > { %v476_v54 = vpop.permute.xlu0 %475  ;;  %v690_v55 = vpop.permute.xlu1 %689 }
 0x178   : > { %v5152_v58 = vsel %vm6322_vm6, %v480_v30, %v476_v54  ;;  %v5155_v59 = vsel %vm6322_vm6, %v476_v54, %v480_v30  ;;  %v695_v56 = vsel %vm6319_vm11, %v5082_v29, %v690_v55  ;;  %v698_v57 = vsel %vm6319_vm11, %v690_v55, %v5082_v29 }
 0x179   : > { %v2110_v63 = vsel %vm5142_vm8, %v5155_v59, 0.0  ;;  %1653 = vrot.lane.b32.xlu0 %v4971_v17, %s4801_s25  ;;  %4217 = vrot.lane.b32.xlu1 %v4905_v4, %s4791_s12  ;;  %v2111_v31 = vsel %vm5158_vm9, %v5152_v58, 0.0  ;;  %s6333_s12 = smov 97   ;;  %v501_v6 = vsel %vm5208_vm3, %v5152_v58, 0.0  ;;  %vm5259_vm8 = vcmp.eq.s32.totalorder %v710_v50, 1 }
 0x17a   : > { %v2116_v12 = vrot.slane %v2110_v63, 4  ;;  %v2117_v35 = vrot.slane %v2111_v31, 4  ;;  %v2311_v11 = vsel %vm5218_vm5, %v695_v56, 0.0  ;;  %v2310_v31 = vsel %vm5214_vm4, %v698_v57, 0.0 }
 0x17b   : > { %v5176_v16 = vpop.permute.xlu0 %2928  ;;  %v5178_v30 = vpop.permute.xlu1 %1123  ;;  %vm2409_vm9 = vcmp.ne.f32.partialorder %v4562_v62, 0.0  ;;  %v4566_v58 = vld [vmem:[%s6301_s1 + $0x12] ss:$8 sm:$0x3]  ;;  %v2317_v42 = vrot.slane %v2311_v11, 4  ;;  %v2316_v44 = vrot.slane %v2310_v31, 4 }
 0x17c   : > { %4551 = vmatprep.subr.msk.mxu0 %vm6324_vm0, %v2117_v35  ;;  %v500_v35 = vsel %vm5250_vm7, %v5155_v59, 0.0  ;;  %v2410_v45 = vsel %vm2409_vm9, 1, %v4773_v3  ;;  %vm2520_vm10 = vcmp.ne.f32.partialorder %v4566_v58, 0.0  ;;  %vm2513_vm5 = vcmask 15360  }
 0x17d   : > { %3648 = vrot.lane.b32.xlu0 %v4971_v17, %s6333_s12  ;;  %4246 = vrot.lane.b32.xlu1 %v4905_v4, %s4799_s19  ;;  %v2414_v46 = vrot.slane %v2410_v45, %v5107_v38  ;;  %v2521_v47 = vsel %vm2520_vm10, 1, %v4773_v3  ;;  %vm6318_vm9 = vcmask 7168   ;;  %s6287_s12 = scalar_lea.vmem %s6310_s10, %s4639_s26 }
 0x17e   : > { %4552 = vmatpush1.msk.msra.mxu0 %vm6324_vm0, %v2116_v12 }
 0x17f   : > { %v503_v53 = vpop.permute.xlu0 %502  ;;  %v5223_v54 = vpop.permute.xlu1 %1232  ;;  %4553 = vmatmul.mubr.msk.f32.vlgmr.msra.gmra.mrb[0].mxu0 %vm6321_vm1, %v5027_v18 }
 0x180   : > { %v508_v60 = vsel %vm6320_vm12, %v5090_v33, %v503_v53  ;;  %v511_v61 = vsel %vm6320_vm12, %v503_v53, %v5090_v33  ;;  %2288 = vmatprep.mubr.f32.mxu0 %v4772_v0  ;;  %v4504_v53 = vld [vmem:[%s6301_s1 + $0x13] ss:$8 sm:$0x3] }
 0x181   : > { %v526_v63 = vsel %vm5192_vm13, %v511_v61, 0.0  ;;  %v527_v1 = vsel %vm5196_vm14, %v508_v60, 0.0  ;;  %v2210_v29 = vsel %vm5200_vm15, %v511_v61, 0.0  ;;  %v2211_v18 = vsel %vm5204_vm2, %v508_v60, 0.0  ;;  %1764 = vrot.lane.b32.xlu0 %v4971_v17, %s4807_s28  ;;  %1901 = vrot.lane.b32.xlu1 %v4889_v2, %s4792_s15 }
 0x182   : > { %v2217_v55 = vrot.slane %v2211_v18, 4  ;;  %4494 = vmatprep.subr.msk.mxu1 %vm6324_vm0, %v527_v1  ;;  %v2216_v12 = vrot.slane %v2210_v29, 4  ;;  %vm5301_vm13 = vcmp.eq.s32.totalorder %v706_v41, 1  ;;  %vm2402_vm14 = vcmask 113664  }
 0x183   : > { %v5265_v13 = vpop.permute.xlu0 %3013  ;;  %4495 = vmatpush1.msk.msra.mxu1 %vm6324_vm0, %v526_v63  ;;  %v5268_v14 = vpop.permute.xlu1 %1465  ;;  %v713_v52 = vsel %vm5301_vm13, %v698_v57, 0.0  ;;  %v4570_v60 = vld [vmem:[%s6301_s1 + $0x13] ss:$8 sm:$0x3]  ;;  %vm5335_vm15 = vcmp.eq.s32.totalorder %v2414_v46, 1  ;;  %v2529_v61 = vrot.slane %v2521_v47, %v5117_v43  ;;  %vm810_vm3 = vcmp.ne.f32.partialorder %v4504_v53, 0.0 }
 0x184   : > { %4496 = vmatmul.mubr.msk.f32.vlgmr.msra.gmra.mrb[4].mxu1 %vm6321_vm1, %v5057_v24  ;;  %4497 = vmatprep.subr.msk.mxu1 %vm6324_vm0, %v501_v6  ;;  %v714_v24 = vsel %vm5259_vm8, %v695_v56, 0.0  ;;  %v2525_v56 = vrot.slane %v2521_v47, %v5107_v38  ;;  %vm2620_vm4 = vcmp.ne.f32.partialorder %v4570_v60, 0.0  ;;  %v811_v6 = vsel %vm810_vm3, 1, %v4773_v3  ;;  %v4511_v57 = vld [vmem:[%s6301_s1 + $0x15] ss:$8 sm:$0x3] }
 0x185   : > { %4555 = vmatprep.subr.msk.mxu0 %vm6324_vm0, %v2217_v55  ;;  %3759 = vrot.lane.b32.xlu0 %v4971_v17, %s4775_s24  ;;  %s4817_s24 = smov 18   ;;  %vm5363_vm8 = vcmp.eq.s32.totalorder %v2529_v61, 1  ;;  %v4577_v61 = vld [vmem:[%s6301_s1 + $0x15] ss:$8 sm:$0x3] }
 0x186   : > { %4277 = vrot.lane.b32.xlu1 %v4911_v5, %s4792_s15  ;;  %4498 = vmatpush1.msk.msra.mxu1 %vm6324_vm0, %v500_v35  ;;  %vm5357_vm7 = vcmp.eq.s32.totalorder %v2525_v56, 1  ;;  %vm2803_vm3 = vcmp.ne.f32.partialorder %v4577_v61, 0.0 }
 0x187   : > { %4556 = vmatpush1.msk.msra.mxu0 %vm6324_vm0, %v2216_v12  ;;  %4501 = vmatprep.subr.msk.mxu1 %vm6324_vm0, %v714_v24  ;;  %v5293_v59 = vpop.permute.xlu0 %3039  ;;  %v5295_v34 = vpop.permute.xlu1 %1341  ;;  %v2621_v12 = vsel %vm2620_vm4, 1, %v4773_v3  ;;  %v815_v24 = vrot.slane %v811_v6, %v5107_v38 }
 0x188   : > { %4557 = vmatmul.mubr.msk.f32.vlgmr.msra.gmra.mrb[0].mxu0 %vm6321_vm1, %v5038_v20  ;;  %4559 = vmatprep.subr.msk.mxu0 %vm6324_vm0, %v2317_v42  ;;  %v2418_v20 = vrot.slane %v2410_v45, %v5117_v43  ;;  %v819_v42 = vrot.slane %v811_v6, %v5117_v43  ;;  %v2629_v45 = vrot.slane %v2621_v12, %v5117_v43 }
 0x189   : > { %4560 = vmatpush1.msk.msra.mxu0 %vm6324_vm0, %v2316_v44  ;;  %1875 = vrot.lane.b32.xlu0 %v4971_v17, %s4814_s29  ;;  %vm5403_vm10 = vcmp.eq.s32.totalorder %v815_v24, 1  ;;  %v2721_v24 = vrot.slane %v4949_v15, 4 }
 0x18a   : > { %1989 = vrot.lane.b32.xlu1 %v4949_v15, %s4817_s24  ;;  %682 = vmatprep.mubr.f32.mxu1 %v4772_v0  ;;  %vm5339_vm2 = vcmp.eq.s32.totalorder %v2418_v20, 1  ;;  %v363_v20 = vld [vmem:[%s6303_s3] sm:$0xff]  ;;  %vm5407_vm13 = vcmp.eq.s32.totalorder %v819_v42, 1 }
 0x18b   : > { %v5314_v50 = vpop.permute.xlu0 %1097  ;;  %v5316_v51 = vpop.permute.xlu1 %3450  ;;  %2388 = vmatprep.mubr.f32.mxu0 %v4772_v0 }
 0x18c   : > { %4499 = vmatmul.mubr.msk.f32.vlgmr.msra.gmra.mrb[4].mxu1 %vm6321_vm1, %v4932_v8 }
 0x18d   : > { %4502 = vmatpush1.msk.msra.mxu1 %vm6324_vm0, %v713_v52  ;;  %3870 = vrot.lane.b32.xlu0 %v4971_v17, %s4816_s22 }
 0x18e   : > { %4304 = vrot.lane.b32.xlu1 %v4905_v4, %s4805_s11  ;;  %789 = vmatprep.mubr.f32.mxu1 %v4772_v0  ;;  %s4818_s11 = smov 94  }
 0x18f   : > { %v2398_v62 = vpop.permute.xlu0 %2397  ;;  %v5345_v63 = vpop.permute.xlu1 %1656 }
 0x190   : > { %4561 = vmatmul.mubr.msk.f32.vlgmr.msra.gmra.mrb[0].mxu0 %vm6321_vm1, %v5036_v19  ;;  %v2403_v4 = vsel %vm2402_vm14, %v5101_v37, %v2398_v62  ;;  %v2406_v1 = vsel %vm2402_vm14, %v2398_v62, %v5101_v37  ;;  %v2722_v37 = vrot.slane %v4971_v17, 4 }
 0x191   : > { %v2421_v29 = vsel %vm5335_vm15, %v2406_v1, 0.0  ;;  %v2422_v18 = vsel %vm5339_vm2, %v2403_v4, 0.0  ;;  %1986 = vrot.lane.b32.xlu0 %v4971_v17, %s4817_s24  ;;  %2499 = vmatprep.mubr.f32.mxu0 %v4772_v0  ;;  %vm2631_vm15 = vcmp.eq.s32.totalorder %v2629_v45, 1  ;;  %vm1000_vm2 = vcmp.ne.f32.partialorder %v4511_v57, 0.0 }
 0x192   : > { %v2427_v19 = vrot.slane %v2421_v29, 4  ;;  %v2428_v55 = vrot.slane %v2422_v18, 4  ;;  %3979 = vrot.lane.b32.xlu1 %v4949_v15, %s4818_s11  ;;  %v1001_v6 = vsel %vm1000_vm2, 1, %v4773_v3  ;;  %v4585_v45 = vld [vmem:[%s6301_s1 + $0x17] ss:$8 sm:$0x3] }
 0x193   : > { %v5369_v7 = vpop.permute.xlu0 %3139  ;;  %v2509_v11 = vpop.permute.xlu1 %2508 }
 0x194   : > { %v2514_v31 = vsel %vm2513_vm5, %v5088_v32, %v2509_v11  ;;  %v2517_v58 = vsel %vm2513_vm5, %v2509_v11, %v5088_v32  ;;  %4503 = vmatmul.mubr.msk.f32.vlgmr.msra.gmra.mrb[4].mxu1 %vm6321_vm1, %v5063_v25  ;;  %4563 = vmatprep.subr.msk.mxu0 %vm6324_vm0, %v2428_v55  ;;  %v2625_v25 = vrot.slane %v2621_v12, %v5107_v38  ;;  %v4334_v55 = vld [vmem:[%s6309_s9] sm:$0xff]  ;;  %v2804_v12 = vsel %vm2803_vm3, 1, %v4773_v3 }
 0x195   : > { %v2532_v35 = vsel %vm5357_vm7, %v2517_v58, 0.0  ;;  %v2533_v41 = vsel %vm5363_vm8, %v2514_v31, 0.0  ;;  %3981 = vrot.lane.b32.xlu0 %v4971_v17, %s4818_s11  ;;  %4564 = vmatpush1.msk.msra.mxu0 %vm6324_vm0, %v2427_v19  ;;  %v1005_v31 = vrot.slane %v1001_v6, %v5107_v38  ;;  %v1009_v58 = vrot.slane %v1001_v6, %v5117_v43 }
 0x196   : > { %v2538_v32 = vrot.slane %v2532_v35, 4  ;;  %v2539_v44 = vrot.slane %v2533_v41, 4  ;;  %2012 = vrot.lane.b32.xlu1 %v4889_v2, %s6362_s16  ;;  %898 = vmatprep.mubr.f32.mxu1 %v4772_v0  ;;  %vm5411_vm14 = vcmp.eq.s32.totalorder %v2625_v25, 1  ;;  %v2808_v35 = vrot.slane %v2804_v12, %v5107_v38  ;;  %v4627_v25 = vld [vmem:[%s6301_s1 + $0x10] ss:$8 sm:$0x3] }
 0x197   : > { %v5390_v5 = vpop.permute.xlu0 %1206  ;;  %v5392_v46 = vpop.permute.xlu1 %3646  ;;  %v2812_v41 = vrot.slane %v2804_v12, %v5117_v43  ;;  %vm6317_vm5 = vcmask 1039360   ;;  %vm5488_vm7 = vcmp.eq.s32.totalorder %v1005_v31, 1  ;;  %vm5492_vm8 = vcmp.eq.s32.totalorder %v1009_v58, 1  ;;  %v4589_v12 = vld [vmem:[%s6301_s1 + $0x20] ss:$8 sm:$0x3] }
 0x198   : > { %4565 = vmatmul.mubr.msk.f32.vlgmr.msra.gmra.mrb[0].mxu0 %vm6321_vm1, %v5045_v22  ;;  %4567 = vmatprep.subr.msk.mxu0 %vm6324_vm0, %v2539_v44 }
 0x199   : > { %4005 = vrot.lane.b32.xlu0 %v4889_v2, %s4801_s25  ;;  %4568 = vmatpush1.msk.msra.mxu0 %vm6324_vm0, %v2538_v32  ;;  %v473_v2 = vld [vmem:[%s6305_s5] sm:$0xff] }
 0x19a   : > { %367 = vperm.xlu1 %4760, %v363_v20   ;;  %2610 = vmatprep.mubr.f32.mxu0 %v4772_v0 }
 0x19b   : > { %v5419_v22 = vpop.permute.xlu0 %3239  ;;  %v799_v56 = vpop.permute.xlu1 %798 }
 0x19c   : > { %v804_v60 = vsel %vm6318_vm9, %v5099_v36, %v799_v56  ;;  %v807_v8 = vsel %vm6318_vm9, %v799_v56, %v5099_v36 }
 0x19d   : > { %v822_v62 = vsel %vm5403_vm10, %v807_v8, 0.0  ;;  %v823_v4 = vsel %vm5407_vm13, %v804_v60, 0.0  ;;  %v2632_v1 = vsel %vm5411_vm14, %v807_v8, 0.0  ;;  %v2633_v29 = vsel %vm2631_vm15, %v804_v60, 0.0  ;;  %1426 = vperm.xlu0 %4759, %v473_v2  }
 0x19e   : > { %v2639_v36 = vrot.slane %v2633_v29, 4  ;;  %4505 = vmatprep.subr.msk.mxu1 %vm6324_vm0, %v823_v4  ;;  %v2638_v18 = vrot.slane %v2632_v1, 4  ;;  %vm2813_vm10 = vcmp.eq.s32.totalorder %v2808_v35, 1  ;;  %vm2814_vm13 = vcmp.eq.s32.totalorder %v2812_v41, 1 }
 0x19f   : > { %v5438_v33 = vpop.permute.xlu0 %1315  ;;  %4506 = vmatpush1.msk.msra.mxu1 %vm6324_vm0, %v822_v62  ;;  %v5441_v19 = vpop.permute.xlu1 %1679  ;;  %vm3025_vm14 = vcmp.ne.f32.partialorder %v4585_v45, 0.0  ;;  %vm2906_vm15 = vcmask 1031168   ;;  %v4519_v41 = vld [vmem:[%s6301_s1 + $0x21] ss:$8 sm:$0x3] }
 0x1a0   : > { %4569 = vmatmul.mubr.msk.f32.vlgmr.msra.gmra.mrb[0].mxu0 %vm6321_vm1, %v5043_v21  ;;  %4507 = vmatmul.mubr.msk.f32.vlgmr.msra.gmra.mrb[4].mxu1 %vm6321_vm1, %v5074_v27  ;;  %v1436_v21 = vld [vmem:[%s6307_s7] sm:$0xff]  ;;  %v3026_v29 = vsel %vm3025_vm14, 1, %v4773_v3 }
 0x1a1   : > { %4508 = vmatprep.subr.msk.mxu1 %vm6324_vm0, %v4971_v17  ;;  %4571 = vmatprep.subr.msk.mxu0 %vm6324_vm0, %v2639_v36  ;;  %v4581_v17 = vld [vmem:[%s6301_s1 + $0x16] ss:$8 sm:$0x3]  ;;  %v3030_v6 = vrot.slane %v3026_v29, %v5107_v38  ;;  %v3034_v35 = vrot.slane %v3026_v29, %v5117_v43 }
 0x1a2   : > { %4337 = vperm.xlu0 %4759, %v4334_v55   ;;  %4509 = vmatpush1.msk.msra.mxu1 %vm6324_vm0, %v4949_v15  ;;  %vm2914_vm4 = vcmp.ne.f32.partialorder %v4581_v17, 0.0 }
 0x1a3   : > { %4572 = vmatpush1.msk.msra.mxu0 %vm6324_vm0, %v2638_v18  ;;  %v5461_v27 = vpop.permute.xlu0 %3339  ;;  %v5463_v11 = vpop.permute.xlu1 %1767  ;;  %2710 = vmatprep.mubr.f32.mxu0 %v4772_v0  ;;  %v2915_v44 = vsel %vm2914_vm4, 1, %v4773_v3  ;;  %vm5573_vm14 = vcmp.eq.s32.totalorder %v3030_v6, 1 }
 0x1a4   : > { %4574 = vmatprep.subr.msk.mxu0 %vm6324_vm0, %v2722_v37  ;;  %979 = vmatprep.mubr.f32.mxu1 %v4772_v0  ;;  %v2919_v52 = vrot.slane %v2915_v44, %v5107_v38  ;;  %v2923_v53 = vrot.slane %v2915_v44, %v5117_v43 }
 0x1a5   : > { %4092 = vperm.xlu1 %4760, %v1436_v21   ;;  %v4626_v21 = vld [vmem:[%s6301_s1 + $0x7] ss:$8 sm:$0x3] }
 0x1a6   : > { %vm5523_vm2 = vcmp.eq.s32.totalorder %v2919_v52, 1  ;;  %vm5527_vm3 = vcmp.eq.s32.totalorder %v2923_v53, 1 }
 0x1a7   : > { %v5477_v42 = vpop.permute.xlu0 %3424  ;;  %v5479_v32 = vpop.permute.xlu1 %3757 }
 0x1a8   : > { %4573 = vmatmul.mubr.msk.f32.vlgmr.msra.gmra.mrb[0].mxu0 %vm6321_vm1, %v5055_v23  ;;  %4510 = vmatmul.mubr.msk.f32.vlgmr.msra.gmra.mrb[4].mxu1 %vm6321_vm1, %v5111_v40 }
 0x1a9   : > { %4575 = vmatpush1.msk.msra.mxu0 %vm6324_vm0, %v2721_v24  ;;  %2793 = vmatprep.mubr.f32.mxu0 %v4772_v0 }
 0x1aa   : > { %1088 = vmatprep.mubr.f32.mxu1 %v4772_v0 }
 0x1ab   : > { %v5497_v23 = vpop.permute.xlu0 %1489  ;;  %v991_v40 = vpop.permute.xlu1 %990 }
 0x1ac   : > { %v993_v20 = vsel %vm6317_vm5, %v5109_v39, %v991_v40  ;;  %v997_v47 = vsel %vm6317_vm5, %v991_v40, %v5109_v39 }
 0x1ad   : > { %v1012_v2 = vsel %vm5488_vm7, %v993_v20, 0.0  ;;  %v1013_v56 = vsel %vm5492_vm8, %v997_v47, 0.0  ;;  %v2815_v60 = vsel %vm2813_vm10, %v993_v20, 0.0  ;;  %v2816_v8 = vsel %vm2814_vm13, %v997_v47, 0.0 }
 0x1ae   : > { %v2821_v57 = vrot.slane %v2815_v60, 4  ;;  %v2822_v61 = vrot.slane %v2816_v8, 4  ;;  %4512 = vmatprep.subr.msk.mxu1 %vm6324_vm0, %v1013_v56  ;;  %vm4140_vm8 = vcmp.ne.f32.partialorder %v4626_v21, 0.0  ;;  %vm3125_vm10 = vcmp.ne.f32.partialorder %v4589_v12, 0.0 }
 0x1af   : > { %v5513_v62 = vpop.permute.xlu0 %1440  ;;  %4513 = vmatpush1.msk.msra.mxu1 %vm6324_vm0, %v1012_v2  ;;  %v5516_v39 = vpop.permute.xlu1 %4101  ;;  %vm3017_vm13 = vcmask 932864   ;;  %v3126_v47 = vsel %vm3125_vm10, 1, %v4773_v3  ;;  %v4593_v8 = vld [vmem:[%s6301_s1 + $0x21] ss:$8 sm:$0x3] }
 0x1b0   : > { %4576 = vmatmul.mubr.msk.f32.vlgmr.msra.gmra.mrb[0].mxu0 %vm6321_vm1, %v5065_v26  ;;  %4514 = vmatmul.mubr.msk.f32.vlgmr.msra.gmra.mrb[4].mxu1 %vm6321_vm1, %v5134_v49  ;;  %v4625_v26 = vld [vmem:[%s6301_s1 + $0x6] ss:$8 sm:$0x3]  ;;  %v4515_v49 = vld [vmem:[%s6301_s1 + $0x20] ss:$8 sm:$0x3]  ;;  %v3134_v12 = vrot.slane %v3126_v47, %v5117_v43 }
 0x1b1   : > { %4578 = vmatprep.subr.msk.mxu0 %vm6324_vm0, %v2822_v61  ;;  %2893 = vmatprep.mubr.f32.mxu0 %v4772_v0  ;;  %vm4111_vm4 = vcmp.ne.f32.partialorder %v4625_v26, 0.0  ;;  %vm1109_vm7 = vcmp.ne.f32.partialorder %v4515_v49, 0.0 }
 0x1b2   : > { %4579 = vmatpush1.msk.msra.mxu0 %vm6324_vm0, %v2821_v57  ;;  %1197 = vmatprep.mubr.f32.mxu1 %v4772_v0  ;;  %v4112_v15 = vsel %vm4111_vm4, 1, %v4773_v3  ;;  %v1110_v40 = vsel %vm1109_vm7, 1, %v4773_v3  ;;  %v4527_v57 = vld [vmem:[%s6301_s1 + $0x1] ss:$8 sm:$0x3]  ;;  %vm3225_vm4 = vcmp.ne.f32.partialorder %v4593_v8, 0.0 }
 0x1b3   : > { %v5541_v36 = vpop.permute.xlu0 %3535  ;;  %v2905_v18 = vpop.permute.xlu1 %2904  ;;  %v4116_v2 = vrot.slane %v4112_v15, %v5107_v38  ;;  %v4120_v56 = vrot.slane %v4112_v15, %v5117_v43  ;;  %v1114_v60 = vrot.slane %v1110_v40, %v5107_v38  ;;  %v1118_v1 = vrot.slane %v1110_v40, %v5117_v43 }
 0x1b4   : > { %v2907_v55 = vsel %vm2906_vm15, %v5132_v48, %v2905_v18  ;;  %v2911_v37 = vsel %vm2906_vm15, %v2905_v18, %v5132_v48  ;;  %vm1218_vm15 = vcmp.ne.f32.partialorder %v4519_v41, 0.0  ;;  %v3130_v18 = vrot.slane %v3126_v47, %v5107_v38 }
 0x1b5   : > { %v2926_v17 = vsel %vm5523_vm2, %v2907_v55, 0.0  ;;  %v2927_v31 = vsel %vm5527_vm3, %v2911_v37, 0.0  ;;  %vm5578_vm2 = vcmp.eq.s32.totalorder %v3034_v35, 1  ;;  %vm4169_vm3 = vcmp.ne.f32.partialorder %v4627_v25, 0.0 }
 0x1b6   : > { %v2932_v58 = vrot.slane %v2926_v17, 4  ;;  %v2933_v48 = vrot.slane %v2927_v31, 4  ;;  %v1219_v29 = vsel %vm1218_vm15, 1, %v4773_v3  ;;  %v4170_v55 = vsel %vm4169_vm3, 1, %v4773_v3 }
 0x1b7   : > { %v5560_v24 = vpop.permute.xlu0 %3561  ;;  %v5562_v44 = vpop.permute.xlu1 %4130  ;;  %vm1474_vm7 = vcmp.ne.f32.partialorder %v4527_v57, 0.0  ;;  %v1223_v17 = vrot.slane %v1219_v29, %v5107_v38  ;;  %v1227_v31 = vrot.slane %v1219_v29, %v5117_v43  ;;  %vm5624_vm10 = vcmp.eq.s32.totalorder %v4120_v56, 1 }
 0x1b8   : > { %4580 = vmatmul.mubr.msk.f32.vlgmr.msra.gmra.mrb[0].mxu0 %vm6321_vm1, %v5076_v28  ;;  %4582 = vmatprep.subr.msk.mxu0 %vm6324_vm0, %v2933_v48  ;;  %v4141_v28 = vsel %vm4140_vm8, 1, %v4773_v3  ;;  %v4597_v48 = vld [vmem:[%s6301_s1 + $0x22] ss:$8 sm:$0x3]  ;;  %vm5620_vm8 = vcmp.eq.s32.totalorder %v4116_v2, 1  ;;  %v4178_v45 = vrot.slane %v4170_v55, %v5117_v43  ;;  %v3226_v20 = vsel %vm3225_vm4, 1, %v4773_v3 }
 0x1b9   : > { %4583 = vmatpush1.msk.msra.mxu0 %vm6324_vm0, %v2932_v58  ;;  %3004 = vmatprep.mubr.f32.mxu0 %v4772_v0  ;;  %v4523_v58 = vld [vmem:[%s6301_s1 + $0x22] ss:$8 sm:$0x3]  ;;  %v4145_v25 = vrot.slane %v4141_v28, %v5107_v38  ;;  %v4149_v15 = vrot.slane %v4141_v28, %v5117_v43  ;;  %v1475_v47 = vsel %vm1474_vm7, 1, %v4773_v3  ;;  %vm5643_vm15 = vcmp.eq.s32.totalorder %v1118_v1, 1 }
 0x1ba   : > { %vm1327_vm3 = vcmp.ne.f32.partialorder %v4523_v58, 0.0  ;;  %vm3325_vm5 = vcmp.ne.f32.partialorder %v4597_v48, 0.0  ;;  %vm5651_vm9 = vcmp.eq.s32.totalorder %v3134_v12, 1  ;;  %vm5655_vm11 = vcmp.eq.s32.totalorder %v1223_v17, 1  ;;  %v4763_v12 = vld [vmem:[%s6306_s6] sm:$0xff] }
 0x1bb   : > { %v5584_v52 = vpop.permute.xlu0 %3672  ;;  %v3016_v53 = vpop.permute.xlu1 %3015  ;;  %vm5659_vm7 = vcmp.eq.s32.totalorder %v1227_v31, 1  ;;  %v3234_v1 = vrot.slane %v3226_v20, %v5117_v43  ;;  %v1479_v29 = vrot.slane %v1475_v47, %v5107_v38  ;;  %vm5671_vm4 = vcmp.eq.s32.totalorder %v4145_v25, 1  ;;  %v4601_v58 = vld [vmem:[%s6301_s1 + $0x23] ss:$8 sm:$0x3] }
 0x1bc   : > { %v3018_v61 = vsel %vm3017_vm13, %v5265_v13, %v3016_v53  ;;  %v3022_v4 = vsel %vm3017_vm13, %v3016_v53, %v5265_v13  ;;  %vm6323_vm13 = vcmask 924672   ;;  %vm5675_vm12 = vcmp.eq.s32.totalorder %v4149_v15, 1  ;;  %v1447_v28 = vld [vmem:[%s6301_s1] ss:$8 sm:$0x3] }
 0x1bd   : > { %v3037_v26 = vsel %vm5573_vm14, %v3018_v61, 0.0  ;;  %v3038_v49 = vsel %vm5578_vm2, %v3022_v4, 0.0  ;;  %vm5631_vm14 = vcmp.eq.s32.totalorder %v1114_v60, 1  ;;  %vm5647_vm2 = vcmp.eq.s32.totalorder %v3130_v18, 1 }
 0x1be   : > { %v3043_v37 = vrot.slane %v3037_v26, 4  ;;  %v3044_v6 = vrot.slane %v3038_v49, 4  ;;  %v3230_v4 = vrot.slane %v3226_v20, %v5107_v38  ;;  %v4628_v26 = vld [vmem:[%s6301_s1 + $0x13] ss:$8 sm:$0x3]  ;;  %vm5687_vm6 = vcmp.eq.s32.totalorder %v4178_v45, 1 }
 0x1bf   : > { %v4105_v21 = vpop.permute.xlu0 %4104  ;;  %v5607_v13 = vpop.permute.xlu1 %1790  ;;  %v5693_v17 = vsel %vm1327_vm3, 1, %v4773_v3  ;;  %v5697_v31 = vsel %vm3325_vm5, 1, %v4773_v3  ;;  %v1483_v40 = vrot.slane %v1475_v47, %v5117_v43  ;;  %vm4198_vm5 = vcmp.ne.f32.partialorder %v4628_v26, 0.0 }
 0x1c0   : > { %4584 = vmatmul.mubr.msk.f32.vlgmr.msra.gmra.mrb[0].mxu0 %vm6321_vm1, %v5176_v16  ;;  %4586 = vmatprep.subr.msk.mxu0 %vm6324_vm0, %v3044_v6  ;;  %v4174_v16 = vrot.slane %v4170_v55, %v5107_v38  ;;  %vm5724_vm3 = vcmp.eq.s32.totalorder %v3234_v1, 1  ;;  %v4199_v1 = vsel %vm4198_vm5, 1, %v4773_v3  ;;  %vm6419_vm5 = vcmask 121856   ;;  %v4629_v6 = vld [vmem:[%s6301_s1 + $0x15] ss:$8 sm:$0x3] }
 0x1c1   : > { %4587 = vmatpush1.msk.msra.mxu0 %vm6324_vm0, %v3043_v37  ;;  %3115 = vmatprep.mubr.f32.mxu0 %v4772_v0 }
 0x1c2   : > { %vm5683_vm1 = vcmp.eq.s32.totalorder %v4174_v16, 1 }
 0x1c3   : > { %v4134_v2 = vpop.permute.xlu0 %4133  ;;  %v1100_v60 = vpop.permute.xlu1 %1099 }
 0x1c4   : > { %v1102_v61 = vsel %vm6323_vm13, %v5314_v50, %v1100_v60  ;;  %v1106_v55 = vsel %vm6323_vm13, %v1100_v60, %v5314_v50 }
 0x1c5   : > { %v1121_v37 = vsel %vm5631_vm14, %v1102_v61, 0.0  ;;  %v1122_v50 = vsel %vm5643_vm15, %v1106_v55, 0.0  ;;  %v3137_v25 = vsel %vm5647_vm2, %v1102_v61, 0.0  ;;  %v3138_v15 = vsel %vm5651_vm9, %v1106_v55, 0.0 }
 0x1c6   : > { %v3143_v16 = vrot.slane %v3137_v25, 4  ;;  %v3144_v45 = vrot.slane %v3138_v15, 4  ;;  %4516 = vmatprep.subr.msk.mxu1 %vm6324_vm0, %v1122_v50  ;;  %vm6405_vm14 = vcmask 138240   ;;  %vm6407_vm15 = vcmask 31744  }
 0x1c7   : > { %v4160_v48 = vpop.permute.xlu0 %4159  ;;  %v4163_v20 = vpop.permute.xlu1 %4162  ;;  %v4106_v53 = vsel %vm6405_vm14, %v4105_v21, %v5516_v39  ;;  %vm6406_vm9 = vmmov %vm6405_vm14  ;;  %4517 = vmatpush1.msk.msra.mxu1 %vm6324_vm0, %v1121_v37  ;;  %vm5720_vm2 = vcmp.eq.s32.totalorder %v3230_v4, 1  ;;  %v6413_v61 = vmov 0  ;;  %v3334_v4 = vrot.slane %v5697_v31, %v5117_v43 }
 0x1c8   : > { %v4109_v47 = vsel %vm6406_vm9, %v5516_v39, %v4105_v21  ;;  %4588 = vmatmul.mubr.msk.f32.vlgmr.msra.gmra.mrb[0].mxu0 %vm6407_vm15, %v5293_v59  ;;  %vm6412_vm13 = vmmov %vm6407_vm15  ;;  %4590 = vmatprep.subr.msk.mxu0 %vm6324_vm0, %v3144_v45  ;;  %v1332_v39 = vrot.slane %v5693_v17, %v5107_v38  ;;  %v1336_v59 = vrot.slane %v5693_v17, %v5117_v43  ;;  %vm5739_vm9 = vcmp.eq.s32.totalorder %v1479_v29, 1 }
 0x1c9   : > { %4518 = vmatmul.mubr.msk.f32.vlgmr.msra.gmra.mrb[4].mxu1 %vm6412_vm13, %v5178_v30  ;;  %v3330_v21 = vrot.slane %v5697_v31, %v5107_v38  ;;  %4591 = vmatpush1.msk.msra.mxu0 %vm6324_vm0, %v3143_v16  ;;  %v6414_v61 = vsel %vm5739_vm9, 4294967295, %v6413_v61  ;;  %vm5743_vm13 = vcmp.eq.s32.totalorder %v1483_v40, 1  ;;  %vm3436_vm15 = vcmp.ne.f32.partialorder %v4601_v58, 0.0  ;;  %vm6420_vm14 = vmmov %vm6419_vm5 }
 0x1ca   : > { %3215 = vmatprep.mubr.f32.mxu0 %v4772_v0  ;;  %v4123_v55 = vsel %vm5620_vm8, %v4109_v47, -inf  ;;  %v4124_v29 = vsel %vm5624_vm10, %v4106_v53, -inf  ;;  %vm6417_vm0 = vcmask 130048   ;;  %1306 = vmatprep.mubr.f32.mxu1 %v4772_v0  ;;  %v4164_v26 = vsel %vm6419_vm5, %v4163_v20, %v4160_v48 }
 0x1cb   : > { %v4135_v37 = vsel %vm6417_vm0, %v4134_v2, %v5562_v44  ;;  %vm6418_vm9 = vmmov %vm6417_vm0  ;;  %v5759_v50 = vpop.permute.xlu0 %3783  ;;  %v1209_v31 = vpop.permute.xlu1 %1208  ;;  %v4167_v25 = vsel %vm6420_vm14, %v4160_v48, %v4163_v20  ;;  %vm6421_vm8 = vcmask 916480   ;;  %vm6423_vm0 = vcmask 1043456  }
 0x1cc   : > { %v4138_v17 = vsel %vm6418_vm9, %v5562_v44, %v4134_v2  ;;  %v1211_v35 = vsel %vm6421_vm8, %v5390_v5, %v1209_v31  ;;  %vm6422_vm10 = vmmov %vm6421_vm8  ;;  %v4203_v48 = vrot.slane %v4199_v1, %v5107_v38  ;;  %v4127_v20 = vcombine.low %v4123_v55, %v4124_v29 }
 0x1cd   : > { %v1215_v41 = vsel %vm6422_vm10, %v1209_v31, %v5390_v5  ;;  %v1230_v15 = vsel %vm5655_vm11, %v1211_v35, 0.0  ;;  %v3237_v2 = vsel %vm5720_vm2, %v1211_v35, 0.0  ;;  %v4207_v5 = vrot.slane %v4199_v1, %v5117_v43  ;;  %vm6424_vm11 = vmmov %vm6423_vm0 }
 0x1ce   : > { %v1231_v44 = vsel %vm5659_vm7, %v1215_v41, 0.0  ;;  %v3238_v40 = vsel %vm5724_vm3, %v1215_v41, 0.0  ;;  %v3243_v16 = vrot.slane %v3237_v2, 4  ;;  %vm6325_vm7 = vcmask 908288   ;;  %vm6427_vm14 = vmmov %vm6423_vm0 }
 0x1cf   : > { %v3244_v45 = vrot.slane %v3238_v40, 4  ;;  %4520 = vmatprep.subr.msk.mxu1 %vm6423_vm0, %v1231_v44  ;;  %v4192_v8 = vpop.permute.xlu0 %4191  ;;  %v5780_v57 = vpop.permute.xlu1 %1878  ;;  %v5784_v53 = vsel %vm3436_vm15, 1, %v4773_v3  ;;  %vm6425_vm2 = vcmp.ne.f32.partialorder %v1447_v28, 0.0  ;;  %v4152_v56 = vsel %vm5671_vm4, %v4138_v17, -inf  ;;  %vm6429_vm15 = vmmov %vm6423_vm0 }
 0x1d0   : > { %4521 = vmatpush1.msk.msra.mxu1 %vm6424_vm11, %v1230_v15  ;;  %v5788_v47 = vsel %vm6425_vm2, 1, %v4773_v3  ;;  %v4153_v60 = vsel %vm5675_vm12, %v4135_v37, -inf  ;;  %v4181_v1 = vsel %vm5683_vm1, %v4167_v25, -inf  ;;  %v4182_v55 = vsel %vm5687_vm6, %v4164_v26, -inf  ;;  %vm6445_vm2 = vmmov %vm6427_vm14 }
 0x1d1   : > { %vm6426_vm3 = vcmask 31744   ;;  %4594 = vmatprep.subr.msk.mxu0 %vm6427_vm14, %v3244_v45  ;;  %vm5804_vm4 = vcmp.eq.s32.totalorder %v1332_v39, 1  ;;  %vm5808_vm12 = vcmp.eq.s32.totalorder %v1336_v59, 1  ;;  %vm5812_vm1 = vcmp.eq.s32.totalorder %v3330_v21, 1  ;;  %v4762_v39 = vld [vmem:[%s4902_s23] sm:$0xff] }
 0x1d2   : > { %4592 = vmatmul.mubr.msk.f32.vlgmr.msra.gmra.mrb[0].mxu0 %vm6426_vm3, %v5369_v7  ;;  %vm6428_vm9 = vmmov %vm6426_vm3  ;;  %vm5816_vm6 = vcmp.eq.s32.totalorder %v3334_v4, 1  ;;  %vm5822_vm5 = vcmp.eq.s32.totalorder %v4203_v48, 1  ;;  %vm5826_vm8 = vcmp.eq.s32.totalorder %v4207_v5, 1  ;;  %v3441_v58 = vrot.slane %v5784_v53, %v5107_v38  ;;  %v4605_v41 = vld [vmem:[%s6301_s1 + $0x24] ss:$8 sm:$0x3] }
 0x1d3   : > { %4522 = vmatmul.mubr.msk.f32.vlgmr.msra.gmra.mrb[4].mxu1 %vm6428_vm9, %v5223_v54  ;;  %4595 = vmatpush1.msk.msra.mxu0 %vm6429_vm15, %v3243_v16  ;;  %v3445_v28 = vrot.slane %v5784_v53, %v5117_v43  ;;  %v4129_v59 = vmax.f32 %v4762_v39, %v4127_v20  ;;  %v4156_v21 = vcombine.low %v4152_v56, %v4153_v60  ;;  %v1463_v29 = vpop.permute.xlu0 %1462  ;;  %v1318_v37 = vpop.permute.xlu1 %1317  ;;  %vm6442_vm10 = vcmask 269312   ;;  %vm6447_vm14 = vmmov %vm6428_vm9 }
 0x1d4   : > { %3315 = vmatprep.mubr.f32.mxu0 %v4772_v0  ;;  %1415 = vmatprep.mubr.f32.mxu1 %v4772_v0  ;;  %v4185_v4 = vcombine.low %v4181_v1, %v4182_v55  ;;  %v1453_v17 = vrot.slane %v5788_v47, %v5107_v38  ;;  %v1468_v31 = vsel %vm6442_vm10, %v5268_v14, %v1463_v29  ;;  %vm6443_vm0 = vmmov %vm6442_vm10  ;;  %vm3547_vm3 = vcmp.ne.f32.partialorder %v4605_v41, 0.0 }
 0x1d5   : > { %v1471_v26 = vsel %vm6443_vm0, %v1463_v29, %v5268_v14  ;;  %v1320_v25 = vsel %vm6325_vm7, %v5438_v33, %v1318_v37  ;;  %v1324_v35 = vsel %vm6325_vm7, %v1318_v37, %v5438_v33  ;;  %vm6444_vm11 = vnez %v6414_v61  ;;  %vm6455_vm0 = vmmov %vm6445_vm2 }
 0x1d6   : > { %v1486_v15 = vsel %vm6444_vm11, %v1471_v26, 0.0  ;;  %v1487_v44 = vsel %vm5743_vm13, %v1468_v31, 0.0  ;;  %v1339_v2 = vsel %vm5804_vm4, %v1320_v25, 0.0  ;;  %v1340_v14 = vsel %vm5808_vm12, %v1324_v35, 0.0  ;;  %vm6446_vm13 = vmmov %vm6445_vm2 }
 0x1d7   : > { %v1493_v40 = vrot.slane %v1486_v15, 4  ;;  %v1494_v16 = vrot.slane %v1487_v44, 4  ;;  %v3337_v33 = vsel %vm5812_vm1, %v1320_v25, 0.0  ;;  %v3338_v45 = vsel %vm5816_vm6, %v1324_v35, 0.0  ;;  %4524 = vmatprep.subr.msk.mxu1 %vm6445_vm2, %v1340_v14  ;;  %v5861_v30 = vpop.permute.xlu0 %4219  ;;  %v4189_v5 = vpop.permute.xlu1 %4188  ;;  %vm6450_vm4 = vmmov %vm6445_vm2 }
 0x1d8   : > { %v3343_v61 = vrot.slane %v3337_v33, 4  ;;  %v3344_v48 = vrot.slane %v3338_v45, 4  ;;  %4525 = vmatpush1.msk.msra.mxu1 %vm6446_vm13, %v1339_v2  ;;  %v1457_v20 = vrot.slane %v5788_v47, %v5117_v43  ;;  %v4158_v53 = vmax.f32 %v4129_v59, %v4156_v21  ;;  %vm6451_vm1 = vmmov %vm6447_vm14  ;;  %v4630_v2 = vld [vmem:[%s6301_s1 + $0x20] ss:$8 sm:$0x3] }
 0x1d9   : > { %vm6448_vm9 = vcmask 7168   ;;  %4528 = vmatprep.subr.msk.mxu1 %vm6450_vm4, %v1494_v16  ;;  %vm3428_vm12 = vcmask 900096   ;;  %vm6452_vm6 = vmmov %vm6445_vm2  ;;  %vm5878_vm10 = vcmp.eq.s32.totalorder %v3441_v58, 1  ;;  %vm1442_vm11 = vcmask 277504  }
 0x1da   : > { %4596 = vmatmul.mubr.msk.f32.vlgmr.msra.gmra.mrb[0].mxu0 %vm6447_vm14, %v5419_v22  ;;  %v4193_v56 = vsel %vm6448_vm9, %v4192_v8, %v4189_v5  ;;  %vm6449_vm15 = vmmov %vm6448_vm9  ;;  %4598 = vmatprep.subr.msk.mxu0 %vm6452_vm6, %v3344_v48  ;;  %v4187_v47 = vmax.f32 %v4158_v53, %v4185_v4  ;;  %vm5900_vm2 = vcmp.eq.s32.totalorder %v1453_v17, 1  ;;  %vm5904_vm13 = vcmp.eq.s32.totalorder %v1457_v20, 1  ;;  %v4538_v17 = vld [vmem:[%s6301_s1 + $0x3] ss:$8 sm:$0x3] }
 0x1db   : > { %v4196_v60 = vsel %vm6449_vm15, %v4189_v5, %v4192_v8  ;;  %v4211_v55 = vsel %vm5826_vm8, %v4193_v56, -inf  ;;  %4526 = vmatmul.mubr.msk.f32.vlgmr.msra.gmra.mrb[4].mxu1 %vm6451_vm1, %v5295_v34  ;;  %v4534_v8 = vld [vmem:[%s6301_s1 + $0x2] ss:$8 sm:$0x3]  ;;  %vm5887_vm8 = vcmp.eq.s32.totalorder %v3445_v28, 1  ;;  %v3548_v34 = vsel %vm3547_vm3, 1, %v4773_v3  ;;  %v5896_v7 = vpop.permute.xlu0 %4248  ;;  %v3427_v54 = vpop.permute.xlu1 %3426  ;;  %3415 = vmatprep.mubr.f32.mxu0 %v4772_v0  ;;  %vm6463_vm14 = vmmov %vm6451_vm1 }
 0x1dc   : > { %v4210_v1 = vsel %vm5822_vm5, %v4196_v60, -inf  ;;  %4529 = vmatpush1.msk.msra.mxu1 %vm6455_vm0, %v1493_v40  ;;  %vm6456_vm5 = vmmov %vm6455_vm0  ;;  %1565 = vmatprep.mubr.f32.mxu1 %v4772_v0  ;;  %v4609_v28 = vld [vmem:[%s6301_s1 + $0x25] ss:$8 sm:$0x3]  ;;  %v3429_v59 = vsel %vm3428_vm12, %v5477_v42, %v3427_v54  ;;  %v3433_v21 = vsel %vm3428_vm12, %v3427_v54, %v5477_v42  ;;  %vm1665_vm3 = vcmp.ne.f32.partialorder %v4534_v8, 0.0 }
 0x1dd   : > { %v4214_v49 = vcombine.low %v4210_v1, %v4211_v55  ;;  %4599 = vmatpush1.msk.msra.mxu0 %vm6456_vm5, %v3343_v61  ;;  %v3448_v4 = vsel %vm5878_vm10, %v3429_v59, 0.0  ;;  %v3449_v29 = vsel %vm5887_vm8, %v3433_v21, 0.0  ;;  %v3552_v37 = vrot.slane %v3548_v34, %v5107_v38  ;;  %vm6464_vm12 = vmmov %vm6451_vm1  ;;  %v4613_v48 = vld [vmem:[%s6301_s1 + $0x26] ss:$8 sm:$0x3] }
 0x1de   : > { %vm4227_vm9 = vcmp.ne.f32.partialorder %v4629_v6, 0.0  ;;  %v3454_v31 = vrot.slane %v3448_v4, 4  ;;  %v3455_v26 = vrot.slane %v3449_v29, 4  ;;  %v3556_v42 = vrot.slane %v3548_v34, %v5117_v43  ;;  %vm6465_vm1 = vmmov %vm6455_vm0  ;;  %v4542_v34 = vld [vmem:[%s6301_s1 + $0x4] ss:$8 sm:$0x3] }
 0x1df   : > { %v5911_v39 = vmax.f32 %v4187_v47, %v4214_v49  ;;  %4530 = vmatmul.mubr.msk.f32.vlgmr.msra.gmra.mrb[6].mxu1 %vm6463_vm14, %v5497_v23  ;;  %vm3658_vm15 = vcmp.ne.f32.partialorder %v4609_v28, 0.0  ;;  %v5929_v25 = vpop.permute.xlu0 %4275  ;;  %v1438_v35 = vpop.permute.xlu1 %1437  ;;  %vm3539_vm4 = vcmask 801792   ;;  %v1666_v23 = vsel %vm1665_vm3, 1, %v4773_v3  ;;  %vm6466_vm10 = vmmov %vm6455_vm0  ;;  %v4631_v47 = vld [vmem:[%s6301_s1 + $0x21] ss:$8 sm:$0x3] }
 0x1e0   : > { %1646 = vmatprep.mubr.f32.mxu1 %v4772_v0  ;;  %v1443_v41 = vsel %vm1442_vm11, %v5513_v62, %v1438_v35  ;;  %v1446_v15 = vsel %vm1442_vm11, %v1438_v35, %v5513_v62  ;;  %4602 = vmatprep.subr.msk.mxu0 %vm6465_vm1, %v3455_v26  ;;  %v4228_v44 = vsel %vm4227_vm9, 1, %v4773_v3  ;;  %vm1776_vm6 = vcmp.ne.f32.partialorder %v4538_v17, 0.0  ;;  %vm6471_vm11 = vmmov %vm6465_vm1 }
 0x1e1   : > { %v1460_v14 = vsel %vm5900_vm2, %v1446_v15, 0.0  ;;  %vm5948_vm0 = vcmp.eq.s32.totalorder %v3552_v37, 1  ;;  %v3659_v62 = vsel %vm3658_vm15, 1, %v4773_v3  ;;  %vm5955_vm5 = vcmp.eq.s32.totalorder %v3556_v42, 1  ;;  %vm6472_vm2 = vmmov %vm6465_vm1 }
 0x1e2   : > { %4600 = vmatmul.mubr.msk.f32.vlgmr.msra.gmra.mrb[0].mxu0 %vm6464_vm12, %v5461_v27  ;;  %v1461_v27 = vsel %vm5904_vm13, %v1443_v41, 0.0  ;;  %v1574_v16 = vrot.slane %v1460_v14, 4  ;;  %v1670_v61 = vrot.slane %v1666_v23, %v5107_v38  ;;  %v1674_v53 = vrot.slane %v1666_v23, %v5117_v43  ;;  %vm6473_vm3 = vmmov %vm6464_vm12 }
 0x1e3   : > { %4603 = vmatpush1.msk.msra.mxu0 %vm6466_vm10, %v3454_v31  ;;  %3526 = vmatprep.mubr.f32.mxu0 %v4772_v0  ;;  %v1575_v33 = vrot.slane %v1461_v27, 4  ;;  %v5963_v5 = vpop.permute.xlu0 %3894  ;;  %v3538_v20 = vpop.permute.xlu1 %3537  ;;  %v4232_v56 = vrot.slane %v4228_v44, %v5107_v38  ;;  %vm4256_vm8 = vcmp.ne.f32.partialorder %v4630_v2, 0.0  ;;  %v1777_v60 = vsel %vm1776_vm6, 1, %v4773_v3  ;;  %vm6479_vm12 = vmmov %vm6465_vm1 }
 0x1e4   : > { %v3540_v1 = vsel %vm3539_vm4, %v5541_v36, %v3538_v20  ;;  %v3544_v55 = vsel %vm3539_vm4, %v3538_v20, %v5541_v36  ;;  %v4236_v22 = vrot.slane %v4228_v44, %v5117_v43  ;;  %v3663_v8 = vrot.slane %v3659_v62, %v5107_v38  ;;  %vm6478_vm4 = vmmov %vm6473_vm3 }
 0x1e5   : > { %4531 = vmatprep.subr.msk.mxu1 %vm6471_vm11, %v1575_v33  ;;  %v3559_v49 = vsel %vm5948_vm0, %v3540_v1, 0.0  ;;  %v3560_v18 = vsel %vm5955_vm5, %v3544_v55, 0.0  ;;  %v3667_v36 = vrot.slane %v3659_v62, %v5117_v43  ;;  %vm3769_vm13 = vcmp.ne.f32.partialorder %v4613_v48, 0.0  ;;  %vm6482_vm0 = vmmov %vm6472_vm2 }
 0x1e6   : > { %4532 = vmatpush1.msk.msra.mxu1 %vm6472_vm2, %v1574_v16  ;;  %v3565_v6 = vrot.slane %v3559_v49, 4  ;;  %v3566_v54 = vrot.slane %v3560_v18, 4  ;;  %v4257_v58 = vsel %vm4256_vm8, 1, %v4773_v3  ;;  %v1781_v28 = vrot.slane %v1777_v60, %v5107_v38 }
 0x1e7   : > { %4533 = vmatmul.mubr.msk.f32.vlgmr.msra.gmra.mrb[6].mxu1 %vm6473_vm3, %v4763_v12  ;;  %v5995_v59 = vpop.permute.xlu0 %4306  ;;  %v5997_v21 = vpop.permute.xlu1 %3868  ;;  %vm1658_vm14 = vcmask 261120   ;;  %vm5999_vm9 = vcmp.eq.s32.totalorder %v1670_v61, 1  ;;  %vm6003_vm15 = vcmp.eq.s32.totalorder %v1674_v53, 1  ;;  %v1785_v37 = vrot.slane %v1777_v60, %v5117_v43  ;;  %v4617_v61 = vld [vmem:[%s6301_s1 + $0x27] ss:$8 sm:$0x3] }
 0x1e8   : > { %1755 = vmatprep.mubr.f32.mxu1 %v4772_v0  ;;  %4606 = vmatprep.subr.msk.mxu0 %vm6479_vm12, %v3566_v54  ;;  %vm6012_vm1 = vcmp.eq.s32.totalorder %v4232_v56, 1  ;;  %v3770_v31 = vsel %vm3769_vm13, 1, %v4773_v3  ;;  %vm4285_vm6 = vcmp.ne.f32.partialorder %v4631_v47, 0.0  ;;  %vm1887_vm10 = vcmp.ne.f32.partialorder %v4542_v34, 0.0 }
 0x1e9   : > { %vm6019_vm5 = vcmp.eq.s32.totalorder %v4236_v22, 1  ;;  %vm3650_vm8 = vcmask 793600   ;;  %v4265_v42 = vrot.slane %v4257_v58, %v5117_v43  ;;  %vm6026_vm11 = vcmp.eq.s32.totalorder %v3663_v8, 1  ;;  %v4632_v8 = vld [vmem:[%s6301_s1 + $0x22] ss:$8 sm:$0x3] }
 0x1ea   : > { %4604 = vmatmul.mubr.msk.f32.vlgmr.msra.gmra.mrb[0].mxu0 %vm6478_vm4, %v5316_v51  ;;  %v4261_v51 = vrot.slane %v4257_v58, %v5107_v38  ;;  %vm6030_vm2 = vcmp.eq.s32.totalorder %v3667_v36, 1  ;;  %vm1769_vm13 = vcmask 252928   ;;  %vm6034_vm3 = vcmp.eq.s32.totalorder %v1781_v28, 1  ;;  %v4546_v28 = vld [vmem:[%s6301_s1 + $0x5] ss:$8 sm:$0x3] }
 0x1eb   : > { %4607 = vmatpush1.msk.msra.mxu0 %vm6482_vm0, %v3565_v6  ;;  %3637 = vmatprep.mubr.f32.mxu0 %v4772_v0  ;;  %v1654_v15 = vpop.permute.xlu0 %1653  ;;  %v4218_v44 = vpop.permute.xlu1 %4217  ;;  %vm6038_vm4 = vcmp.eq.s32.totalorder %v1785_v37, 1  ;;  %v3774_v14 = vrot.slane %v3770_v31, %v5107_v38  ;;  %v4286_v27 = vsel %vm4285_vm6, 1, %v4773_v3  ;;  %v6047_v40 = vsel %vm1887_vm10, 1, %v4773_v3 }
 0x1ec   : > { %v1659_v62 = vsel %vm1658_vm14, %v5345_v63, %v1654_v15  ;;  %v1662_v16 = vsel %vm1658_vm14, %v1654_v15, %v5345_v63  ;;  %vm6493_vm12 = vcmask 1039360   ;;  %vm6068_vm14 = vcmp.eq.s32.totalorder %v4261_v51, 1 }
 0x1ed   : > { %v4221_v33 = vsel %vm6493_vm12, %v4218_v44, %v5861_v30  ;;  %vm6494_vm0 = vmmov %vm6493_vm12  ;;  %v1677_v48 = vsel %vm5999_vm9, %v1662_v16, 0.0  ;;  %v1678_v20 = vsel %vm6003_vm15, %v1659_v62, 0.0  ;;  %vm6072_vm6 = vcmp.eq.s32.totalorder %v4265_v42, 1 }
 0x1ee   : > { %v4225_v45 = vsel %vm6494_vm0, %v5861_v30, %v4218_v44  ;;  %v4239_v53 = vsel %vm6012_vm1, %v4221_v33, -inf  ;;  %v1683_v60 = vrot.slane %v1677_v48, 4  ;;  %v1684_v1 = vrot.slane %v1678_v20, 4 }
 0x1ef   : > { %v4240_v63 = vsel %vm6019_vm5, %v4225_v45, -inf  ;;  %v3778_v22 = vrot.slane %v3770_v31, %v5117_v43  ;;  %v3649_v47 = vpop.permute.xlu0 %3648  ;;  %v4247_v49 = vpop.permute.xlu1 %4246  ;;  %v4290_v18 = vrot.slane %v4286_v27, %v5107_v38  ;;  %v4294_v36 = vrot.slane %v4286_v27, %v5117_v43 }
 0x1f0   : > { %v6076_v55 = vcombine.low %v4239_v53, %v4240_v63  ;;  %v1892_v34 = vrot.slane %v6047_v40, %v5107_v38  ;;  %vm6499_vm15 = vcmask 31744   ;;  %v3651_v54 = vsel %vm3650_vm8, %v5392_v46, %v3649_v47 }
 0x1f1   : > { %v3655_v12 = vsel %vm3650_vm8, %v3649_v47, %v5392_v46  ;;  %vm6094_vm1 = vcmp.eq.s32.totalorder %v3774_v14, 1  ;;  %v3670_v4 = vsel %vm6026_vm11, %v3651_v54, 0.0  ;;  %vm6502_vm10 = vcmask 1043456   ;;  %v4621_v14 = vld [vmem:[%s6301_s1 + $0x30] ss:$8 sm:$0x3] }
 0x1f2   : > { %v4245_v6 = vmax.f32 %v5911_v39, %v6076_v55  ;;  %4608 = vmatmul.mubr.msk.f32.vlgmr.msra.gmra.mrb[0].mxu0 %vm6499_vm15, %v5560_v24  ;;  %v3671_v24 = vsel %vm6030_vm2, %v3655_v12, 0.0  ;;  %4535 = vmatprep.subr.msk.mxu1 %vm6502_vm10, %v1684_v1  ;;  %vm3880_vm8 = vcmp.ne.f32.partialorder %v4617_v61, 0.0  ;;  %vm4314_vm12 = vcmp.ne.f32.partialorder %v4632_v8, 0.0  ;;  %vm6503_vm0 = vmmov %vm6502_vm10 }
 0x1f3   : > { %3748 = vmatprep.mubr.f32.mxu0 %v4772_v0  ;;  %v3676_v46 = vrot.slane %v3670_v4, 4  ;;  %v3677_v29 = vrot.slane %v3671_v24, 4  ;;  %4536 = vmatpush1.msk.msra.mxu1 %vm6503_vm0, %v1683_v60  ;;  %vm6108_vm15 = vcmp.eq.s32.totalorder %v3778_v22, 1  ;;  %v1896_v17 = vrot.slane %v6047_v40, %v5117_v43  ;;  %v1765_v31 = vpop.permute.xlu0 %1764  ;;  %v6116_v26 = vpop.permute.xlu1 %1901 }
 0x1f4   : > { %vm6506_vm11 = vcmask 31744   ;;  %vm6118_vm2 = vcmp.eq.s32.totalorder %v4290_v18, 1  ;;  %vm6122_vm10 = vcmp.eq.s32.totalorder %v4294_v36, 1  ;;  %vm6126_vm0 = vcmp.eq.s32.totalorder %v1892_v34, 1 }
 0x1f5   : > { %4537 = vmatmul.mubr.msk.f32.vlgmr.msra.gmra.mrb[6].mxu1 %vm6506_vm11, %v5441_v19  ;;  %vm1998_vm7 = vcmp.ne.f32.partialorder %v4546_v28, 0.0  ;;  %v1770_v23 = vsel %vm1769_vm13, %v5463_v11, %v1765_v31  ;;  %v1773_v19 = vsel %vm1769_vm13, %v1765_v31, %v5463_v11  ;;  %vm6513_vm11 = vcmask 1043456  }
 0x1f6   : > { %4610 = vmatprep.subr.msk.mxu0 %vm6513_vm11, %v3677_v29  ;;  %1866 = vmatprep.mubr.f32.mxu1 %v4772_v0  ;;  %v3881_v15 = vsel %vm3880_vm8, 1, %v4773_v3  ;;  %v4315_v44 = vsel %vm4314_vm12, 1, %v4773_v3  ;;  %vm6514_vm5 = vcmask 924672   ;;  %v1788_v40 = vsel %vm6034_vm3, %v1773_v19, 0.0  ;;  %vm6516_vm13 = vmmov %vm6513_vm11 }
 0x1f7   : > { %v4250_v27 = vsel %vm6514_vm5, %v4247_v49, %v5896_v7  ;;  %vm6515_vm9 = vmmov %vm6514_vm5  ;;  %v1789_v62 = vsel %vm6038_vm4, %v1770_v23, 0.0  ;;  %4611 = vmatpush1.msk.msra.mxu0 %vm6516_vm13, %v3676_v46  ;;  %vm3872_vm8 = vcmask 777216   ;;  %v1794_v16 = vrot.slane %v1788_v40, 4  ;;  %v3760_v48 = vpop.permute.xlu0 %3759 }
 0x1f8   : > { %v4254_v11 = vsel %vm6515_vm9, %v5896_v7, %v4247_v49  ;;  %v1795_v33 = vrot.slane %v1789_v62, 4  ;;  %vm6152_vm12 = vcmp.eq.s32.totalorder %v1896_v17, 1  ;;  %v1999_v61 = vsel %vm1998_vm7, 1, %v4773_v3  ;;  %v4278_v1 = vpop.permute.xlu1 %4277  ;;  %vm6522_vm5 = vmmov %vm6513_vm11 }
 0x1f9   : > { %v3885_v7 = vrot.slane %v3881_v15, %v5107_v38  ;;  %v3889_v41 = vrot.slane %v3881_v15, %v5117_v43  ;;  %v4319_v2 = vrot.slane %v4315_v44, %v5107_v38  ;;  %vm3991_vm3 = vcmp.ne.f32.partialorder %v4621_v14, 0.0  ;;  %vm6525_vm11 = vmmov %vm6522_vm5 }
 0x1fa   : > { %v4268_v20 = vsel %vm6068_vm14, %v4250_v27, -inf  ;;  %v4269_v53 = vsel %vm6072_vm6, %v4254_v11, -inf  ;;  %vm6519_vm4 = vcmask 31744   ;;  %vm6520_vm9 = vcmask 785408   ;;  %4539 = vmatprep.subr.msk.mxu1 %vm6522_vm5, %v1795_v33 }
 0x1fb   : > { %4612 = vmatmul.mubr.msk.f32.vlgmr.msra.gmra.mrb[0].mxu0 %vm6519_vm4, %v5584_v52  ;;  %v3762_v63 = vsel %vm6520_vm9, %v5479_v32, %v3760_v48  ;;  %vm6521_vm7 = vmmov %vm6520_vm9  ;;  %vm6523_vm14 = vcmask 916480   ;;  %4540 = vmatpush1.msk.msra.mxu1 %vm6525_vm11, %v1794_v16  ;;  %v4323_v47 = vrot.slane %v4315_v44, %v5117_v43  ;;  %vm1991_vm13 = vcmask 146432   ;;  %v1876_v18 = vpop.permute.xlu0 %1875 }
 0x1fc   : > { %v3766_v60 = vsel %vm6521_vm7, %v3760_v48, %v5479_v32  ;;  %v3781_v22 = vsel %vm6094_vm1, %v3762_v63, 0.0  ;;  %v4279_v30 = vsel %vm6523_vm14, %v5929_v25, %v4278_v1  ;;  %vm6524_vm6 = vmmov %vm6523_vm14  ;;  %3859 = vmatprep.mubr.f32.mxu0 %v4772_v0  ;;  %v4272_v49 = vcombine.low %v4268_v20, %v4269_v53  ;;  %v1990_v28 = vpop.permute.xlu1 %1989 }
 0x1fd   : > { %v3782_v56 = vsel %vm6108_vm15, %v3766_v60, 0.0  ;;  %v4283_v52 = vsel %vm6524_vm6, %v4278_v1, %v5929_v25  ;;  %v3787_v32 = vrot.slane %v3781_v22, 4  ;;  %vm6526_vm1 = vmmov %vm6519_vm4  ;;  %v2003_v36 = vrot.slane %v1999_v61, %v5107_v38 }
 0x1fe   : > { %v3788_v8 = vrot.slane %v3782_v56, 4  ;;  %4541 = vmatmul.mubr.msk.f32.vlgmr.msra.gmra.mrb[6].mxu1 %vm6526_vm1, %v5607_v13  ;;  %v2007_v34 = vrot.slane %v1999_v61, %v5117_v43  ;;  %v3992_v25 = vsel %vm3991_vm3, 1, %v4773_v3  ;;  %v4297_v54 = vsel %vm6118_vm2, %v4279_v30, -inf  ;;  %vm6529_vm9 = vmmov %vm6522_vm5 }
 0x1ff   : > { %v4298_v12 = vsel %vm6122_vm10, %v4283_v52, -inf  ;;  %vm6527_vm15 = vcmask 244736   ;;  %1977 = vmatprep.mubr.f32.mxu1 %v4772_v0  ;;  %vm6530_vm2 = vmmov %vm6522_vm5  ;;  %vm6204_vm10 = vcmp.eq.s32.totalorder %v3885_v7, 1  ;;  %vm6208_vm3 = vcmp.eq.s32.totalorder %v3889_v41, 1  ;;  %v3871_v51 = vpop.permute.xlu0 %3870 }
 0x200   : > { %v1881_v58 = vsel %vm6527_vm15, %v5780_v57, %v1876_v18  ;;  %vm6528_vm4 = vmmov %vm6527_vm15  ;;  %4614 = vmatprep.subr.msk.mxu0 %vm6529_vm9, %v3788_v8  ;;  %vm6212_vm7 = vcmp.eq.s32.totalorder %v4319_v2, 1  ;;  %v4301_v31 = vcombine.low %v4297_v54, %v4298_v12  ;;  %v3996_v35 = vrot.slane %v3992_v25, %v5107_v38  ;;  %v4305_v14 = vpop.permute.xlu1 %4304 }
 0x201   : > { %v1884_v13 = vsel %vm6528_vm4, %v1876_v18, %v5780_v57  ;;  %v1900_v4 = vsel %vm6152_vm12, %v1881_v58, 0.0  ;;  %4615 = vmatpush1.msk.msra.mxu0 %vm6530_vm2, %v3787_v32  ;;  %vm6220_vm12 = vcmp.eq.s32.totalorder %v2003_v36, 1  ;;  %v4000_v23 = vrot.slane %v3992_v25, %v5117_v43  ;;  %vm6541_vm5 = vmmov %vm6526_vm1 }
 0x202   : > { %v1899_v3 = vsel %vm6126_vm0, %v1884_v13, 0.0  ;;  %v1906_v29 = vrot.slane %v1900_v4, 4  ;;  %vm6216_vm0 = vcmp.eq.s32.totalorder %v4323_v47, 1  ;;  %v4274_v19 = vmax.f32 %v4245_v6, %v4272_v49  ;;  %vm6542_vm14 = vmmov %vm6530_vm2 }
 0x203   : > { %v1905_v57 = vrot.slane %v1899_v3, 4  ;;  %4616 = vmatmul.mubr.msk.f32.vlgmr.msra.gmra.mrb[0].mxu0 %vm6541_vm5, %v5759_v50  ;;  %v3873_v15 = vsel %vm3872_vm8, %v5997_v21, %v3871_v51  ;;  %v3877_v44 = vsel %vm3872_vm8, %v3871_v51, %v5997_v21  ;;  %vm6236_vm6 = vcmp.eq.s32.totalorder %v2007_v34, 1  ;;  %vm6547_vm8 = vmmov %vm6530_vm2  ;;  %v1987_v16 = vpop.permute.xlu0 %1986 }
 0x204   : > { %4543 = vmatprep.subr.msk.mxu1 %vm6542_vm14, %v1906_v29  ;;  %v3892_v43 = vsel %vm6204_vm10, %v3873_v15, 0.0  ;;  %v3893_v39 = vsel %vm6208_vm3, %v3877_v44, 0.0  ;;  %vm6545_vm11 = vcmask 908288   ;;  %3970 = vmatprep.mubr.f32.mxu0 %v4772_v0  ;;  %v4303_v40 = vmax.f32 %v4274_v19, %v4301_v31  ;;  %vm6548_vm15 = vmmov %vm6541_vm5  ;;  %v3980_v45 = vpop.permute.xlu1 %3979 }
 0x205   : > { %v4308_v50 = vsel %vm6545_vm11, %v4305_v14, %v5995_v59  ;;  %vm6546_vm1 = vmmov %vm6545_vm11  ;;  %4544 = vmatpush1.msk.msra.mxu1 %vm6547_vm8, %v1905_v57  ;;  %v3898_v21 = vrot.slane %v3892_v43, 4  ;;  %v3899_v6 = vrot.slane %v3893_v39, 4  ;;  %v1995_v33 = vsel %vm1991_vm13, %v1987_v16, %v1990_v28 }
 0x206   : > { %v4312_v55 = vsel %vm6546_vm1, %v5995_v59, %v4305_v14  ;;  %v4326_v27 = vsel %vm6212_vm7, %v4308_v50, -inf  ;;  %4545 = vmatmul.mubr.msk.f32.vlgmr.msra.gmra.mrb[6].mxu1 %vm6548_vm15, %v6116_v26  ;;  %v1992_v59 = vsel %vm1991_vm13, %v1990_v28, %v1987_v16  ;;  %vm6549_vm4 = vmmov %vm6530_vm2  ;;  %v2010_v48 = vsel %vm6220_vm12, %v1995_v33, 0.0 }
 0x207   : > { %v4327_v11 = vsel %vm6216_vm0, %v4312_v55, -inf  ;;  %4618 = vmatprep.subr.msk.mxu0 %vm6549_vm4, %v3899_v6  ;;  %2088 = vmatprep.mubr.f32.mxu1 %v4772_v0  ;;  %v2011_v7 = vsel %vm6236_vm6, %v1992_v59, 0.0  ;;  %vm6550_vm9 = vmmov %vm6530_vm2  ;;  %vm3983_vm2 = vcmask 769024   ;;  %v2016_v26 = vrot.slane %v2010_v48, 4  ;;  %v3982_v2 = vpop.permute.xlu0 %3981 }
 0x208   : > { %v4330_v62 = vcombine.low %v4326_v27, %v4327_v11  ;;  %4619 = vmatpush1.msk.msra.mxu0 %vm6550_vm9, %v3898_v21  ;;  %v2017_v41 = vrot.slane %v2011_v7, 4  ;;  %vm4001_vm10 = vcmp.eq.s32.totalorder %v3996_v35, 1  ;;  %vm4002_vm3 = vcmp.eq.s32.totalorder %v4000_v23, 1  ;;  %vm6551_vm13 = vmmov %vm6541_vm5  ;;  %v2013_v63 = vpop.permute.xlu1 %2012 }
 0x209   : > { %v3984_v20 = vsel %vm3983_vm2, %v3980_v45, %v3982_v2  ;;  %v3988_v53 = vsel %vm3983_vm2, %v3982_v2, %v3980_v45  ;;  %vm6552_vm7 = vmmov %vm6549_vm4 }
 0x20a   : > { %v4332_v61 = vmax.f32 %v4303_v40, %v4330_v62  ;;  %4547 = vmatprep.subr.msk.mxu1 %vm6552_vm7, %v2017_v41  ;;  %v4003_v1 = vsel %vm4001_vm10, %v3984_v20, 0.0  ;;  %v4004_v22 = vsel %vm4002_vm3, %v3988_v53, 0.0  ;;  %vm6553_vm0 = vmmov %vm6549_vm4 }
 0x20b   : > { %4620 = vmatmul.mubr.msk.f32.vlgmr.msra.gmra.mrb[0].mxu0 %vm6551_vm13, %v5963_v5  ;;  %4548 = vmatpush1.msk.msra.mxu1 %vm6553_vm0, %v2016_v26  ;;  %v4009_v56 = vrot.slane %v4003_v1, 4  ;;  %v4010_v30 = vrot.slane %v4004_v22, 4  ;;  %vm6554_vm12 = vmmov %vm6553_vm0  ;;  %v4333_v5 = vld [vmem:[%s6308_s8] sm:$0xff]  ;;  %v4006_v52 = vpop.permute.xlu0 %4005 }
 0x20c   : > { %v4341_v60 = vcombine.high %v4332_v61, %v4332_v61  ;;  %4081 = vmatprep.mubr.f32.mxu0 %v4772_v0  ;;  %vm6555_vm14 = vmmov %vm6553_vm0 }
 0x20d   : > { %vm6556_vm6 = vmmov %vm6553_vm0 }
 0x20e   : > { %4633 = vmatprep.subr.msk.mxu1 %vm6554_vm12, %v4341_v60  ;;  %4549 = vmatmul.mubr.msk.f32.vlgmr.msra.gmra.mrb[6].mxu1 %vm6541_vm5, %v2013_v63  ;;  %vm6557_vm11 = vmmov %vm6553_vm0 }
 0x20f   : > { %4634 = vmatpush1.msk.msra.mxu1 %vm6555_vm14, %v4332_v61  ;;  %4622 = vmatprep.subr.msk.mxu0 %vm6556_vm6, %v4010_v30  ;;  %vm6558_vm1 = vmmov %vm6541_vm5 }
 0x210   : > { %4623 = vmatpush1.msk.msra.mxu0 %vm6557_vm11, %v4009_v56  ;;  %4413 = vmatprep.mubr.f32.mxu1 %v4772_v0  ;;  %vm6559_vm8 = vmmov %vm6558_vm1 }
 0x212   : > { %4635 = vmatmul.mubr.msk.f32.vlgmr.msra.gmra.mrb[8].mxu1 %vm6558_vm1, %v4333_v5 }
 0x213   : > { %4624 = vmatmul.mubr.msk.f32.vlgmr.msra.gmra.mrb[0].mxu0 %vm6559_vm8, %v4006_v52 }
 0x219   : > { %v368_v32 = vpop.permute.xlu1 %367 }
 0x21a   : > { %v456_v8 = vadd.f32 %v4945_v9, %v368_v32  ;;  %v458_v47 = vadd.f32 %v4947_v10, %v368_v32 }
 0x21c   : > { %v466_v0 = vmax.f32 %v456_v8, 0.0  ;;  %v467_v49 = vmax.f32 %v458_v47, 0.0  ;;  %v1427_v18 = vpop.permute.xlu0 %1426 }
 0x21e   : > { %470 = vst [vmem:[%s6287_s12] sm:$0xff] %v466_v0  ;;  %471 = vst [vmem:[%s6287_s12 + $0x8] sm:$0xff] %v467_v49 }
 0x221   : > { %v4338_v13 = vpop.permute.xlu0 %4337 }
 0x224   : > { %v4093_v31 = vpop.permute.xlu1 %4092 }
 0x2ae   : > { %v1417_v36 = vpop.f32.mrb[4].mxu1 }
 0x2af   : > { %v1429_v34 = vadd.f32 %v1427_v18, %v1417_v36  ;;  %v1419_v25 = vpop.f32.mrb[5].mxu1 }
 0x2b0   : > { %v1430_v9 = vadd.f32 %v1427_v18, %v1419_v25 }
 0x2b1   : > { %v1431_v54 = vmax.f32 %v1429_v34, 0.0 }
 0x2b2   : > { %v1432_v10 = vmax.f32 %v1430_v9, 0.0 }
 0x2b3   : > { %1433 = vst [vmem:[%s6287_s12 + $0x10] sm:$0xff] %v1431_v54 }
 0x2b4   : > { %1434 = vst [vmem:[%s6287_s12 + $0x18] sm:$0xff] %v1432_v10 }
 0x2e1   : > { %v2090_v12 = vpop.f32.mrb[6].mxu1 }
 0x2e2   : > { %v2092_v58 = vpop.f32.mrb[7].mxu1 }
 0x2e5   : > { %v4415_v28 = vpop.f32.mrb[8].mxu1 }
 0x2e6   : > { %v4083_v3 = vpop.f32.mrb[0].mxu0  ;;  %v4416_v4 = vadd.f32 %v4415_v28, %v4338_v13  ;;  %v4417_v24 = vpop.f32.mrb[9].mxu1 }
 0x2e7   : > { %v4640_v46 = vadd.f32 %v4083_v3, %v2090_v12  ;;  %v4085_v57 = vpop.f32.mrb[1].mxu0  ;;  %v4418_v29 = vadd.f32 %v4417_v24, %v4338_v13 }
 0x2e8   : > { %v4420_v37 = vmax.f32 %v4416_v4, 0.0  ;;  %v4641_v17 = vadd.f32 %v4085_v57, %v2092_v58 }
 0x2e9   : > { %v4421_v51 = vmax.f32 %v4418_v29, 0.0  ;;  %v4095_v42 = vadd.f32 %v4640_v46, %v4093_v31 }
 0x2ea   : > { %4422 = vst [vmem:[%s6287_s12 + $0x30] sm:$0xff] %v4420_v37  ;;  %v4096_v35 = vadd.f32 %v4641_v17, %v4093_v31 }
 0x2eb   : > { %4423 = vst [vmem:[%s6287_s12 + $0x38] sm:$0xff] %v4421_v51  ;;  %v4097_v23 = vmax.f32 %v4095_v42, 0.0 }
 0x2ec   : > { %v4098_v19 = vmax.f32 %v4096_v35, 0.0 }
 0x2ed   : > { %4099 = vst [vmem:[%s6287_s12 + $0x20] sm:$0xff] %v4097_v23 }
 0x2ee   : > { %4100 = vst [vmem:[%s6287_s12 + $0x28] sm:$0xff] %v4098_v19 }
 0x2ef PF: > { %s20_s13 = sadd.s32 1, %s4770_s13  }
 0x2f0   : > { %p17_p4 = scmp.ge.s32.totalorder %s20_s13, 4  }
 0x2f2   :  { %19 = sbr.rel (!%p17_p4) target bundleno = 1 (0x1), region = 113 }

</bundles_post_ra>
